<compile_context>
chip_gen: v7x
topology: tpu7x:2x2x1
jax: 0.10.0
libtpu: 0.0.40
codegen_flags: <defaults>
</compile_context>

<pallas_src>
import math
import functools

import jax
import jax.numpy as jnp
from jax.experimental import pallas as pl
from jax.experimental.pallas import tpu as pltpu


# ----------------------------------------------------------------------------- in-kernel helpers

def _dot(a, b):
    # Default MXU precision (review: drop HIGHEST), f32 accumulation.
    return jnp.dot(a, b, preferred_element_type=jnp.float32)


def _layernorm(x, g, b, eps=1e-5):
    mean = jnp.mean(x, axis=-1, keepdims=True)
    xc = x - mean
    var = jnp.mean(xc * xc, axis=-1, keepdims=True)
    return xc * jax.lax.rsqrt(var + eps) * g + b


def _erf(x):
    # Abramowitz & Stegun 7.1.26 (max abs err ~1.5e-7): matches torch.nn.GELU()
    # (exact erf form) to ~f32 precision without relying on an erf lowering.
    a1, a2, a3, a4, a5 = 0.254829592, -0.284496736, 1.421413741, -1.453152027, 1.061405429
    sign = jnp.where(x >= 0.0, 1.0, -1.0)
    ax = jnp.abs(x)
    t = pl.reciprocal(1.0 + 0.3275911 * ax, approx=False)   # EUP path
    poly = ((((a5 * t + a4) * t + a3) * t + a2) * t + a1) * t
    return sign * (1.0 - poly * jnp.exp(-ax * ax))


def _gelu(x):
    return 0.5 * x * (1.0 + _erf(x * 0.7071067811865476))


def _softmax_rows(s):
    s = s - jnp.max(s, axis=-1, keepdims=True)
    p = jnp.exp(s)
    return p * pl.reciprocal(jnp.sum(p, axis=-1, keepdims=True), approx=False)


# ----------------------------------------------------------------------------- fused kernel

def fused_forward_kernel(ta_ref, pe_ref, embw_ref, misc_ref, wmat_ref, bvec_ref,
                         out_ref, *, B, S, E, H, num_layers, action_dim):
    M = B * S
    hd = E // H
    scale = 1.0 / math.sqrt(hd)

    # Batch-block-diagonal attention mask (rows are (batch, seq) flattened,
    # attention is over the sequence dim within each batch row).  Built once,
    # shared by every attention call, no integer division.
    ri = jax.lax.broadcasted_iota(jnp.int32, (M, M), 0)
    ci = jax.lax.broadcasted_iota(jnp.int32, (M, M), 1)
    blocks = []
    for b in range(B):
        r_in = (ri >= b * S) & (ri < (b + 1) * S)
        c_in = (ci >= b * S) & (ci < (b + 1) * S)
        blocks.append(r_in & c_in)
    batch_mask = functools.reduce(jnp.logical_or, blocks)

    def mha(xin, w_in, b_in, w_out, b_out):
        # nn.MultiheadAttention over the sequence axis, no attn mask.
        qkv = _dot(xin, w_in) + b_in                       # (M, 3E)
        acc = None
        for h in range(H):
            c = h * hd
            qh = qkv[:, c:c + hd]
            kh = qkv[:, E + c:E + c + hd]
            vh = qkv[:, 2 * E + c:2 * E + c + hd]
            # scores: contract on the last dims -> no explicit transpose of K
            s = jax.lax.dot_general(qh, kh, (((1,), (1,)), ((), ())),
                                    preferred_element_type=jnp.float32) * scale
            s = jnp.where(batch_mask, s, -1e30)
            p = _softmax_rows(s)                           # (M, M)
            oh = _dot(p, vh)                               # (M, hd)
            # head merge folded into the output projection (no concatenate)
            contrib = _dot(oh, w_out[c:c + hd, :])         # (M, E)
            acc = contrib if acc is None else acc + contrib
        return acc + b_out

    # ----- embeddings + gated multimodal fusion -----
    # embw is block-diagonal [[W_text, 0], [0, W_audio]] so one matmul gives
    # tap = [text_proj | audio_proj]  (M, 2E).
    tap = _dot(ta_ref[...], embw_ref[...]) + misc_ref[0:1, 0:2 * E]
    tp = tap[:, 0:E]
    ap = tap[:, E:2 * E]
    # softmax over 2 gate classes == sigmoid of the logit difference
    l0 = jnp.sum(tap * misc_ref[1:2, 0:2 * E], axis=-1, keepdims=True) + misc_ref[3:4, 0:1]
    l1 = jnp.sum(tap * misc_ref[2:3, 0:2 * E], axis=-1, keepdims=True) + misc_ref[3:4, 1:2]
    g1 = pl.reciprocal(1.0 + jnp.exp(l0 - l1), approx=False)      # = softmax([l0,l1])[1]
    x = tp + g1 * (ap - tp) + pe_ref[...]

    # ----- transformer layers (statically unrolled, all VMEM-resident) -----
    for li in range(num_layers):
        mb = li * 10 * E          # matrix-slab base row for this layer
        bb = li * 16              # bias/norm-slab base row for this layer

        w_in_t = wmat_ref[mb + 0 * E:mb + 1 * E, 0:3 * E]
        w_out_t = wmat_ref[mb + 1 * E:mb + 2 * E, 0:E]
        sp_w = wmat_ref[mb + 2 * E:mb + 3 * E, 0:E]
        w_in_s = wmat_ref[mb + 3 * E:mb + 4 * E, 0:3 * E]
        w_out_s = wmat_ref[mb + 4 * E:mb + 5 * E, 0:E]
        f_w1 = wmat_ref[mb + 5 * E:mb + 6 * E, 0:4 * E]
        f_w2 = wmat_ref[mb + 6 * E:mb + 10 * E, 0:E]

        b_in_t = bvec_ref[bb + 0:bb + 1, 0:3 * E]
        b_out_t = bvec_ref[bb + 1:bb + 2, 0:E]
        sp_b = bvec_ref[bb + 2:bb + 3, 0:E]
        b_in_s = bvec_ref[bb + 3:bb + 4, 0:3 * E]
        b_out_s = bvec_ref[bb + 4:bb + 5, 0:E]
        an_g = bvec_ref[bb + 5:bb + 6, 0:E]
        an_b = bvec_ref[bb + 6:bb + 7, 0:E]
        n1_g = bvec_ref[bb + 7:bb + 8, 0:E]
        n1_b = bvec_ref[bb + 8:bb + 9, 0:E]
        f_b1 = bvec_ref[bb + 9:bb + 10, 0:4 * E]
        f_b2 = bvec_ref[bb + 10:bb + 11, 0:E]
        n2_g = bvec_ref[bb + 11:bb + 12, 0:E]
        n2_b = bvec_ref[bb + 12:bb + 13, 0:E]

        # DiviedSpaceTimeAttention (use_time_attention=True)
        x1 = x + mha(x, w_in_t, b_in_t, w_out_t, b_out_t)
        x_space = _dot(x1, sp_w) + sp_b
        x2 = x1 + mha(x_space, w_in_s, b_in_s, w_out_s, b_out_s)
        attn_out = _layernorm(x2, an_g, an_b)

        # TransformerBlock wrapper (dropout = identity in eval)
        x3 = _layernorm(x + attn_out, n1_g, n1_b)
        hmid = _gelu(_dot(x3, f_w1) + f_b1)
        x = _layernorm(x3 + _dot(hmid, f_w2) + f_b2, n2_g, n2_b)

    # ----- head: fc_out on all M rows; last-token select happens in the wrapper -----
    fco_w = misc_ref[8:8 + E, 0:action_dim]
    fco_b = misc_ref[4:5, 0:action_dim]
    out_ref[...] = _dot(x, fco_w) + fco_b


# ----------------------------------------------------------------------------- host-side packing

def positional_encoding(S, E):
    pos = jnp.arange(S, dtype=jnp.float32)[:, None]
    div = jnp.exp(jnp.arange(0, E, 2, dtype=jnp.float32) * (-math.log(10000.0) / E))
    pe = jnp.zeros((S, E), jnp.float32)
    pe = pe.at[:, 0::2].set(jnp.sin(pos * div))
    pe = pe.at[:, 1::2].set(jnp.cos(pos * div))
    return pe


def pack_params(params, batch, seq_len, *, embed_dim):
    """Pack all weights into a handful of contiguous slabs (few DMAs at launch)."""
    E = embed_dim
    TD = params["text_emb_w"].shape[0]
    AD = params["audio_emb_w"].shape[0]
    A = params["fc_out_w"].shape[1]

    pe = jnp.tile(positional_encoding(seq_len, E), (batch, 1))           # (M, E)

    emb_w = jnp.zeros((TD + AD, 2 * E), jnp.float32)
    emb_w = emb_w.at[:TD, :E].set(params["text_emb_w"])
    emb_w = emb_w.at[TD:, E:].set(params["audio_emb_w"])

    misc = jnp.zeros((8 + E, 2 * E), jnp.float32)
    misc = misc.at[0, :E].set(params["text_emb_b"])
    misc = misc.at[0, E:2 * E].set(params["audio_emb_b"])
    misc = misc.at[1, :2 * E].set(params["fusion_gate_w"][:, 0])
    misc = misc.at[2, :2 * E].set(params["fusion_gate_w"][:, 1])
    misc = misc.at[3, 0:2].set(params["fusion_gate_b"])
    misc = misc.at[4, :A].set(params["fc_out_b"])
    misc = misc.at[8:8 + E, :A].set(params["fc_out_w"])

    mats, vecs = [], []
    for lp in params["layers"]:
        blk = jnp.zeros((10 * E, 4 * E), jnp.float32)
        blk = blk.at[0 * E:1 * E, 0:3 * E].set(lp["time_attn"]["w_in"])
        blk = blk.at[1 * E:2 * E, 0:E].set(lp["time_attn"]["w_out"])
        blk = blk.at[2 * E:3 * E, 0:E].set(lp["spatial_proj_w"])
        blk = blk.at[3 * E:4 * E, 0:3 * E].set(lp["spatial_attn"]["w_in"])
        blk = blk.at[4 * E:5 * E, 0:E].set(lp["spatial_attn"]["w_out"])
        blk = blk.at[5 * E:6 * E, 0:4 * E].set(lp["ffn_w1"])
        blk = blk.at[6 * E:10 * E, 0:E].set(lp["ffn_w2"])
        mats.append(blk)

        vb = jnp.zeros((16, 4 * E), jnp.float32)
        vb = vb.at[0, 0:3 * E].set(lp["time_attn"]["b_in"])
        vb = vb.at[1, 0:E].set(lp["time_attn"]["b_out"])
        vb = vb.at[2, 0:E].set(lp["spatial_proj_b"])
        vb = vb.at[3, 0:3 * E].set(lp["spatial_attn"]["b_in"])
        vb = vb.at[4, 0:E].set(lp["spatial_attn"]["b_out"])
        vb = vb.at[5, 0:E].set(lp["attn_norm_g"])
        vb = vb.at[6, 0:E].set(lp["attn_norm_b"])
        vb = vb.at[7, 0:E].set(lp["norm1_g"])
        vb = vb.at[8, 0:E].set(lp["norm1_b"])
        vb = vb.at[9, 0:4 * E].set(lp["ffn_b1"])
        vb = vb.at[10, 0:E].set(lp["ffn_b2"])
        vb = vb.at[11, 0:E].set(lp["norm2_g"])
        vb = vb.at[12, 0:E].set(lp["norm2_b"])
        vecs.append(vb)

    return {
        "pe": pe,
        "emb_w": emb_w,
        "misc": misc,
        "wmat": jnp.concatenate(mats, axis=0),   # (L*10E, 4E)
        "bvec": jnp.concatenate(vecs, axis=0),   # (L*16,  4E)
    }


# ----------------------------------------------------------------------------- wrapper

def forward(packed, text, audio, *, embed_dim, num_heads, num_layers, action_dim):
    B, S, TD = text.shape
    AD = audio.shape[-1]
    E = embed_dim
    M = B * S

    ta = jnp.concatenate([text.reshape(M, TD), audio.reshape(M, AD)], axis=-1)

    kernel = functools.partial(
        fused_forward_kernel, B=B, S=S, E=E, H=num_heads,
        num_layers=num_layers, action_dim=action_dim)

    vmem = lambda: pl.BlockSpec(memory_space=pltpu.MemorySpace.VMEM)
    inputs = [ta, packed["pe"], packed["emb_w"], packed["misc"],
              packed["wmat"], packed["bvec"]]

    out_full = pl.pallas_call(
        kernel,
        in_specs=[vmem() for _ in inputs],
        out_specs=vmem(),
        out_shape=jax.ShapeDtypeStruct((M, action_dim), jnp.float32),
    )(*inputs)

    # fc_out(x[:, -1, :]): trivial last-token row-select done outside the kernel
    return out_full.reshape(B, S, action_dim)[:, -1, :]


# ----------------------------------------------------------------------------- params

def init_params(key, text_dim, audio_dim, action_dim, E, num_layers):
    keys = iter(jax.random.split(key, 16 + 8 * num_layers))

    def w(shape, scale=0.02):
        return jax.random.normal(next(keys), shape, jnp.float32) * scale

    def mha_params():
        return {
            "w_in": w((E, 3 * E)),
            "b_in": jnp.zeros((3 * E,), jnp.float32),
            "w_out": w((E, E)),
            "b_out": jnp.zeros((E,), jnp.float32),
        }

    layers = []
    for _ in range(num_layers):
        layers.append({
            "time_attn": mha_params(),
            "spatial_attn": mha_params(),
            "spatial_proj_w": w((E, E)),
            "spatial_proj_b": jnp.zeros((E,), jnp.float32),
            "attn_norm_g": jnp.ones((E,), jnp.float32),
            "attn_norm_b": jnp.zeros((E,), jnp.float32),
            "ffn_w1": w((E, 4 * E)),
            "ffn_b1": jnp.zeros((4 * E,), jnp.float32),
            "ffn_w2": w((4 * E, E)),
            "ffn_b2": jnp.zeros((E,), jnp.float32),
            "norm1_g": jnp.ones((E,), jnp.float32),
            "norm1_b": jnp.zeros((E,), jnp.float32),
            "norm2_g": jnp.ones((E,), jnp.float32),
            "norm2_b": jnp.zeros((E,), jnp.float32),
        })

    return {
        "text_emb_w": w((text_dim, E)),
        "text_emb_b": jnp.zeros((E,), jnp.float32),
        "audio_emb_w": w((audio_dim, E)),
        "audio_emb_b": jnp.zeros((E,), jnp.float32),
        "fusion_gate_w": w((2 * E, 2)),
        "fusion_gate_b": jnp.zeros((2,), jnp.float32),
        "fc_out_w": w((E, action_dim)),
        "fc_out_b": jnp.zeros((action_dim,), jnp.float32),
        "layers": layers,
    }


# ----------------------------------------------------------------------------- main

if __name__ == "__main__":
    B, S = 2, 8
    TEXT_DIM, AUDIO_DIM, ACTION_DIM = 32, 48, 16
    EMBED_DIM, NUM_HEADS, NUM_LAYERS = 32, 4, 2
    assert EMBED_DIM % NUM_HEADS == 0

    key = jax.random.PRNGKey(0)
    kp, kt, ka = jax.random.split(key, 3)
    params = init_params(kp, TEXT_DIM, AUDIO_DIM, ACTION_DIM, EMBED_DIM, NUM_LAYERS)
    text = jax.random.normal(kt, (B, S, TEXT_DIM), jnp.float32)
    audio = jax.random.normal(ka, (B, S, AUDIO_DIM), jnp.float32)

    packed = pack_params(params, B, S, embed_dim=EMBED_DIM)

    fwd = jax.jit(functools.partial(
        forward, embed_dim=EMBED_DIM, num_heads=NUM_HEADS,
        num_layers=NUM_LAYERS, action_dim=ACTION_DIM))
    out = jax.block_until_ready(fwd(packed, text, audio))

    assert out.shape == (B, ACTION_DIM), out.shape
    assert bool(jnp.all(jnp.isfinite(out)))
    print("KERNEL_OK")
</pallas_src>

<mosaic_0001>
module attributes {stable_mosaic.version = 11 : i64} {
  func.func @fused_forward_kernel(%arg0: memref<16x80xf32, #tpu.memory_space<vmem>>, %arg1: memref<16x32xf32, #tpu.memory_space<vmem>>, %arg2: memref<80x64xf32, #tpu.memory_space<vmem>>, %arg3: memref<40x64xf32, #tpu.memory_space<vmem>>, %arg4: memref<640x128xf32, #tpu.memory_space<vmem>>, %arg5: memref<32x128xf32, #tpu.memory_space<vmem>>, %arg6: memref<16x16xf32, #tpu.memory_space<vmem>>) attributes {dimension_semantics = [], scalar_prefetch = 0 : i64, scratch_operands = 0 : i64, tpu.core_type = #tpu.core_type<tc>} {
    %0 = tpu.iota {dimensions = array<i32: 0>} : vector<16x16xi32>
    %1 = tpu.iota {dimensions = array<i32: 1>} : vector<16x16xi32>
    %c0_i32 = arith.constant 0 : i32
    %2 = vector.broadcast %c0_i32 : i32 to vector<16x16xi32>
    %3 = arith.cmpi sge, %0, %2 : vector<16x16xi32>
    %c8_i32 = arith.constant 8 : i32
    %4 = vector.broadcast %c8_i32 : i32 to vector<16x16xi32>
    %5 = arith.cmpi slt, %0, %4 : vector<16x16xi32>
    %6 = arith.andi %3, %5 : vector<16x16xi1>
    %c0_i32_0 = arith.constant 0 : i32
    %7 = vector.broadcast %c0_i32_0 : i32 to vector<16x16xi32>
    %8 = arith.cmpi sge, %1, %7 : vector<16x16xi32>
    %c8_i32_1 = arith.constant 8 : i32
    %9 = vector.broadcast %c8_i32_1 : i32 to vector<16x16xi32>
    %10 = arith.cmpi slt, %1, %9 : vector<16x16xi32>
    %11 = arith.andi %8, %10 : vector<16x16xi1>
    %12 = arith.andi %6, %11 : vector<16x16xi1>
    %c8_i32_2 = arith.constant 8 : i32
    %13 = vector.broadcast %c8_i32_2 : i32 to vector<16x16xi32>
    %14 = arith.cmpi sge, %0, %13 : vector<16x16xi32>
    %c16_i32 = arith.constant 16 : i32
    %15 = vector.broadcast %c16_i32 : i32 to vector<16x16xi32>
    %16 = arith.cmpi slt, %0, %15 : vector<16x16xi32>
    %17 = arith.andi %14, %16 : vector<16x16xi1>
    %c8_i32_3 = arith.constant 8 : i32
    %18 = vector.broadcast %c8_i32_3 : i32 to vector<16x16xi32>
    %19 = arith.cmpi sge, %1, %18 : vector<16x16xi32>
    %c16_i32_4 = arith.constant 16 : i32
    %20 = vector.broadcast %c16_i32_4 : i32 to vector<16x16xi32>
    %21 = arith.cmpi slt, %1, %20 : vector<16x16xi32>
    %22 = arith.andi %19, %21 : vector<16x16xi1>
    %23 = arith.andi %17, %22 : vector<16x16xi1>
    %24 = arith.ori %12, %23 : vector<16x16xi1>
    %c0 = arith.constant 0 : index
    %c0_5 = arith.constant 0 : index
    %25 = vector.load %arg0[%c0, %c0_5] : memref<16x80xf32, #tpu.memory_space<vmem>>, vector<16x80xf32>
    %c0_6 = arith.constant 0 : index
    %c0_7 = arith.constant 0 : index
    %26 = vector.load %arg2[%c0_6, %c0_7] : memref<80x64xf32, #tpu.memory_space<vmem>>, vector<80x64xf32>
    %cst = arith.constant dense<0.000000e+00> : vector<16x64xf32>
    %27 = tpu.matmul %25, %26, %cst {dimension_numbers = #tpu.dot_dimension_numbers<[1], [0], [0], [1], [0, 0, 1, 1], [], []>} : vector<16x80xf32>, vector<80x64xf32>, vector<16x64xf32> -> vector<16x64xf32>
    %c0_8 = arith.constant 0 : index
    %c0_9 = arith.constant 0 : index
    %28 = vector.load %arg3[%c0_8, %c0_9] : memref<40x64xf32, #tpu.memory_space<vmem>>, vector<1x64xf32>
    %29 = vector.broadcast %28 : vector<1x64xf32> to vector<16x64xf32>
    %30 = arith.addf %27, %29 : vector<16x64xf32>
    %31 = vector.extract_strided_slice %30 {offsets = [0, 0], sizes = [16, 32], strides = [1, 1]} : vector<16x64xf32> to vector<16x32xf32>
    %32 = vector.extract_strided_slice %30 {offsets = [0, 32], sizes = [16, 32], strides = [1, 1]} : vector<16x64xf32> to vector<16x32xf32>
    %c1 = arith.constant 1 : index
    %c0_10 = arith.constant 0 : index
    %33 = vector.load %arg3[%c1, %c0_10] : memref<40x64xf32, #tpu.memory_space<vmem>>, vector<1x64xf32>
    %34 = vector.broadcast %33 : vector<1x64xf32> to vector<16x64xf32>
    %35 = arith.mulf %30, %34 : vector<16x64xf32>
    %cst_11 = arith.constant dense<0.000000e+00> : vector<16xf32>
    %36 = vector.multi_reduction <add>, %35, %cst_11 [1] : vector<16x64xf32> to vector<16xf32>
    %37 = vector.shape_cast %36 : vector<16xf32> to vector<16x1xf32>
    %c3 = arith.constant 3 : index
    %c0_12 = arith.constant 0 : index
    %38 = vector.load %arg3[%c3, %c0_12] : memref<40x64xf32, #tpu.memory_space<vmem>>, vector<1x1xf32>
    %39 = vector.broadcast %38 : vector<1x1xf32> to vector<16x1xf32>
    %40 = arith.addf %37, %39 : vector<16x1xf32>
    %c2 = arith.constant 2 : index
    %c0_13 = arith.constant 0 : index
    %41 = vector.load %arg3[%c2, %c0_13] : memref<40x64xf32, #tpu.memory_space<vmem>>, vector<1x64xf32>
    %42 = vector.broadcast %41 : vector<1x64xf32> to vector<16x64xf32>
    %43 = arith.mulf %30, %42 : vector<16x64xf32>
    %cst_14 = arith.constant dense<0.000000e+00> : vector<16xf32>
    %44 = vector.multi_reduction <add>, %43, %cst_14 [1] : vector<16x64xf32> to vector<16xf32>
    %45 = vector.shape_cast %44 : vector<16xf32> to vector<16x1xf32>
    %c3_15 = arith.constant 3 : index
    %c1_16 = arith.constant 1 : index
    %46 = vector.load %arg3[%c3_15, %c1_16] : memref<40x64xf32, #tpu.memory_space<vmem>>, vector<1x1xf32>
    %47 = vector.broadcast %46 : vector<1x1xf32> to vector<16x1xf32>
    %48 = arith.addf %45, %47 : vector<16x1xf32>
    %49 = arith.subf %40, %48 : vector<16x1xf32>
    %50 = math.exp %49 : vector<16x1xf32>
    %cst_17 = arith.constant 1.000000e+00 : f32
    %51 = vector.broadcast %cst_17 : f32 to vector<16x1xf32>
    %52 = arith.addf %51, %50 : vector<16x1xf32>
    %53 = tpu.reciprocal %52 : vector<16x1xf32> -> vector<16x1xf32>
    %54 = arith.subf %32, %31 : vector<16x32xf32>
    %55 = vector.broadcast %53 : vector<16x1xf32> to vector<16x32xf32>
    %56 = arith.mulf %55, %54 : vector<16x32xf32>
    %57 = arith.addf %31, %56 : vector<16x32xf32>
    %c0_18 = arith.constant 0 : index
    %c0_19 = arith.constant 0 : index
    %58 = vector.load %arg1[%c0_18, %c0_19] : memref<16x32xf32, #tpu.memory_space<vmem>>, vector<16x32xf32>
    %59 = arith.addf %57, %58 : vector<16x32xf32>
    %c0_20 = arith.constant 0 : index
    %c0_21 = arith.constant 0 : index
    %60 = vector.load %arg4[%c0_20, %c0_21] : memref<640x128xf32, #tpu.memory_space<vmem>>, vector<32x96xf32>
    %c32 = arith.constant 32 : index
    %c0_22 = arith.constant 0 : index
    %61 = vector.load %arg4[%c32, %c0_22] : memref<640x128xf32, #tpu.memory_space<vmem>>, vector<32x32xf32>
    %c64 = arith.constant 64 : index
    %c0_23 = arith.constant 0 : index
    %62 = vector.load %arg4[%c64, %c0_23] : memref<640x128xf32, #tpu.memory_space<vmem>>, vector<32x32xf32>
    %c96 = arith.constant 96 : index
    %c0_24 = arith.constant 0 : index
    %63 = vector.load %arg4[%c96, %c0_24] : memref<640x128xf32, #tpu.memory_space<vmem>>, vector<32x96xf32>
    %c128 = arith.constant 128 : index
    %c0_25 = arith.constant 0 : index
    %64 = vector.load %arg4[%c128, %c0_25] : memref<640x128xf32, #tpu.memory_space<vmem>>, vector<32x32xf32>
    %c160 = arith.constant 160 : index
    %c0_26 = arith.constant 0 : index
    %65 = vector.load %arg4[%c160, %c0_26] : memref<640x128xf32, #tpu.memory_space<vmem>>, vector<32x128xf32>
    %c192 = arith.constant 192 : index
    %c0_27 = arith.constant 0 : index
    %66 = vector.load %arg4[%c192, %c0_27] : memref<640x128xf32, #tpu.memory_space<vmem>>, vector<128x32xf32>
    %c0_28 = arith.constant 0 : index
    %c0_29 = arith.constant 0 : index
    %67 = vector.load %arg5[%c0_28, %c0_29] : memref<32x128xf32, #tpu.memory_space<vmem>>, vector<1x96xf32>
    %c1_30 = arith.constant 1 : index
    %c0_31 = arith.constant 0 : index
    %68 = vector.load %arg5[%c1_30, %c0_31] : memref<32x128xf32, #tpu.memory_space<vmem>>, vector<1x32xf32>
    %c2_32 = arith.constant 2 : index
    %c0_33 = arith.constant 0 : index
    %69 = vector.load %arg5[%c2_32, %c0_33] : memref<32x128xf32, #tpu.memory_space<vmem>>, vector<1x32xf32>
    %c3_34 = arith.constant 3 : index
    %c0_35 = arith.constant 0 : index
    %70 = vector.load %arg5[%c3_34, %c0_35] : memref<32x128xf32, #tpu.memory_space<vmem>>, vector<1x96xf32>
    %c4 = arith.constant 4 : index
    %c0_36 = arith.constant 0 : index
    %71 = vector.load %arg5[%c4, %c0_36] : memref<32x128xf32, #tpu.memory_space<vmem>>, vector<1x32xf32>
    %c5 = arith.constant 5 : index
    %c0_37 = arith.constant 0 : index
    %72 = vector.load %arg5[%c5, %c0_37] : memref<32x128xf32, #tpu.memory_space<vmem>>, vector<1x32xf32>
    %c6 = arith.constant 6 : index
    %c0_38 = arith.constant 0 : index
    %73 = vector.load %arg5[%c6, %c0_38] : memref<32x128xf32, #tpu.memory_space<vmem>>, vector<1x32xf32>
    %c7 = arith.constant 7 : index
    %c0_39 = arith.constant 0 : index
    %74 = vector.load %arg5[%c7, %c0_39] : memref<32x128xf32, #tpu.memory_space<vmem>>, vector<1x32xf32>
    %c8 = arith.constant 8 : index
    %c0_40 = arith.constant 0 : index
    %75 = vector.load %arg5[%c8, %c0_40] : memref<32x128xf32, #tpu.memory_space<vmem>>, vector<1x32xf32>
    %c9 = arith.constant 9 : index
    %c0_41 = arith.constant 0 : index
    %76 = vector.load %arg5[%c9, %c0_41] : memref<32x128xf32, #tpu.memory_space<vmem>>, vector<1x128xf32>
    %c10 = arith.constant 10 : index
    %c0_42 = arith.constant 0 : index
    %77 = vector.load %arg5[%c10, %c0_42] : memref<32x128xf32, #tpu.memory_space<vmem>>, vector<1x32xf32>
    %c11 = arith.constant 11 : index
    %c0_43 = arith.constant 0 : index
    %78 = vector.load %arg5[%c11, %c0_43] : memref<32x128xf32, #tpu.memory_space<vmem>>, vector<1x32xf32>
    %c12 = arith.constant 12 : index
    %c0_44 = arith.constant 0 : index
    %79 = vector.load %arg5[%c12, %c0_44] : memref<32x128xf32, #tpu.memory_space<vmem>>, vector<1x32xf32>
    %cst_45 = arith.constant dense<0.000000e+00> : vector<16x96xf32>
    %80 = tpu.matmul %59, %60, %cst_45 {dimension_numbers = #tpu.dot_dimension_numbers<[1], [0], [0], [1], [0, 0, 1, 1], [], []>} : vector<16x32xf32>, vector<32x96xf32>, vector<16x96xf32> -> vector<16x96xf32>
    %81 = vector.broadcast %67 : vector<1x96xf32> to vector<16x96xf32>
    %82 = arith.addf %80, %81 : vector<16x96xf32>
    %83 = vector.extract_strided_slice %82 {offsets = [0, 0], sizes = [16, 8], strides = [1, 1]} : vector<16x96xf32> to vector<16x8xf32>
    %84 = vector.extract_strided_slice %82 {offsets = [0, 32], sizes = [16, 8], strides = [1, 1]} : vector<16x96xf32> to vector<16x8xf32>
    %85 = vector.extract_strided_slice %82 {offsets = [0, 64], sizes = [16, 8], strides = [1, 1]} : vector<16x96xf32> to vector<16x8xf32>
    %cst_46 = arith.constant dense<0.000000e+00> : vector<16x16xf32>
    %86 = tpu.matmul %83, %84, %cst_46 {dimension_numbers = #tpu.dot_dimension_numbers<[1], [1], [0], [0], [0, 0, 1, 0], [], []>} : vector<16x8xf32>, vector<16x8xf32>, vector<16x16xf32> -> vector<16x16xf32>
    %cst_47 = arith.constant 0.353553385 : f32
    %87 = vector.broadcast %cst_47 : f32 to vector<16x16xf32>
    %88 = arith.mulf %86, %87 : vector<16x16xf32>
    %cst_48 = arith.constant -1.000000e+30 : f32
    %89 = vector.broadcast %cst_48 : f32 to vector<16x16xf32>
    %90 = arith.select %24, %88, %89 : vector<16x16xi1>, vector<16x16xf32>
    %cst_49 = arith.constant dense<0xFF800000> : vector<16xf32>
    %91 = vector.multi_reduction <maximumf>, %90, %cst_49 [1] : vector<16x16xf32> to vector<16xf32>
    %92 = vector.shape_cast %91 : vector<16xf32> to vector<16x1xf32>
    %93 = vector.broadcast %92 : vector<16x1xf32> to vector<16x16xf32>
    %94 = arith.subf %90, %93 : vector<16x16xf32>
    %95 = math.exp %94 : vector<16x16xf32>
    %cst_50 = arith.constant dense<0.000000e+00> : vector<16xf32>
    %96 = vector.multi_reduction <add>, %95, %cst_50 [1] : vector<16x16xf32> to vector<16xf32>
    %97 = vector.shape_cast %96 : vector<16xf32> to vector<16x1xf32>
    %98 = tpu.reciprocal %97 : vector<16x1xf32> -> vector<16x1xf32>
    %99 = vector.broadcast %98 : vector<16x1xf32> to vector<16x16xf32>
    %100 = arith.mulf %95, %99 : vector<16x16xf32>
    %cst_51 = arith.constant dense<0.000000e+00> : vector<16x8xf32>
    %101 = tpu.matmul %100, %85, %cst_51 {dimension_numbers = #tpu.dot_dimension_numbers<[1], [0], [0], [1], [0, 0, 1, 1], [], []>} : vector<16x16xf32>, vector<16x8xf32>, vector<16x8xf32> -> vector<16x8xf32>
    %102 = vector.extract_strided_slice %61 {offsets = [0, 0], sizes = [8, 32], strides = [1, 1]} : vector<32x32xf32> to vector<8x32xf32>
    %cst_52 = arith.constant dense<0.000000e+00> : vector<16x32xf32>
    %103 = tpu.matmul %101, %102, %cst_52 {dimension_numbers = #tpu.dot_dimension_numbers<[1], [0], [0], [1], [0, 0, 1, 1], [], []>} : vector<16x8xf32>, vector<8x32xf32>, vector<16x32xf32> -> vector<16x32xf32>
    %104 = vector.extract_strided_slice %82 {offsets = [0, 8], sizes = [16, 8], strides = [1, 1]} : vector<16x96xf32> to vector<16x8xf32>
    %105 = vector.extract_strided_slice %82 {offsets = [0, 40], sizes = [16, 8], strides = [1, 1]} : vector<16x96xf32> to vector<16x8xf32>
    %106 = vector.extract_strided_slice %82 {offsets = [0, 72], sizes = [16, 8], strides = [1, 1]} : vector<16x96xf32> to vector<16x8xf32>
    %cst_53 = arith.constant dense<0.000000e+00> : vector<16x16xf32>
    %107 = tpu.matmul %104, %105, %cst_53 {dimension_numbers = #tpu.dot_dimension_numbers<[1], [1], [0], [0], [0, 0, 1, 0], [], []>} : vector<16x8xf32>, vector<16x8xf32>, vector<16x16xf32> -> vector<16x16xf32>
    %cst_54 = arith.constant 0.353553385 : f32
    %108 = vector.broadcast %cst_54 : f32 to vector<16x16xf32>
    %109 = arith.mulf %107, %108 : vector<16x16xf32>
    %cst_55 = arith.constant -1.000000e+30 : f32
    %110 = vector.broadcast %cst_55 : f32 to vector<16x16xf32>
    %111 = arith.select %24, %109, %110 : vector<16x16xi1>, vector<16x16xf32>
    %cst_56 = arith.constant dense<0xFF800000> : vector<16xf32>
    %112 = vector.multi_reduction <maximumf>, %111, %cst_56 [1] : vector<16x16xf32> to vector<16xf32>
    %113 = vector.shape_cast %112 : vector<16xf32> to vector<16x1xf32>
    %114 = vector.broadcast %113 : vector<16x1xf32> to vector<16x16xf32>
    %115 = arith.subf %111, %114 : vector<16x16xf32>
    %116 = math.exp %115 : vector<16x16xf32>
    %cst_57 = arith.constant dense<0.000000e+00> : vector<16xf32>
    %117 = vector.multi_reduction <add>, %116, %cst_57 [1] : vector<16x16xf32> to vector<16xf32>
    %118 = vector.shape_cast %117 : vector<16xf32> to vector<16x1xf32>
    %119 = tpu.reciprocal %118 : vector<16x1xf32> -> vector<16x1xf32>
    %120 = vector.broadcast %119 : vector<16x1xf32> to vector<16x16xf32>
    %121 = arith.mulf %116, %120 : vector<16x16xf32>
    %cst_58 = arith.constant dense<0.000000e+00> : vector<16x8xf32>
    %122 = tpu.matmul %121, %106, %cst_58 {dimension_numbers = #tpu.dot_dimension_numbers<[1], [0], [0], [1], [0, 0, 1, 1], [], []>} : vector<16x16xf32>, vector<16x8xf32>, vector<16x8xf32> -> vector<16x8xf32>
    %123 = vector.extract_strided_slice %61 {offsets = [8, 0], sizes = [8, 32], strides = [1, 1]} : vector<32x32xf32> to vector<8x32xf32>
    %cst_59 = arith.constant dense<0.000000e+00> : vector<16x32xf32>
    %124 = tpu.matmul %122, %123, %cst_59 {dimension_numbers = #tpu.dot_dimension_numbers<[1], [0], [0], [1], [0, 0, 1, 1], [], []>} : vector<16x8xf32>, vector<8x32xf32>, vector<16x32xf32> -> vector<16x32xf32>
    %125 = arith.addf %103, %124 : vector<16x32xf32>
    %126 = vector.extract_strided_slice %82 {offsets = [0, 16], sizes = [16, 8], strides = [1, 1]} : vector<16x96xf32> to vector<16x8xf32>
    %127 = vector.extract_strided_slice %82 {offsets = [0, 48], sizes = [16, 8], strides = [1, 1]} : vector<16x96xf32> to vector<16x8xf32>
    %128 = vector.extract_strided_slice %82 {offsets = [0, 80], sizes = [16, 8], strides = [1, 1]} : vector<16x96xf32> to vector<16x8xf32>
    %cst_60 = arith.constant dense<0.000000e+00> : vector<16x16xf32>
    %129 = tpu.matmul %126, %127, %cst_60 {dimension_numbers = #tpu.dot_dimension_numbers<[1], [1], [0], [0], [0, 0, 1, 0], [], []>} : vector<16x8xf32>, vector<16x8xf32>, vector<16x16xf32> -> vector<16x16xf32>
    %cst_61 = arith.constant 0.353553385 : f32
    %130 = vector.broadcast %cst_61 : f32 to vector<16x16xf32>
    %131 = arith.mulf %129, %130 : vector<16x16xf32>
    %cst_62 = arith.constant -1.000000e+30 : f32
    %132 = vector.broadcast %cst_62 : f32 to vector<16x16xf32>
    %133 = arith.select %24, %131, %132 : vector<16x16xi1>, vector<16x16xf32>
    %cst_63 = arith.constant dense<0xFF800000> : vector<16xf32>
    %134 = vector.multi_reduction <maximumf>, %133, %cst_63 [1] : vector<16x16xf32> to vector<16xf32>
    %135 = vector.shape_cast %134 : vector<16xf32> to vector<16x1xf32>
    %136 = vector.broadcast %135 : vector<16x1xf32> to vector<16x16xf32>
    %137 = arith.subf %133, %136 : vector<16x16xf32>
    %138 = math.exp %137 : vector<16x16xf32>
    %cst_64 = arith.constant dense<0.000000e+00> : vector<16xf32>
    %139 = vector.multi_reduction <add>, %138, %cst_64 [1] : vector<16x16xf32> to vector<16xf32>
    %140 = vector.shape_cast %139 : vector<16xf32> to vector<16x1xf32>
    %141 = tpu.reciprocal %140 : vector<16x1xf32> -> vector<16x1xf32>
    %142 = vector.broadcast %141 : vector<16x1xf32> to vector<16x16xf32>
    %143 = arith.mulf %138, %142 : vector<16x16xf32>
    %cst_65 = arith.constant dense<0.000000e+00> : vector<16x8xf32>
    %144 = tpu.matmul %143, %128, %cst_65 {dimension_numbers = #tpu.dot_dimension_numbers<[1], [0], [0], [1], [0, 0, 1, 1], [], []>} : vector<16x16xf32>, vector<16x8xf32>, vector<16x8xf32> -> vector<16x8xf32>
    %145 = vector.extract_strided_slice %61 {offsets = [16, 0], sizes = [8, 32], strides = [1, 1]} : vector<32x32xf32> to vector<8x32xf32>
    %cst_66 = arith.constant dense<0.000000e+00> : vector<16x32xf32>
    %146 = tpu.matmul %144, %145, %cst_66 {dimension_numbers = #tpu.dot_dimension_numbers<[1], [0], [0], [1], [0, 0, 1, 1], [], []>} : vector<16x8xf32>, vector<8x32xf32>, vector<16x32xf32> -> vector<16x32xf32>
    %147 = arith.addf %125, %146 : vector<16x32xf32>
    %148 = vector.extract_strided_slice %82 {offsets = [0, 24], sizes = [16, 8], strides = [1, 1]} : vector<16x96xf32> to vector<16x8xf32>
    %149 = vector.extract_strided_slice %82 {offsets = [0, 56], sizes = [16, 8], strides = [1, 1]} : vector<16x96xf32> to vector<16x8xf32>
    %150 = vector.extract_strided_slice %82 {offsets = [0, 88], sizes = [16, 8], strides = [1, 1]} : vector<16x96xf32> to vector<16x8xf32>
    %cst_67 = arith.constant dense<0.000000e+00> : vector<16x16xf32>
    %151 = tpu.matmul %148, %149, %cst_67 {dimension_numbers = #tpu.dot_dimension_numbers<[1], [1], [0], [0], [0, 0, 1, 0], [], []>} : vector<16x8xf32>, vector<16x8xf32>, vector<16x16xf32> -> vector<16x16xf32>
    %cst_68 = arith.constant 0.353553385 : f32
    %152 = vector.broadcast %cst_68 : f32 to vector<16x16xf32>
    %153 = arith.mulf %151, %152 : vector<16x16xf32>
    %cst_69 = arith.constant -1.000000e+30 : f32
    %154 = vector.broadcast %cst_69 : f32 to vector<16x16xf32>
    %155 = arith.select %24, %153, %154 : vector<16x16xi1>, vector<16x16xf32>
    %cst_70 = arith.constant dense<0xFF800000> : vector<16xf32>
    %156 = vector.multi_reduction <maximumf>, %155, %cst_70 [1] : vector<16x16xf32> to vector<16xf32>
    %157 = vector.shape_cast %156 : vector<16xf32> to vector<16x1xf32>
    %158 = vector.broadcast %157 : vector<16x1xf32> to vector<16x16xf32>
    %159 = arith.subf %155, %158 : vector<16x16xf32>
    %160 = math.exp %159 : vector<16x16xf32>
    %cst_71 = arith.constant dense<0.000000e+00> : vector<16xf32>
    %161 = vector.multi_reduction <add>, %160, %cst_71 [1] : vector<16x16xf32> to vector<16xf32>
    %162 = vector.shape_cast %161 : vector<16xf32> to vector<16x1xf32>
    %163 = tpu.reciprocal %162 : vector<16x1xf32> -> vector<16x1xf32>
    %164 = vector.broadcast %163 : vector<16x1xf32> to vector<16x16xf32>
    %165 = arith.mulf %160, %164 : vector<16x16xf32>
    %cst_72 = arith.constant dense<0.000000e+00> : vector<16x8xf32>
    %166 = tpu.matmul %165, %150, %cst_72 {dimension_numbers = #tpu.dot_dimension_numbers<[1], [0], [0], [1], [0, 0, 1, 1], [], []>} : vector<16x16xf32>, vector<16x8xf32>, vector<16x8xf32> -> vector<16x8xf32>
    %167 = vector.extract_strided_slice %61 {offsets = [24, 0], sizes = [8, 32], strides = [1, 1]} : vector<32x32xf32> to vector<8x32xf32>
    %cst_73 = arith.constant dense<0.000000e+00> : vector<16x32xf32>
    %168 = tpu.matmul %166, %167, %cst_73 {dimension_numbers = #tpu.dot_dimension_numbers<[1], [0], [0], [1], [0, 0, 1, 1], [], []>} : vector<16x8xf32>, vector<8x32xf32>, vector<16x32xf32> -> vector<16x32xf32>
    %169 = arith.addf %147, %168 : vector<16x32xf32>
    %170 = vector.broadcast %68 : vector<1x32xf32> to vector<16x32xf32>
    %171 = arith.addf %169, %170 : vector<16x32xf32>
    %172 = arith.addf %59, %171 : vector<16x32xf32>
    %cst_74 = arith.constant dense<0.000000e+00> : vector<16x32xf32>
    %173 = tpu.matmul %172, %62, %cst_74 {dimension_numbers = #tpu.dot_dimension_numbers<[1], [0], [0], [1], [0, 0, 1, 1], [], []>} : vector<16x32xf32>, vector<32x32xf32>, vector<16x32xf32> -> vector<16x32xf32>
    %174 = vector.broadcast %69 : vector<1x32xf32> to vector<16x32xf32>
    %175 = arith.addf %173, %174 : vector<16x32xf32>
    %cst_75 = arith.constant dense<0.000000e+00> : vector<16x96xf32>
    %176 = tpu.matmul %175, %63, %cst_75 {dimension_numbers = #tpu.dot_dimension_numbers<[1], [0], [0], [1], [0, 0, 1, 1], [], []>} : vector<16x32xf32>, vector<32x96xf32>, vector<16x96xf32> -> vector<16x96xf32>
    %177 = vector.broadcast %70 : vector<1x96xf32> to vector<16x96xf32>
    %178 = arith.addf %176, %177 : vector<16x96xf32>
    %179 = vector.extract_strided_slice %178 {offsets = [0, 0], sizes = [16, 8], strides = [1, 1]} : vector<16x96xf32> to vector<16x8xf32>
    %180 = vector.extract_strided_slice %178 {offsets = [0, 32], sizes = [16, 8], strides = [1, 1]} : vector<16x96xf32> to vector<16x8xf32>
    %181 = vector.extract_strided_slice %178 {offsets = [0, 64], sizes = [16, 8], strides = [1, 1]} : vector<16x96xf32> to vector<16x8xf32>
    %cst_76 = arith.constant dense<0.000000e+00> : vector<16x16xf32>
    %182 = tpu.matmul %179, %180, %cst_76 {dimension_numbers = #tpu.dot_dimension_numbers<[1], [1], [0], [0], [0, 0, 1, 0], [], []>} : vector<16x8xf32>, vector<16x8xf32>, vector<16x16xf32> -> vector<16x16xf32>
    %cst_77 = arith.constant 0.353553385 : f32
    %183 = vector.broadcast %cst_77 : f32 to vector<16x16xf32>
    %184 = arith.mulf %182, %183 : vector<16x16xf32>
    %cst_78 = arith.constant -1.000000e+30 : f32
    %185 = vector.broadcast %cst_78 : f32 to vector<16x16xf32>
    %186 = arith.select %24, %184, %185 : vector<16x16xi1>, vector<16x16xf32>
    %cst_79 = arith.constant dense<0xFF800000> : vector<16xf32>
    %187 = vector.multi_reduction <maximumf>, %186, %cst_79 [1] : vector<16x16xf32> to vector<16xf32>
    %188 = vector.shape_cast %187 : vector<16xf32> to vector<16x1xf32>
    %189 = vector.broadcast %188 : vector<16x1xf32> to vector<16x16xf32>
    %190 = arith.subf %186, %189 : vector<16x16xf32>
    %191 = math.exp %190 : vector<16x16xf32>
    %cst_80 = arith.constant dense<0.000000e+00> : vector<16xf32>
    %192 = vector.multi_reduction <add>, %191, %cst_80 [1] : vector<16x16xf32> to vector<16xf32>
    %193 = vector.shape_cast %192 : vector<16xf32> to vector<16x1xf32>
    %194 = tpu.reciprocal %193 : vector<16x1xf32> -> vector<16x1xf32>
    %195 = vector.broadcast %194 : vector<16x1xf32> to vector<16x16xf32>
    %196 = arith.mulf %191, %195 : vector<16x16xf32>
    %cst_81 = arith.constant dense<0.000000e+00> : vector<16x8xf32>
    %197 = tpu.matmul %196, %181, %cst_81 {dimension_numbers = #tpu.dot_dimension_numbers<[1], [0], [0], [1], [0, 0, 1, 1], [], []>} : vector<16x16xf32>, vector<16x8xf32>, vector<16x8xf32> -> vector<16x8xf32>
    %198 = vector.extract_strided_slice %64 {offsets = [0, 0], sizes = [8, 32], strides = [1, 1]} : vector<32x32xf32> to vector<8x32xf32>
    %cst_82 = arith.constant dense<0.000000e+00> : vector<16x32xf32>
    %199 = tpu.matmul %197, %198, %cst_82 {dimension_numbers = #tpu.dot_dimension_numbers<[1], [0], [0], [1], [0, 0, 1, 1], [], []>} : vector<16x8xf32>, vector<8x32xf32>, vector<16x32xf32> -> vector<16x32xf32>
    %200 = vector.extract_strided_slice %178 {offsets = [0, 8], sizes = [16, 8], strides = [1, 1]} : vector<16x96xf32> to vector<16x8xf32>
    %201 = vector.extract_strided_slice %178 {offsets = [0, 40], sizes = [16, 8], strides = [1, 1]} : vector<16x96xf32> to vector<16x8xf32>
    %202 = vector.extract_strided_slice %178 {offsets = [0, 72], sizes = [16, 8], strides = [1, 1]} : vector<16x96xf32> to vector<16x8xf32>
    %cst_83 = arith.constant dense<0.000000e+00> : vector<16x16xf32>
    %203 = tpu.matmul %200, %201, %cst_83 {dimension_numbers = #tpu.dot_dimension_numbers<[1], [1], [0], [0], [0, 0, 1, 0], [], []>} : vector<16x8xf32>, vector<16x8xf32>, vector<16x16xf32> -> vector<16x16xf32>
    %cst_84 = arith.constant 0.353553385 : f32
    %204 = vector.broadcast %cst_84 : f32 to vector<16x16xf32>
    %205 = arith.mulf %203, %204 : vector<16x16xf32>
    %cst_85 = arith.constant -1.000000e+30 : f32
    %206 = vector.broadcast %cst_85 : f32 to vector<16x16xf32>
    %207 = arith.select %24, %205, %206 : vector<16x16xi1>, vector<16x16xf32>
    %cst_86 = arith.constant dense<0xFF800000> : vector<16xf32>
    %208 = vector.multi_reduction <maximumf>, %207, %cst_86 [1] : vector<16x16xf32> to vector<16xf32>
    %209 = vector.shape_cast %208 : vector<16xf32> to vector<16x1xf32>
    %210 = vector.broadcast %209 : vector<16x1xf32> to vector<16x16xf32>
    %211 = arith.subf %207, %210 : vector<16x16xf32>
    %212 = math.exp %211 : vector<16x16xf32>
    %cst_87 = arith.constant dense<0.000000e+00> : vector<16xf32>
    %213 = vector.multi_reduction <add>, %212, %cst_87 [1] : vector<16x16xf32> to vector<16xf32>
    %214 = vector.shape_cast %213 : vector<16xf32> to vector<16x1xf32>
    %215 = tpu.reciprocal %214 : vector<16x1xf32> -> vector<16x1xf32>
    %216 = vector.broadcast %215 : vector<16x1xf32> to vector<16x16xf32>
    %217 = arith.mulf %212, %216 : vector<16x16xf32>
    %cst_88 = arith.constant dense<0.000000e+00> : vector<16x8xf32>
    %218 = tpu.matmul %217, %202, %cst_88 {dimension_numbers = #tpu.dot_dimension_numbers<[1], [0], [0], [1], [0, 0, 1, 1], [], []>} : vector<16x16xf32>, vector<16x8xf32>, vector<16x8xf32> -> vector<16x8xf32>
    %219 = vector.extract_strided_slice %64 {offsets = [8, 0], sizes = [8, 32], strides = [1, 1]} : vector<32x32xf32> to vector<8x32xf32>
    %cst_89 = arith.constant dense<0.000000e+00> : vector<16x32xf32>
    %220 = tpu.matmul %218, %219, %cst_89 {dimension_numbers = #tpu.dot_dimension_numbers<[1], [0], [0], [1], [0, 0, 1, 1], [], []>} : vector<16x8xf32>, vector<8x32xf32>, vector<16x32xf32> -> vector<16x32xf32>
    %221 = arith.addf %199, %220 : vector<16x32xf32>
    %222 = vector.extract_strided_slice %178 {offsets = [0, 16], sizes = [16, 8], strides = [1, 1]} : vector<16x96xf32> to vector<16x8xf32>
    %223 = vector.extract_strided_slice %178 {offsets = [0, 48], sizes = [16, 8], strides = [1, 1]} : vector<16x96xf32> to vector<16x8xf32>
    %224 = vector.extract_strided_slice %178 {offsets = [0, 80], sizes = [16, 8], strides = [1, 1]} : vector<16x96xf32> to vector<16x8xf32>
    %cst_90 = arith.constant dense<0.000000e+00> : vector<16x16xf32>
    %225 = tpu.matmul %222, %223, %cst_90 {dimension_numbers = #tpu.dot_dimension_numbers<[1], [1], [0], [0], [0, 0, 1, 0], [], []>} : vector<16x8xf32>, vector<16x8xf32>, vector<16x16xf32> -> vector<16x16xf32>
    %cst_91 = arith.constant 0.353553385 : f32
    %226 = vector.broadcast %cst_91 : f32 to vector<16x16xf32>
    %227 = arith.mulf %225, %226 : vector<16x16xf32>
    %cst_92 = arith.constant -1.000000e+30 : f32
    %228 = vector.broadcast %cst_92 : f32 to vector<16x16xf32>
    %229 = arith.select %24, %227, %228 : vector<16x16xi1>, vector<16x16xf32>
    %cst_93 = arith.constant dense<0xFF800000> : vector<16xf32>
    %230 = vector.multi_reduction <maximumf>, %229, %cst_93 [1] : vector<16x16xf32> to vector<16xf32>
    %231 = vector.shape_cast %230 : vector<16xf32> to vector<16x1xf32>
    %232 = vector.broadcast %231 : vector<16x1xf32> to vector<16x16xf32>
    %233 = arith.subf %229, %232 : vector<16x16xf32>
    %234 = math.exp %233 : vector<16x16xf32>
    %cst_94 = arith.constant dense<0.000000e+00> : vector<16xf32>
    %235 = vector.multi_reduction <add>, %234, %cst_94 [1] : vector<16x16xf32> to vector<16xf32>
    %236 = vector.shape_cast %235 : vector<16xf32> to vector<16x1xf32>
    %237 = tpu.reciprocal %236 : vector<16x1xf32> -> vector<16x1xf32>
    %238 = vector.broadcast %237 : vector<16x1xf32> to vector<16x16xf32>
    %239 = arith.mulf %234, %238 : vector<16x16xf32>
    %cst_95 = arith.constant dense<0.000000e+00> : vector<16x8xf32>
    %240 = tpu.matmul %239, %224, %cst_95 {dimension_numbers = #tpu.dot_dimension_numbers<[1], [0], [0], [1], [0, 0, 1, 1], [], []>} : vector<16x16xf32>, vector<16x8xf32>, vector<16x8xf32> -> vector<16x8xf32>
    %241 = vector.extract_strided_slice %64 {offsets = [16, 0], sizes = [8, 32], strides = [1, 1]} : vector<32x32xf32> to vector<8x32xf32>
    %cst_96 = arith.constant dense<0.000000e+00> : vector<16x32xf32>
    %242 = tpu.matmul %240, %241, %cst_96 {dimension_numbers = #tpu.dot_dimension_numbers<[1], [0], [0], [1], [0, 0, 1, 1], [], []>} : vector<16x8xf32>, vector<8x32xf32>, vector<16x32xf32> -> vector<16x32xf32>
    %243 = arith.addf %221, %242 : vector<16x32xf32>
    %244 = vector.extract_strided_slice %178 {offsets = [0, 24], sizes = [16, 8], strides = [1, 1]} : vector<16x96xf32> to vector<16x8xf32>
    %245 = vector.extract_strided_slice %178 {offsets = [0, 56], sizes = [16, 8], strides = [1, 1]} : vector<16x96xf32> to vector<16x8xf32>
    %246 = vector.extract_strided_slice %178 {offsets = [0, 88], sizes = [16, 8], strides = [1, 1]} : vector<16x96xf32> to vector<16x8xf32>
    %cst_97 = arith.constant dense<0.000000e+00> : vector<16x16xf32>
    %247 = tpu.matmul %244, %245, %cst_97 {dimension_numbers = #tpu.dot_dimension_numbers<[1], [1], [0], [0], [0, 0, 1, 0], [], []>} : vector<16x8xf32>, vector<16x8xf32>, vector<16x16xf32> -> vector<16x16xf32>
    %cst_98 = arith.constant 0.353553385 : f32
    %248 = vector.broadcast %cst_98 : f32 to vector<16x16xf32>
    %249 = arith.mulf %247, %248 : vector<16x16xf32>
    %cst_99 = arith.constant -1.000000e+30 : f32
    %250 = vector.broadcast %cst_99 : f32 to vector<16x16xf32>
    %251 = arith.select %24, %249, %250 : vector<16x16xi1>, vector<16x16xf32>
    %cst_100 = arith.constant dense<0xFF800000> : vector<16xf32>
    %252 = vector.multi_reduction <maximumf>, %251, %cst_100 [1] : vector<16x16xf32> to vector<16xf32>
    %253 = vector.shape_cast %252 : vector<16xf32> to vector<16x1xf32>
    %254 = vector.broadcast %253 : vector<16x1xf32> to vector<16x16xf32>
    %255 = arith.subf %251, %254 : vector<16x16xf32>
    %256 = math.exp %255 : vector<16x16xf32>
    %cst_101 = arith.constant dense<0.000000e+00> : vector<16xf32>
    %257 = vector.multi_reduction <add>, %256, %cst_101 [1] : vector<16x16xf32> to vector<16xf32>
    %258 = vector.shape_cast %257 : vector<16xf32> to vector<16x1xf32>
    %259 = tpu.reciprocal %258 : vector<16x1xf32> -> vector<16x1xf32>
    %260 = vector.broadcast %259 : vector<16x1xf32> to vector<16x16xf32>
    %261 = arith.mulf %256, %260 : vector<16x16xf32>
    %cst_102 = arith.constant dense<0.000000e+00> : vector<16x8xf32>
    %262 = tpu.matmul %261, %246, %cst_102 {dimension_numbers = #tpu.dot_dimension_numbers<[1], [0], [0], [1], [0, 0, 1, 1], [], []>} : vector<16x16xf32>, vector<16x8xf32>, vector<16x8xf32> -> vector<16x8xf32>
    %263 = vector.extract_strided_slice %64 {offsets = [24, 0], sizes = [8, 32], strides = [1, 1]} : vector<32x32xf32> to vector<8x32xf32>
    %cst_103 = arith.constant dense<0.000000e+00> : vector<16x32xf32>
    %264 = tpu.matmul %262, %263, %cst_103 {dimension_numbers = #tpu.dot_dimension_numbers<[1], [0], [0], [1], [0, 0, 1, 1], [], []>} : vector<16x8xf32>, vector<8x32xf32>, vector<16x32xf32> -> vector<16x32xf32>
    %265 = arith.addf %243, %264 : vector<16x32xf32>
    %266 = vector.broadcast %71 : vector<1x32xf32> to vector<16x32xf32>
    %267 = arith.addf %265, %266 : vector<16x32xf32>
    %268 = arith.addf %172, %267 : vector<16x32xf32>
    %cst_104 = arith.constant dense<0.000000e+00> : vector<16xf32>
    %269 = vector.multi_reduction <add>, %268, %cst_104 [1] : vector<16x32xf32> to vector<16xf32>
    %270 = vector.shape_cast %269 : vector<16xf32> to vector<16x1xf32>
    %cst_105 = arith.constant 3.200000e+01 : f32
    %271 = vector.broadcast %cst_105 : f32 to vector<16x1xf32>
    %272 = arith.divf %270, %271 : vector<16x1xf32>
    %273 = vector.broadcast %272 : vector<16x1xf32> to vector<16x32xf32>
    %274 = arith.subf %268, %273 : vector<16x32xf32>
    %275 = arith.mulf %274, %274 : vector<16x32xf32>
    %cst_106 = arith.constant dense<0.000000e+00> : vector<16xf32>
    %276 = vector.multi_reduction <add>, %275, %cst_106 [1] : vector<16x32xf32> to vector<16xf32>
    %277 = vector.shape_cast %276 : vector<16xf32> to vector<16x1xf32>
    %cst_107 = arith.constant 3.200000e+01 : f32
    %278 = vector.broadcast %cst_107 : f32 to vector<16x1xf32>
    %279 = arith.divf %277, %278 : vector<16x1xf32>
    %cst_108 = arith.constant 9.99999974E-6 : f32
    %280 = vector.broadcast %cst_108 : f32 to vector<16x1xf32>
    %281 = arith.addf %279, %280 : vector<16x1xf32>
    %282 = math.rsqrt %281 : vector<16x1xf32>
    %283 = vector.broadcast %282 : vector<16x1xf32> to vector<16x32xf32>
    %284 = arith.mulf %274, %283 : vector<16x32xf32>
    %285 = vector.broadcast %72 : vector<1x32xf32> to vector<16x32xf32>
    %286 = arith.mulf %284, %285 : vector<16x32xf32>
    %287 = vector.broadcast %73 : vector<1x32xf32> to vector<16x32xf32>
    %288 = arith.addf %286, %287 : vector<16x32xf32>
    %289 = arith.addf %59, %288 : vector<16x32xf32>
    %cst_109 = arith.constant dense<0.000000e+00> : vector<16xf32>
    %290 = vector.multi_reduction <add>, %289, %cst_109 [1] : vector<16x32xf32> to vector<16xf32>
    %291 = vector.shape_cast %290 : vector<16xf32> to vector<16x1xf32>
    %cst_110 = arith.constant 3.200000e+01 : f32
    %292 = vector.broadcast %cst_110 : f32 to vector<16x1xf32>
    %293 = arith.divf %291, %292 : vector<16x1xf32>
    %294 = vector.broadcast %293 : vector<16x1xf32> to vector<16x32xf32>
    %295 = arith.subf %289, %294 : vector<16x32xf32>
    %296 = arith.mulf %295, %295 : vector<16x32xf32>
    %cst_111 = arith.constant dense<0.000000e+00> : vector<16xf32>
    %297 = vector.multi_reduction <add>, %296, %cst_111 [1] : vector<16x32xf32> to vector<16xf32>
    %298 = vector.shape_cast %297 : vector<16xf32> to vector<16x1xf32>
    %cst_112 = arith.constant 3.200000e+01 : f32
    %299 = vector.broadcast %cst_112 : f32 to vector<16x1xf32>
    %300 = arith.divf %298, %299 : vector<16x1xf32>
    %cst_113 = arith.constant 9.99999974E-6 : f32
    %301 = vector.broadcast %cst_113 : f32 to vector<16x1xf32>
    %302 = arith.addf %300, %301 : vector<16x1xf32>
    %303 = math.rsqrt %302 : vector<16x1xf32>
    %304 = vector.broadcast %303 : vector<16x1xf32> to vector<16x32xf32>
    %305 = arith.mulf %295, %304 : vector<16x32xf32>
    %306 = vector.broadcast %74 : vector<1x32xf32> to vector<16x32xf32>
    %307 = arith.mulf %305, %306 : vector<16x32xf32>
    %308 = vector.broadcast %75 : vector<1x32xf32> to vector<16x32xf32>
    %309 = arith.addf %307, %308 : vector<16x32xf32>
    %cst_114 = arith.constant dense<0.000000e+00> : vector<16x128xf32>
    %310 = tpu.matmul %309, %65, %cst_114 {dimension_numbers = #tpu.dot_dimension_numbers<[1], [0], [0], [1], [0, 0, 1, 1], [], []>} : vector<16x32xf32>, vector<32x128xf32>, vector<16x128xf32> -> vector<16x128xf32>
    %311 = vector.broadcast %76 : vector<1x128xf32> to vector<16x128xf32>
    %312 = arith.addf %310, %311 : vector<16x128xf32>
    %cst_115 = arith.constant 5.000000e-01 : f32
    %313 = vector.broadcast %cst_115 : f32 to vector<16x128xf32>
    %314 = arith.mulf %313, %312 : vector<16x128xf32>
    %cst_116 = arith.constant 0.707106769 : f32
    %315 = vector.broadcast %cst_116 : f32 to vector<16x128xf32>
    %316 = arith.mulf %312, %315 : vector<16x128xf32>
    %cst_117 = arith.constant 0.000000e+00 : f32
    %317 = vector.broadcast %cst_117 : f32 to vector<16x128xf32>
    %318 = arith.cmpf oge, %316, %317 : vector<16x128xf32>
    %cst_118 = arith.constant 1.000000e+00 : f32
    %cst_119 = arith.constant -1.000000e+00 : f32
    %319 = vector.broadcast %cst_118 : f32 to vector<16x128xf32>
    %320 = vector.broadcast %cst_119 : f32 to vector<16x128xf32>
    %321 = arith.select %318, %319, %320 : vector<16x128xi1>, vector<16x128xf32>
    %322 = math.absf %316 : vector<16x128xf32>
    %cst_120 = arith.constant 0.327591091 : f32
    %323 = vector.broadcast %cst_120 : f32 to vector<16x128xf32>
    %324 = arith.mulf %323, %322 : vector<16x128xf32>
    %cst_121 = arith.constant 1.000000e+00 : f32
    %325 = vector.broadcast %cst_121 : f32 to vector<16x128xf32>
    %326 = arith.addf %325, %324 : vector<16x128xf32>
    %327 = tpu.reciprocal %326 : vector<16x128xf32> -> vector<16x128xf32>
    %cst_122 = arith.constant 1.06140542 : f32
    %328 = vector.broadcast %cst_122 : f32 to vector<16x128xf32>
    %329 = arith.mulf %328, %327 : vector<16x128xf32>
    %cst_123 = arith.constant -1.45315206 : f32
    %330 = vector.broadcast %cst_123 : f32 to vector<16x128xf32>
    %331 = arith.addf %329, %330 : vector<16x128xf32>
    %332 = arith.mulf %331, %327 : vector<16x128xf32>
    %cst_124 = arith.constant 1.42141378 : f32
    %333 = vector.broadcast %cst_124 : f32 to vector<16x128xf32>
    %334 = arith.addf %332, %333 : vector<16x128xf32>
    %335 = arith.mulf %334, %327 : vector<16x128xf32>
    %cst_125 = arith.constant -0.284496725 : f32
    %336 = vector.broadcast %cst_125 : f32 to vector<16x128xf32>
    %337 = arith.addf %335, %336 : vector<16x128xf32>
    %338 = arith.mulf %337, %327 : vector<16x128xf32>
    %cst_126 = arith.constant 0.254829586 : f32
    %339 = vector.broadcast %cst_126 : f32 to vector<16x128xf32>
    %340 = arith.addf %338, %339 : vector<16x128xf32>
    %341 = arith.mulf %340, %327 : vector<16x128xf32>
    %cst_127 = arith.constant 0.000000e+00 : f32
    %342 = vector.broadcast %cst_127 : f32 to vector<16x128xf32>
    %343 = arith.subf %342, %322 : vector<16x128xf32>
    %344 = arith.mulf %343, %322 : vector<16x128xf32>
    %345 = math.exp %344 : vector<16x128xf32>
    %346 = arith.mulf %341, %345 : vector<16x128xf32>
    %cst_128 = arith.constant 1.000000e+00 : f32
    %347 = vector.broadcast %cst_128 : f32 to vector<16x128xf32>
    %348 = arith.subf %347, %346 : vector<16x128xf32>
    %349 = arith.mulf %321, %348 : vector<16x128xf32>
    %cst_129 = arith.constant 1.000000e+00 : f32
    %350 = vector.broadcast %cst_129 : f32 to vector<16x128xf32>
    %351 = arith.addf %350, %349 : vector<16x128xf32>
    %352 = arith.mulf %314, %351 : vector<16x128xf32>
    %cst_130 = arith.constant dense<0.000000e+00> : vector<16x32xf32>
    %353 = tpu.matmul %352, %66, %cst_130 {dimension_numbers = #tpu.dot_dimension_numbers<[1], [0], [0], [1], [0, 0, 1, 1], [], []>} : vector<16x128xf32>, vector<128x32xf32>, vector<16x32xf32> -> vector<16x32xf32>
    %354 = arith.addf %309, %353 : vector<16x32xf32>
    %355 = vector.broadcast %77 : vector<1x32xf32> to vector<16x32xf32>
    %356 = arith.addf %354, %355 : vector<16x32xf32>
    %cst_131 = arith.constant dense<0.000000e+00> : vector<16xf32>
    %357 = vector.multi_reduction <add>, %356, %cst_131 [1] : vector<16x32xf32> to vector<16xf32>
    %358 = vector.shape_cast %357 : vector<16xf32> to vector<16x1xf32>
    %cst_132 = arith.constant 3.200000e+01 : f32
    %359 = vector.broadcast %cst_132 : f32 to vector<16x1xf32>
    %360 = arith.divf %358, %359 : vector<16x1xf32>
    %361 = vector.broadcast %360 : vector<16x1xf32> to vector<16x32xf32>
    %362 = arith.subf %356, %361 : vector<16x32xf32>
    %363 = arith.mulf %362, %362 : vector<16x32xf32>
    %cst_133 = arith.constant dense<0.000000e+00> : vector<16xf32>
    %364 = vector.multi_reduction <add>, %363, %cst_133 [1] : vector<16x32xf32> to vector<16xf32>
    %365 = vector.shape_cast %364 : vector<16xf32> to vector<16x1xf32>
    %cst_134 = arith.constant 3.200000e+01 : f32
    %366 = vector.broadcast %cst_134 : f32 to vector<16x1xf32>
    %367 = arith.divf %365, %366 : vector<16x1xf32>
    %cst_135 = arith.constant 9.99999974E-6 : f32
    %368 = vector.broadcast %cst_135 : f32 to vector<16x1xf32>
    %369 = arith.addf %367, %368 : vector<16x1xf32>
    %370 = math.rsqrt %369 : vector<16x1xf32>
    %371 = vector.broadcast %370 : vector<16x1xf32> to vector<16x32xf32>
    %372 = arith.mulf %362, %371 : vector<16x32xf32>
    %373 = vector.broadcast %78 : vector<1x32xf32> to vector<16x32xf32>
    %374 = arith.mulf %372, %373 : vector<16x32xf32>
    %375 = vector.broadcast %79 : vector<1x32xf32> to vector<16x32xf32>
    %376 = arith.addf %374, %375 : vector<16x32xf32>
    %c320 = arith.constant 320 : index
    %c0_136 = arith.constant 0 : index
    %377 = vector.load %arg4[%c320, %c0_136] : memref<640x128xf32, #tpu.memory_space<vmem>>, vector<32x96xf32>
    %c352 = arith.constant 352 : index
    %c0_137 = arith.constant 0 : index
    %378 = vector.load %arg4[%c352, %c0_137] : memref<640x128xf32, #tpu.memory_space<vmem>>, vector<32x32xf32>
    %c384 = arith.constant 384 : index
    %c0_138 = arith.constant 0 : index
    %379 = vector.load %arg4[%c384, %c0_138] : memref<640x128xf32, #tpu.memory_space<vmem>>, vector<32x32xf32>
    %c416 = arith.constant 416 : index
    %c0_139 = arith.constant 0 : index
    %380 = vector.load %arg4[%c416, %c0_139] : memref<640x128xf32, #tpu.memory_space<vmem>>, vector<32x96xf32>
    %c448 = arith.constant 448 : index
    %c0_140 = arith.constant 0 : index
    %381 = vector.load %arg4[%c448, %c0_140] : memref<640x128xf32, #tpu.memory_space<vmem>>, vector<32x32xf32>
    %c480 = arith.constant 480 : index
    %c0_141 = arith.constant 0 : index
    %382 = vector.load %arg4[%c480, %c0_141] : memref<640x128xf32, #tpu.memory_space<vmem>>, vector<32x128xf32>
    %c512 = arith.constant 512 : index
    %c0_142 = arith.constant 0 : index
    %383 = vector.load %arg4[%c512, %c0_142] : memref<640x128xf32, #tpu.memory_space<vmem>>, vector<128x32xf32>
    %c16 = arith.constant 16 : index
    %c0_143 = arith.constant 0 : index
    %384 = vector.load %arg5[%c16, %c0_143] : memref<32x128xf32, #tpu.memory_space<vmem>>, vector<1x96xf32>
    %c17 = arith.constant 17 : index
    %c0_144 = arith.constant 0 : index
    %385 = vector.load %arg5[%c17, %c0_144] : memref<32x128xf32, #tpu.memory_space<vmem>>, vector<1x32xf32>
    %c18 = arith.constant 18 : index
    %c0_145 = arith.constant 0 : index
    %386 = vector.load %arg5[%c18, %c0_145] : memref<32x128xf32, #tpu.memory_space<vmem>>, vector<1x32xf32>
    %c19 = arith.constant 19 : index
    %c0_146 = arith.constant 0 : index
    %387 = vector.load %arg5[%c19, %c0_146] : memref<32x128xf32, #tpu.memory_space<vmem>>, vector<1x96xf32>
    %c20 = arith.constant 20 : index
    %c0_147 = arith.constant 0 : index
    %388 = vector.load %arg5[%c20, %c0_147] : memref<32x128xf32, #tpu.memory_space<vmem>>, vector<1x32xf32>
    %c21 = arith.constant 21 : index
    %c0_148 = arith.constant 0 : index
    %389 = vector.load %arg5[%c21, %c0_148] : memref<32x128xf32, #tpu.memory_space<vmem>>, vector<1x32xf32>
    %c22 = arith.constant 22 : index
    %c0_149 = arith.constant 0 : index
    %390 = vector.load %arg5[%c22, %c0_149] : memref<32x128xf32, #tpu.memory_space<vmem>>, vector<1x32xf32>
    %c23 = arith.constant 23 : index
    %c0_150 = arith.constant 0 : index
    %391 = vector.load %arg5[%c23, %c0_150] : memref<32x128xf32, #tpu.memory_space<vmem>>, vector<1x32xf32>
    %c24 = arith.constant 24 : index
    %c0_151 = arith.constant 0 : index
    %392 = vector.load %arg5[%c24, %c0_151] : memref<32x128xf32, #tpu.memory_space<vmem>>, vector<1x32xf32>
    %c25 = arith.constant 25 : index
    %c0_152 = arith.constant 0 : index
    %393 = vector.load %arg5[%c25, %c0_152] : memref<32x128xf32, #tpu.memory_space<vmem>>, vector<1x128xf32>
    %c26 = arith.constant 26 : index
    %c0_153 = arith.constant 0 : index
    %394 = vector.load %arg5[%c26, %c0_153] : memref<32x128xf32, #tpu.memory_space<vmem>>, vector<1x32xf32>
    %c27 = arith.constant 27 : index
    %c0_154 = arith.constant 0 : index
    %395 = vector.load %arg5[%c27, %c0_154] : memref<32x128xf32, #tpu.memory_space<vmem>>, vector<1x32xf32>
    %c28 = arith.constant 28 : index
    %c0_155 = arith.constant 0 : index
    %396 = vector.load %arg5[%c28, %c0_155] : memref<32x128xf32, #tpu.memory_space<vmem>>, vector<1x32xf32>
    %cst_156 = arith.constant dense<0.000000e+00> : vector<16x96xf32>
    %397 = tpu.matmul %376, %377, %cst_156 {dimension_numbers = #tpu.dot_dimension_numbers<[1], [0], [0], [1], [0, 0, 1, 1], [], []>} : vector<16x32xf32>, vector<32x96xf32>, vector<16x96xf32> -> vector<16x96xf32>
    %398 = vector.broadcast %384 : vector<1x96xf32> to vector<16x96xf32>
    %399 = arith.addf %397, %398 : vector<16x96xf32>
    %400 = vector.extract_strided_slice %399 {offsets = [0, 0], sizes = [16, 8], strides = [1, 1]} : vector<16x96xf32> to vector<16x8xf32>
    %401 = vector.extract_strided_slice %399 {offsets = [0, 32], sizes = [16, 8], strides = [1, 1]} : vector<16x96xf32> to vector<16x8xf32>
    %402 = vector.extract_strided_slice %399 {offsets = [0, 64], sizes = [16, 8], strides = [1, 1]} : vector<16x96xf32> to vector<16x8xf32>
    %cst_157 = arith.constant dense<0.000000e+00> : vector<16x16xf32>
    %403 = tpu.matmul %400, %401, %cst_157 {dimension_numbers = #tpu.dot_dimension_numbers<[1], [1], [0], [0], [0, 0, 1, 0], [], []>} : vector<16x8xf32>, vector<16x8xf32>, vector<16x16xf32> -> vector<16x16xf32>
    %cst_158 = arith.constant 0.353553385 : f32
    %404 = vector.broadcast %cst_158 : f32 to vector<16x16xf32>
    %405 = arith.mulf %403, %404 : vector<16x16xf32>
    %cst_159 = arith.constant -1.000000e+30 : f32
    %406 = vector.broadcast %cst_159 : f32 to vector<16x16xf32>
    %407 = arith.select %24, %405, %406 : vector<16x16xi1>, vector<16x16xf32>
    %cst_160 = arith.constant dense<0xFF800000> : vector<16xf32>
    %408 = vector.multi_reduction <maximumf>, %407, %cst_160 [1] : vector<16x16xf32> to vector<16xf32>
    %409 = vector.shape_cast %408 : vector<16xf32> to vector<16x1xf32>
    %410 = vector.broadcast %409 : vector<16x1xf32> to vector<16x16xf32>
    %411 = arith.subf %407, %410 : vector<16x16xf32>
    %412 = math.exp %411 : vector<16x16xf32>
    %cst_161 = arith.constant dense<0.000000e+00> : vector<16xf32>
    %413 = vector.multi_reduction <add>, %412, %cst_161 [1] : vector<16x16xf32> to vector<16xf32>
    %414 = vector.shape_cast %413 : vector<16xf32> to vector<16x1xf32>
    %415 = tpu.reciprocal %414 : vector<16x1xf32> -> vector<16x1xf32>
    %416 = vector.broadcast %415 : vector<16x1xf32> to vector<16x16xf32>
    %417 = arith.mulf %412, %416 : vector<16x16xf32>
    %cst_162 = arith.constant dense<0.000000e+00> : vector<16x8xf32>
    %418 = tpu.matmul %417, %402, %cst_162 {dimension_numbers = #tpu.dot_dimension_numbers<[1], [0], [0], [1], [0, 0, 1, 1], [], []>} : vector<16x16xf32>, vector<16x8xf32>, vector<16x8xf32> -> vector<16x8xf32>
    %419 = vector.extract_strided_slice %378 {offsets = [0, 0], sizes = [8, 32], strides = [1, 1]} : vector<32x32xf32> to vector<8x32xf32>
    %cst_163 = arith.constant dense<0.000000e+00> : vector<16x32xf32>
    %420 = tpu.matmul %418, %419, %cst_163 {dimension_numbers = #tpu.dot_dimension_numbers<[1], [0], [0], [1], [0, 0, 1, 1], [], []>} : vector<16x8xf32>, vector<8x32xf32>, vector<16x32xf32> -> vector<16x32xf32>
    %421 = vector.extract_strided_slice %399 {offsets = [0, 8], sizes = [16, 8], strides = [1, 1]} : vector<16x96xf32> to vector<16x8xf32>
    %422 = vector.extract_strided_slice %399 {offsets = [0, 40], sizes = [16, 8], strides = [1, 1]} : vector<16x96xf32> to vector<16x8xf32>
    %423 = vector.extract_strided_slice %399 {offsets = [0, 72], sizes = [16, 8], strides = [1, 1]} : vector<16x96xf32> to vector<16x8xf32>
    %cst_164 = arith.constant dense<0.000000e+00> : vector<16x16xf32>
    %424 = tpu.matmul %421, %422, %cst_164 {dimension_numbers = #tpu.dot_dimension_numbers<[1], [1], [0], [0], [0, 0, 1, 0], [], []>} : vector<16x8xf32>, vector<16x8xf32>, vector<16x16xf32> -> vector<16x16xf32>
    %cst_165 = arith.constant 0.353553385 : f32
    %425 = vector.broadcast %cst_165 : f32 to vector<16x16xf32>
    %426 = arith.mulf %424, %425 : vector<16x16xf32>
    %cst_166 = arith.constant -1.000000e+30 : f32
    %427 = vector.broadcast %cst_166 : f32 to vector<16x16xf32>
    %428 = arith.select %24, %426, %427 : vector<16x16xi1>, vector<16x16xf32>
    %cst_167 = arith.constant dense<0xFF800000> : vector<16xf32>
    %429 = vector.multi_reduction <maximumf>, %428, %cst_167 [1] : vector<16x16xf32> to vector<16xf32>
    %430 = vector.shape_cast %429 : vector<16xf32> to vector<16x1xf32>
    %431 = vector.broadcast %430 : vector<16x1xf32> to vector<16x16xf32>
    %432 = arith.subf %428, %431 : vector<16x16xf32>
    %433 = math.exp %432 : vector<16x16xf32>
    %cst_168 = arith.constant dense<0.000000e+00> : vector<16xf32>
    %434 = vector.multi_reduction <add>, %433, %cst_168 [1] : vector<16x16xf32> to vector<16xf32>
    %435 = vector.shape_cast %434 : vector<16xf32> to vector<16x1xf32>
    %436 = tpu.reciprocal %435 : vector<16x1xf32> -> vector<16x1xf32>
    %437 = vector.broadcast %436 : vector<16x1xf32> to vector<16x16xf32>
    %438 = arith.mulf %433, %437 : vector<16x16xf32>
    %cst_169 = arith.constant dense<0.000000e+00> : vector<16x8xf32>
    %439 = tpu.matmul %438, %423, %cst_169 {dimension_numbers = #tpu.dot_dimension_numbers<[1], [0], [0], [1], [0, 0, 1, 1], [], []>} : vector<16x16xf32>, vector<16x8xf32>, vector<16x8xf32> -> vector<16x8xf32>
    %440 = vector.extract_strided_slice %378 {offsets = [8, 0], sizes = [8, 32], strides = [1, 1]} : vector<32x32xf32> to vector<8x32xf32>
    %cst_170 = arith.constant dense<0.000000e+00> : vector<16x32xf32>
    %441 = tpu.matmul %439, %440, %cst_170 {dimension_numbers = #tpu.dot_dimension_numbers<[1], [0], [0], [1], [0, 0, 1, 1], [], []>} : vector<16x8xf32>, vector<8x32xf32>, vector<16x32xf32> -> vector<16x32xf32>
    %442 = arith.addf %420, %441 : vector<16x32xf32>
    %443 = vector.extract_strided_slice %399 {offsets = [0, 16], sizes = [16, 8], strides = [1, 1]} : vector<16x96xf32> to vector<16x8xf32>
    %444 = vector.extract_strided_slice %399 {offsets = [0, 48], sizes = [16, 8], strides = [1, 1]} : vector<16x96xf32> to vector<16x8xf32>
    %445 = vector.extract_strided_slice %399 {offsets = [0, 80], sizes = [16, 8], strides = [1, 1]} : vector<16x96xf32> to vector<16x8xf32>
    %cst_171 = arith.constant dense<0.000000e+00> : vector<16x16xf32>
    %446 = tpu.matmul %443, %444, %cst_171 {dimension_numbers = #tpu.dot_dimension_numbers<[1], [1], [0], [0], [0, 0, 1, 0], [], []>} : vector<16x8xf32>, vector<16x8xf32>, vector<16x16xf32> -> vector<16x16xf32>
    %cst_172 = arith.constant 0.353553385 : f32
    %447 = vector.broadcast %cst_172 : f32 to vector<16x16xf32>
    %448 = arith.mulf %446, %447 : vector<16x16xf32>
    %cst_173 = arith.constant -1.000000e+30 : f32
    %449 = vector.broadcast %cst_173 : f32 to vector<16x16xf32>
    %450 = arith.select %24, %448, %449 : vector<16x16xi1>, vector<16x16xf32>
    %cst_174 = arith.constant dense<0xFF800000> : vector<16xf32>
    %451 = vector.multi_reduction <maximumf>, %450, %cst_174 [1] : vector<16x16xf32> to vector<16xf32>
    %452 = vector.shape_cast %451 : vector<16xf32> to vector<16x1xf32>
    %453 = vector.broadcast %452 : vector<16x1xf32> to vector<16x16xf32>
    %454 = arith.subf %450, %453 : vector<16x16xf32>
    %455 = math.exp %454 : vector<16x16xf32>
    %cst_175 = arith.constant dense<0.000000e+00> : vector<16xf32>
    %456 = vector.multi_reduction <add>, %455, %cst_175 [1] : vector<16x16xf32> to vector<16xf32>
    %457 = vector.shape_cast %456 : vector<16xf32> to vector<16x1xf32>
    %458 = tpu.reciprocal %457 : vector<16x1xf32> -> vector<16x1xf32>
    %459 = vector.broadcast %458 : vector<16x1xf32> to vector<16x16xf32>
    %460 = arith.mulf %455, %459 : vector<16x16xf32>
    %cst_176 = arith.constant dense<0.000000e+00> : vector<16x8xf32>
    %461 = tpu.matmul %460, %445, %cst_176 {dimension_numbers = #tpu.dot_dimension_numbers<[1], [0], [0], [1], [0, 0, 1, 1], [], []>} : vector<16x16xf32>, vector<16x8xf32>, vector<16x8xf32> -> vector<16x8xf32>
    %462 = vector.extract_strided_slice %378 {offsets = [16, 0], sizes = [8, 32], strides = [1, 1]} : vector<32x32xf32> to vector<8x32xf32>
    %cst_177 = arith.constant dense<0.000000e+00> : vector<16x32xf32>
    %463 = tpu.matmul %461, %462, %cst_177 {dimension_numbers = #tpu.dot_dimension_numbers<[1], [0], [0], [1], [0, 0, 1, 1], [], []>} : vector<16x8xf32>, vector<8x32xf32>, vector<16x32xf32> -> vector<16x32xf32>
    %464 = arith.addf %442, %463 : vector<16x32xf32>
    %465 = vector.extract_strided_slice %399 {offsets = [0, 24], sizes = [16, 8], strides = [1, 1]} : vector<16x96xf32> to vector<16x8xf32>
    %466 = vector.extract_strided_slice %399 {offsets = [0, 56], sizes = [16, 8], strides = [1, 1]} : vector<16x96xf32> to vector<16x8xf32>
    %467 = vector.extract_strided_slice %399 {offsets = [0, 88], sizes = [16, 8], strides = [1, 1]} : vector<16x96xf32> to vector<16x8xf32>
    %cst_178 = arith.constant dense<0.000000e+00> : vector<16x16xf32>
    %468 = tpu.matmul %465, %466, %cst_178 {dimension_numbers = #tpu.dot_dimension_numbers<[1], [1], [0], [0], [0, 0, 1, 0], [], []>} : vector<16x8xf32>, vector<16x8xf32>, vector<16x16xf32> -> vector<16x16xf32>
    %cst_179 = arith.constant 0.353553385 : f32
    %469 = vector.broadcast %cst_179 : f32 to vector<16x16xf32>
    %470 = arith.mulf %468, %469 : vector<16x16xf32>
    %cst_180 = arith.constant -1.000000e+30 : f32
    %471 = vector.broadcast %cst_180 : f32 to vector<16x16xf32>
    %472 = arith.select %24, %470, %471 : vector<16x16xi1>, vector<16x16xf32>
    %cst_181 = arith.constant dense<0xFF800000> : vector<16xf32>
    %473 = vector.multi_reduction <maximumf>, %472, %cst_181 [1] : vector<16x16xf32> to vector<16xf32>
    %474 = vector.shape_cast %473 : vector<16xf32> to vector<16x1xf32>
    %475 = vector.broadcast %474 : vector<16x1xf32> to vector<16x16xf32>
    %476 = arith.subf %472, %475 : vector<16x16xf32>
    %477 = math.exp %476 : vector<16x16xf32>
    %cst_182 = arith.constant dense<0.000000e+00> : vector<16xf32>
    %478 = vector.multi_reduction <add>, %477, %cst_182 [1] : vector<16x16xf32> to vector<16xf32>
    %479 = vector.shape_cast %478 : vector<16xf32> to vector<16x1xf32>
    %480 = tpu.reciprocal %479 : vector<16x1xf32> -> vector<16x1xf32>
    %481 = vector.broadcast %480 : vector<16x1xf32> to vector<16x16xf32>
    %482 = arith.mulf %477, %481 : vector<16x16xf32>
    %cst_183 = arith.constant dense<0.000000e+00> : vector<16x8xf32>
    %483 = tpu.matmul %482, %467, %cst_183 {dimension_numbers = #tpu.dot_dimension_numbers<[1], [0], [0], [1], [0, 0, 1, 1], [], []>} : vector<16x16xf32>, vector<16x8xf32>, vector<16x8xf32> -> vector<16x8xf32>
    %484 = vector.extract_strided_slice %378 {offsets = [24, 0], sizes = [8, 32], strides = [1, 1]} : vector<32x32xf32> to vector<8x32xf32>
    %cst_184 = arith.constant dense<0.000000e+00> : vector<16x32xf32>
    %485 = tpu.matmul %483, %484, %cst_184 {dimension_numbers = #tpu.dot_dimension_numbers<[1], [0], [0], [1], [0, 0, 1, 1], [], []>} : vector<16x8xf32>, vector<8x32xf32>, vector<16x32xf32> -> vector<16x32xf32>
    %486 = arith.addf %464, %485 : vector<16x32xf32>
    %487 = vector.broadcast %385 : vector<1x32xf32> to vector<16x32xf32>
    %488 = arith.addf %486, %487 : vector<16x32xf32>
    %489 = arith.addf %376, %488 : vector<16x32xf32>
    %cst_185 = arith.constant dense<0.000000e+00> : vector<16x32xf32>
    %490 = tpu.matmul %489, %379, %cst_185 {dimension_numbers = #tpu.dot_dimension_numbers<[1], [0], [0], [1], [0, 0, 1, 1], [], []>} : vector<16x32xf32>, vector<32x32xf32>, vector<16x32xf32> -> vector<16x32xf32>
    %491 = vector.broadcast %386 : vector<1x32xf32> to vector<16x32xf32>
    %492 = arith.addf %490, %491 : vector<16x32xf32>
    %cst_186 = arith.constant dense<0.000000e+00> : vector<16x96xf32>
    %493 = tpu.matmul %492, %380, %cst_186 {dimension_numbers = #tpu.dot_dimension_numbers<[1], [0], [0], [1], [0, 0, 1, 1], [], []>} : vector<16x32xf32>, vector<32x96xf32>, vector<16x96xf32> -> vector<16x96xf32>
    %494 = vector.broadcast %387 : vector<1x96xf32> to vector<16x96xf32>
    %495 = arith.addf %493, %494 : vector<16x96xf32>
    %496 = vector.extract_strided_slice %495 {offsets = [0, 0], sizes = [16, 8], strides = [1, 1]} : vector<16x96xf32> to vector<16x8xf32>
    %497 = vector.extract_strided_slice %495 {offsets = [0, 32], sizes = [16, 8], strides = [1, 1]} : vector<16x96xf32> to vector<16x8xf32>
    %498 = vector.extract_strided_slice %495 {offsets = [0, 64], sizes = [16, 8], strides = [1, 1]} : vector<16x96xf32> to vector<16x8xf32>
    %cst_187 = arith.constant dense<0.000000e+00> : vector<16x16xf32>
    %499 = tpu.matmul %496, %497, %cst_187 {dimension_numbers = #tpu.dot_dimension_numbers<[1], [1], [0], [0], [0, 0, 1, 0], [], []>} : vector<16x8xf32>, vector<16x8xf32>, vector<16x16xf32> -> vector<16x16xf32>
    %cst_188 = arith.constant 0.353553385 : f32
    %500 = vector.broadcast %cst_188 : f32 to vector<16x16xf32>
    %501 = arith.mulf %499, %500 : vector<16x16xf32>
    %cst_189 = arith.constant -1.000000e+30 : f32
    %502 = vector.broadcast %cst_189 : f32 to vector<16x16xf32>
    %503 = arith.select %24, %501, %502 : vector<16x16xi1>, vector<16x16xf32>
    %cst_190 = arith.constant dense<0xFF800000> : vector<16xf32>
    %504 = vector.multi_reduction <maximumf>, %503, %cst_190 [1] : vector<16x16xf32> to vector<16xf32>
    %505 = vector.shape_cast %504 : vector<16xf32> to vector<16x1xf32>
    %506 = vector.broadcast %505 : vector<16x1xf32> to vector<16x16xf32>
    %507 = arith.subf %503, %506 : vector<16x16xf32>
    %508 = math.exp %507 : vector<16x16xf32>
    %cst_191 = arith.constant dense<0.000000e+00> : vector<16xf32>
    %509 = vector.multi_reduction <add>, %508, %cst_191 [1] : vector<16x16xf32> to vector<16xf32>
    %510 = vector.shape_cast %509 : vector<16xf32> to vector<16x1xf32>
    %511 = tpu.reciprocal %510 : vector<16x1xf32> -> vector<16x1xf32>
    %512 = vector.broadcast %511 : vector<16x1xf32> to vector<16x16xf32>
    %513 = arith.mulf %508, %512 : vector<16x16xf32>
    %cst_192 = arith.constant dense<0.000000e+00> : vector<16x8xf32>
    %514 = tpu.matmul %513, %498, %cst_192 {dimension_numbers = #tpu.dot_dimension_numbers<[1], [0], [0], [1], [0, 0, 1, 1], [], []>} : vector<16x16xf32>, vector<16x8xf32>, vector<16x8xf32> -> vector<16x8xf32>
    %515 = vector.extract_strided_slice %381 {offsets = [0, 0], sizes = [8, 32], strides = [1, 1]} : vector<32x32xf32> to vector<8x32xf32>
    %cst_193 = arith.constant dense<0.000000e+00> : vector<16x32xf32>
    %516 = tpu.matmul %514, %515, %cst_193 {dimension_numbers = #tpu.dot_dimension_numbers<[1], [0], [0], [1], [0, 0, 1, 1], [], []>} : vector<16x8xf32>, vector<8x32xf32>, vector<16x32xf32> -> vector<16x32xf32>
    %517 = vector.extract_strided_slice %495 {offsets = [0, 8], sizes = [16, 8], strides = [1, 1]} : vector<16x96xf32> to vector<16x8xf32>
    %518 = vector.extract_strided_slice %495 {offsets = [0, 40], sizes = [16, 8], strides = [1, 1]} : vector<16x96xf32> to vector<16x8xf32>
    %519 = vector.extract_strided_slice %495 {offsets = [0, 72], sizes = [16, 8], strides = [1, 1]} : vector<16x96xf32> to vector<16x8xf32>
    %cst_194 = arith.constant dense<0.000000e+00> : vector<16x16xf32>
    %520 = tpu.matmul %517, %518, %cst_194 {dimension_numbers = #tpu.dot_dimension_numbers<[1], [1], [0], [0], [0, 0, 1, 0], [], []>} : vector<16x8xf32>, vector<16x8xf32>, vector<16x16xf32> -> vector<16x16xf32>
    %cst_195 = arith.constant 0.353553385 : f32
    %521 = vector.broadcast %cst_195 : f32 to vector<16x16xf32>
    %522 = arith.mulf %520, %521 : vector<16x16xf32>
    %cst_196 = arith.constant -1.000000e+30 : f32
    %523 = vector.broadcast %cst_196 : f32 to vector<16x16xf32>
    %524 = arith.select %24, %522, %523 : vector<16x16xi1>, vector<16x16xf32>
    %cst_197 = arith.constant dense<0xFF800000> : vector<16xf32>
    %525 = vector.multi_reduction <maximumf>, %524, %cst_197 [1] : vector<16x16xf32> to vector<16xf32>
    %526 = vector.shape_cast %525 : vector<16xf32> to vector<16x1xf32>
    %527 = vector.broadcast %526 : vector<16x1xf32> to vector<16x16xf32>
    %528 = arith.subf %524, %527 : vector<16x16xf32>
    %529 = math.exp %528 : vector<16x16xf32>
    %cst_198 = arith.constant dense<0.000000e+00> : vector<16xf32>
    %530 = vector.multi_reduction <add>, %529, %cst_198 [1] : vector<16x16xf32> to vector<16xf32>
    %531 = vector.shape_cast %530 : vector<16xf32> to vector<16x1xf32>
    %532 = tpu.reciprocal %531 : vector<16x1xf32> -> vector<16x1xf32>
    %533 = vector.broadcast %532 : vector<16x1xf32> to vector<16x16xf32>
    %534 = arith.mulf %529, %533 : vector<16x16xf32>
    %cst_199 = arith.constant dense<0.000000e+00> : vector<16x8xf32>
    %535 = tpu.matmul %534, %519, %cst_199 {dimension_numbers = #tpu.dot_dimension_numbers<[1], [0], [0], [1], [0, 0, 1, 1], [], []>} : vector<16x16xf32>, vector<16x8xf32>, vector<16x8xf32> -> vector<16x8xf32>
    %536 = vector.extract_strided_slice %381 {offsets = [8, 0], sizes = [8, 32], strides = [1, 1]} : vector<32x32xf32> to vector<8x32xf32>
    %cst_200 = arith.constant dense<0.000000e+00> : vector<16x32xf32>
    %537 = tpu.matmul %535, %536, %cst_200 {dimension_numbers = #tpu.dot_dimension_numbers<[1], [0], [0], [1], [0, 0, 1, 1], [], []>} : vector<16x8xf32>, vector<8x32xf32>, vector<16x32xf32> -> vector<16x32xf32>
    %538 = arith.addf %516, %537 : vector<16x32xf32>
    %539 = vector.extract_strided_slice %495 {offsets = [0, 16], sizes = [16, 8], strides = [1, 1]} : vector<16x96xf32> to vector<16x8xf32>
    %540 = vector.extract_strided_slice %495 {offsets = [0, 48], sizes = [16, 8], strides = [1, 1]} : vector<16x96xf32> to vector<16x8xf32>
    %541 = vector.extract_strided_slice %495 {offsets = [0, 80], sizes = [16, 8], strides = [1, 1]} : vector<16x96xf32> to vector<16x8xf32>
    %cst_201 = arith.constant dense<0.000000e+00> : vector<16x16xf32>
    %542 = tpu.matmul %539, %540, %cst_201 {dimension_numbers = #tpu.dot_dimension_numbers<[1], [1], [0], [0], [0, 0, 1, 0], [], []>} : vector<16x8xf32>, vector<16x8xf32>, vector<16x16xf32> -> vector<16x16xf32>
    %cst_202 = arith.constant 0.353553385 : f32
    %543 = vector.broadcast %cst_202 : f32 to vector<16x16xf32>
    %544 = arith.mulf %542, %543 : vector<16x16xf32>
    %cst_203 = arith.constant -1.000000e+30 : f32
    %545 = vector.broadcast %cst_203 : f32 to vector<16x16xf32>
    %546 = arith.select %24, %544, %545 : vector<16x16xi1>, vector<16x16xf32>
    %cst_204 = arith.constant dense<0xFF800000> : vector<16xf32>
    %547 = vector.multi_reduction <maximumf>, %546, %cst_204 [1] : vector<16x16xf32> to vector<16xf32>
    %548 = vector.shape_cast %547 : vector<16xf32> to vector<16x1xf32>
    %549 = vector.broadcast %548 : vector<16x1xf32> to vector<16x16xf32>
    %550 = arith.subf %546, %549 : vector<16x16xf32>
    %551 = math.exp %550 : vector<16x16xf32>
    %cst_205 = arith.constant dense<0.000000e+00> : vector<16xf32>
    %552 = vector.multi_reduction <add>, %551, %cst_205 [1] : vector<16x16xf32> to vector<16xf32>
    %553 = vector.shape_cast %552 : vector<16xf32> to vector<16x1xf32>
    %554 = tpu.reciprocal %553 : vector<16x1xf32> -> vector<16x1xf32>
    %555 = vector.broadcast %554 : vector<16x1xf32> to vector<16x16xf32>
    %556 = arith.mulf %551, %555 : vector<16x16xf32>
    %cst_206 = arith.constant dense<0.000000e+00> : vector<16x8xf32>
    %557 = tpu.matmul %556, %541, %cst_206 {dimension_numbers = #tpu.dot_dimension_numbers<[1], [0], [0], [1], [0, 0, 1, 1], [], []>} : vector<16x16xf32>, vector<16x8xf32>, vector<16x8xf32> -> vector<16x8xf32>
    %558 = vector.extract_strided_slice %381 {offsets = [16, 0], sizes = [8, 32], strides = [1, 1]} : vector<32x32xf32> to vector<8x32xf32>
    %cst_207 = arith.constant dense<0.000000e+00> : vector<16x32xf32>
    %559 = tpu.matmul %557, %558, %cst_207 {dimension_numbers = #tpu.dot_dimension_numbers<[1], [0], [0], [1], [0, 0, 1, 1], [], []>} : vector<16x8xf32>, vector<8x32xf32>, vector<16x32xf32> -> vector<16x32xf32>
    %560 = arith.addf %538, %559 : vector<16x32xf32>
    %561 = vector.extract_strided_slice %495 {offsets = [0, 24], sizes = [16, 8], strides = [1, 1]} : vector<16x96xf32> to vector<16x8xf32>
    %562 = vector.extract_strided_slice %495 {offsets = [0, 56], sizes = [16, 8], strides = [1, 1]} : vector<16x96xf32> to vector<16x8xf32>
    %563 = vector.extract_strided_slice %495 {offsets = [0, 88], sizes = [16, 8], strides = [1, 1]} : vector<16x96xf32> to vector<16x8xf32>
    %cst_208 = arith.constant dense<0.000000e+00> : vector<16x16xf32>
    %564 = tpu.matmul %561, %562, %cst_208 {dimension_numbers = #tpu.dot_dimension_numbers<[1], [1], [0], [0], [0, 0, 1, 0], [], []>} : vector<16x8xf32>, vector<16x8xf32>, vector<16x16xf32> -> vector<16x16xf32>
    %cst_209 = arith.constant 0.353553385 : f32
    %565 = vector.broadcast %cst_209 : f32 to vector<16x16xf32>
    %566 = arith.mulf %564, %565 : vector<16x16xf32>
    %cst_210 = arith.constant -1.000000e+30 : f32
    %567 = vector.broadcast %cst_210 : f32 to vector<16x16xf32>
    %568 = arith.select %24, %566, %567 : vector<16x16xi1>, vector<16x16xf32>
    %cst_211 = arith.constant dense<0xFF800000> : vector<16xf32>
    %569 = vector.multi_reduction <maximumf>, %568, %cst_211 [1] : vector<16x16xf32> to vector<16xf32>
    %570 = vector.shape_cast %569 : vector<16xf32> to vector<16x1xf32>
    %571 = vector.broadcast %570 : vector<16x1xf32> to vector<16x16xf32>
    %572 = arith.subf %568, %571 : vector<16x16xf32>
    %573 = math.exp %572 : vector<16x16xf32>
    %cst_212 = arith.constant dense<0.000000e+00> : vector<16xf32>
    %574 = vector.multi_reduction <add>, %573, %cst_212 [1] : vector<16x16xf32> to vector<16xf32>
    %575 = vector.shape_cast %574 : vector<16xf32> to vector<16x1xf32>
    %576 = tpu.reciprocal %575 : vector<16x1xf32> -> vector<16x1xf32>
    %577 = vector.broadcast %576 : vector<16x1xf32> to vector<16x16xf32>
    %578 = arith.mulf %573, %577 : vector<16x16xf32>
    %cst_213 = arith.constant dense<0.000000e+00> : vector<16x8xf32>
    %579 = tpu.matmul %578, %563, %cst_213 {dimension_numbers = #tpu.dot_dimension_numbers<[1], [0], [0], [1], [0, 0, 1, 1], [], []>} : vector<16x16xf32>, vector<16x8xf32>, vector<16x8xf32> -> vector<16x8xf32>
    %580 = vector.extract_strided_slice %381 {offsets = [24, 0], sizes = [8, 32], strides = [1, 1]} : vector<32x32xf32> to vector<8x32xf32>
    %cst_214 = arith.constant dense<0.000000e+00> : vector<16x32xf32>
    %581 = tpu.matmul %579, %580, %cst_214 {dimension_numbers = #tpu.dot_dimension_numbers<[1], [0], [0], [1], [0, 0, 1, 1], [], []>} : vector<16x8xf32>, vector<8x32xf32>, vector<16x32xf32> -> vector<16x32xf32>
    %582 = arith.addf %560, %581 : vector<16x32xf32>
    %583 = vector.broadcast %388 : vector<1x32xf32> to vector<16x32xf32>
    %584 = arith.addf %582, %583 : vector<16x32xf32>
    %585 = arith.addf %489, %584 : vector<16x32xf32>
    %cst_215 = arith.constant dense<0.000000e+00> : vector<16xf32>
    %586 = vector.multi_reduction <add>, %585, %cst_215 [1] : vector<16x32xf32> to vector<16xf32>
    %587 = vector.shape_cast %586 : vector<16xf32> to vector<16x1xf32>
    %cst_216 = arith.constant 3.200000e+01 : f32
    %588 = vector.broadcast %cst_216 : f32 to vector<16x1xf32>
    %589 = arith.divf %587, %588 : vector<16x1xf32>
    %590 = vector.broadcast %589 : vector<16x1xf32> to vector<16x32xf32>
    %591 = arith.subf %585, %590 : vector<16x32xf32>
    %592 = arith.mulf %591, %591 : vector<16x32xf32>
    %cst_217 = arith.constant dense<0.000000e+00> : vector<16xf32>
    %593 = vector.multi_reduction <add>, %592, %cst_217 [1] : vector<16x32xf32> to vector<16xf32>
    %594 = vector.shape_cast %593 : vector<16xf32> to vector<16x1xf32>
    %cst_218 = arith.constant 3.200000e+01 : f32
    %595 = vector.broadcast %cst_218 : f32 to vector<16x1xf32>
    %596 = arith.divf %594, %595 : vector<16x1xf32>
    %cst_219 = arith.constant 9.99999974E-6 : f32
    %597 = vector.broadcast %cst_219 : f32 to vector<16x1xf32>
    %598 = arith.addf %596, %597 : vector<16x1xf32>
    %599 = math.rsqrt %598 : vector<16x1xf32>
    %600 = vector.broadcast %599 : vector<16x1xf32> to vector<16x32xf32>
    %601 = arith.mulf %591, %600 : vector<16x32xf32>
    %602 = vector.broadcast %389 : vector<1x32xf32> to vector<16x32xf32>
    %603 = arith.mulf %601, %602 : vector<16x32xf32>
    %604 = vector.broadcast %390 : vector<1x32xf32> to vector<16x32xf32>
    %605 = arith.addf %603, %604 : vector<16x32xf32>
    %606 = arith.addf %376, %605 : vector<16x32xf32>
    %cst_220 = arith.constant dense<0.000000e+00> : vector<16xf32>
    %607 = vector.multi_reduction <add>, %606, %cst_220 [1] : vector<16x32xf32> to vector<16xf32>
    %608 = vector.shape_cast %607 : vector<16xf32> to vector<16x1xf32>
    %cst_221 = arith.constant 3.200000e+01 : f32
    %609 = vector.broadcast %cst_221 : f32 to vector<16x1xf32>
    %610 = arith.divf %608, %609 : vector<16x1xf32>
    %611 = vector.broadcast %610 : vector<16x1xf32> to vector<16x32xf32>
    %612 = arith.subf %606, %611 : vector<16x32xf32>
    %613 = arith.mulf %612, %612 : vector<16x32xf32>
    %cst_222 = arith.constant dense<0.000000e+00> : vector<16xf32>
    %614 = vector.multi_reduction <add>, %613, %cst_222 [1] : vector<16x32xf32> to vector<16xf32>
    %615 = vector.shape_cast %614 : vector<16xf32> to vector<16x1xf32>
    %cst_223 = arith.constant 3.200000e+01 : f32
    %616 = vector.broadcast %cst_223 : f32 to vector<16x1xf32>
    %617 = arith.divf %615, %616 : vector<16x1xf32>
    %cst_224 = arith.constant 9.99999974E-6 : f32
    %618 = vector.broadcast %cst_224 : f32 to vector<16x1xf32>
    %619 = arith.addf %617, %618 : vector<16x1xf32>
    %620 = math.rsqrt %619 : vector<16x1xf32>
    %621 = vector.broadcast %620 : vector<16x1xf32> to vector<16x32xf32>
    %622 = arith.mulf %612, %621 : vector<16x32xf32>
    %623 = vector.broadcast %391 : vector<1x32xf32> to vector<16x32xf32>
    %624 = arith.mulf %622, %623 : vector<16x32xf32>
    %625 = vector.broadcast %392 : vector<1x32xf32> to vector<16x32xf32>
    %626 = arith.addf %624, %625 : vector<16x32xf32>
    %cst_225 = arith.constant dense<0.000000e+00> : vector<16x128xf32>
    %627 = tpu.matmul %626, %382, %cst_225 {dimension_numbers = #tpu.dot_dimension_numbers<[1], [0], [0], [1], [0, 0, 1, 1], [], []>} : vector<16x32xf32>, vector<32x128xf32>, vector<16x128xf32> -> vector<16x128xf32>
    %628 = vector.broadcast %393 : vector<1x128xf32> to vector<16x128xf32>
    %629 = arith.addf %627, %628 : vector<16x128xf32>
    %cst_226 = arith.constant 5.000000e-01 : f32
    %630 = vector.broadcast %cst_226 : f32 to vector<16x128xf32>
    %631 = arith.mulf %630, %629 : vector<16x128xf32>
    %cst_227 = arith.constant 0.707106769 : f32
    %632 = vector.broadcast %cst_227 : f32 to vector<16x128xf32>
    %633 = arith.mulf %629, %632 : vector<16x128xf32>
    %cst_228 = arith.constant 0.000000e+00 : f32
    %634 = vector.broadcast %cst_228 : f32 to vector<16x128xf32>
    %635 = arith.cmpf oge, %633, %634 : vector<16x128xf32>
    %cst_229 = arith.constant 1.000000e+00 : f32
    %cst_230 = arith.constant -1.000000e+00 : f32
    %636 = vector.broadcast %cst_229 : f32 to vector<16x128xf32>
    %637 = vector.broadcast %cst_230 : f32 to vector<16x128xf32>
    %638 = arith.select %635, %636, %637 : vector<16x128xi1>, vector<16x128xf32>
    %639 = math.absf %633 : vector<16x128xf32>
    %cst_231 = arith.constant 0.327591091 : f32
    %640 = vector.broadcast %cst_231 : f32 to vector<16x128xf32>
    %641 = arith.mulf %640, %639 : vector<16x128xf32>
    %cst_232 = arith.constant 1.000000e+00 : f32
    %642 = vector.broadcast %cst_232 : f32 to vector<16x128xf32>
    %643 = arith.addf %642, %641 : vector<16x128xf32>
    %644 = tpu.reciprocal %643 : vector<16x128xf32> -> vector<16x128xf32>
    %cst_233 = arith.constant 1.06140542 : f32
    %645 = vector.broadcast %cst_233 : f32 to vector<16x128xf32>
    %646 = arith.mulf %645, %644 : vector<16x128xf32>
    %cst_234 = arith.constant -1.45315206 : f32
    %647 = vector.broadcast %cst_234 : f32 to vector<16x128xf32>
    %648 = arith.addf %646, %647 : vector<16x128xf32>
    %649 = arith.mulf %648, %644 : vector<16x128xf32>
    %cst_235 = arith.constant 1.42141378 : f32
    %650 = vector.broadcast %cst_235 : f32 to vector<16x128xf32>
    %651 = arith.addf %649, %650 : vector<16x128xf32>
    %652 = arith.mulf %651, %644 : vector<16x128xf32>
    %cst_236 = arith.constant -0.284496725 : f32
    %653 = vector.broadcast %cst_236 : f32 to vector<16x128xf32>
    %654 = arith.addf %652, %653 : vector<16x128xf32>
    %655 = arith.mulf %654, %644 : vector<16x128xf32>
    %cst_237 = arith.constant 0.254829586 : f32
    %656 = vector.broadcast %cst_237 : f32 to vector<16x128xf32>
    %657 = arith.addf %655, %656 : vector<16x128xf32>
    %658 = arith.mulf %657, %644 : vector<16x128xf32>
    %cst_238 = arith.constant 0.000000e+00 : f32
    %659 = vector.broadcast %cst_238 : f32 to vector<16x128xf32>
    %660 = arith.subf %659, %639 : vector<16x128xf32>
    %661 = arith.mulf %660, %639 : vector<16x128xf32>
    %662 = math.exp %661 : vector<16x128xf32>
    %663 = arith.mulf %658, %662 : vector<16x128xf32>
    %cst_239 = arith.constant 1.000000e+00 : f32
    %664 = vector.broadcast %cst_239 : f32 to vector<16x128xf32>
    %665 = arith.subf %664, %663 : vector<16x128xf32>
    %666 = arith.mulf %638, %665 : vector<16x128xf32>
    %cst_240 = arith.constant 1.000000e+00 : f32
    %667 = vector.broadcast %cst_240 : f32 to vector<16x128xf32>
    %668 = arith.addf %667, %666 : vector<16x128xf32>
    %669 = arith.mulf %631, %668 : vector<16x128xf32>
    %cst_241 = arith.constant dense<0.000000e+00> : vector<16x32xf32>
    %670 = tpu.matmul %669, %383, %cst_241 {dimension_numbers = #tpu.dot_dimension_numbers<[1], [0], [0], [1], [0, 0, 1, 1], [], []>} : vector<16x128xf32>, vector<128x32xf32>, vector<16x32xf32> -> vector<16x32xf32>
    %671 = arith.addf %626, %670 : vector<16x32xf32>
    %672 = vector.broadcast %394 : vector<1x32xf32> to vector<16x32xf32>
    %673 = arith.addf %671, %672 : vector<16x32xf32>
    %cst_242 = arith.constant dense<0.000000e+00> : vector<16xf32>
    %674 = vector.multi_reduction <add>, %673, %cst_242 [1] : vector<16x32xf32> to vector<16xf32>
    %675 = vector.shape_cast %674 : vector<16xf32> to vector<16x1xf32>
    %cst_243 = arith.constant 3.200000e+01 : f32
    %676 = vector.broadcast %cst_243 : f32 to vector<16x1xf32>
    %677 = arith.divf %675, %676 : vector<16x1xf32>
    %678 = vector.broadcast %677 : vector<16x1xf32> to vector<16x32xf32>
    %679 = arith.subf %673, %678 : vector<16x32xf32>
    %680 = arith.mulf %679, %679 : vector<16x32xf32>
    %cst_244 = arith.constant dense<0.000000e+00> : vector<16xf32>
    %681 = vector.multi_reduction <add>, %680, %cst_244 [1] : vector<16x32xf32> to vector<16xf32>
    %682 = vector.shape_cast %681 : vector<16xf32> to vector<16x1xf32>
    %cst_245 = arith.constant 3.200000e+01 : f32
    %683 = vector.broadcast %cst_245 : f32 to vector<16x1xf32>
    %684 = arith.divf %682, %683 : vector<16x1xf32>
    %cst_246 = arith.constant 9.99999974E-6 : f32
    %685 = vector.broadcast %cst_246 : f32 to vector<16x1xf32>
    %686 = arith.addf %684, %685 : vector<16x1xf32>
    %687 = math.rsqrt %686 : vector<16x1xf32>
    %688 = vector.broadcast %687 : vector<16x1xf32> to vector<16x32xf32>
    %689 = arith.mulf %679, %688 : vector<16x32xf32>
    %690 = vector.broadcast %395 : vector<1x32xf32> to vector<16x32xf32>
    %691 = arith.mulf %689, %690 : vector<16x32xf32>
    %692 = vector.broadcast %396 : vector<1x32xf32> to vector<16x32xf32>
    %693 = arith.addf %691, %692 : vector<16x32xf32>
    %c8_247 = arith.constant 8 : index
    %c0_248 = arith.constant 0 : index
    %694 = vector.load %arg3[%c8_247, %c0_248] : memref<40x64xf32, #tpu.memory_space<vmem>>, vector<32x16xf32>
    %c4_249 = arith.constant 4 : index
    %c0_250 = arith.constant 0 : index
    %695 = vector.load %arg3[%c4_249, %c0_250] : memref<40x64xf32, #tpu.memory_space<vmem>>, vector<1x16xf32>
    %cst_251 = arith.constant dense<0.000000e+00> : vector<16x16xf32>
    %696 = tpu.matmul %693, %694, %cst_251 {dimension_numbers = #tpu.dot_dimension_numbers<[1], [0], [0], [1], [0, 0, 1, 1], [], []>} : vector<16x32xf32>, vector<32x16xf32>, vector<16x16xf32> -> vector<16x16xf32>
    %697 = vector.broadcast %695 : vector<1x16xf32> to vector<16x16xf32>
    %698 = arith.addf %696, %697 : vector<16x16xf32>
    %c0_252 = arith.constant 0 : index
    %c0_253 = arith.constant 0 : index
    %699 = vector.load %arg6[%c0_252, %c0_253] : memref<16x16xf32, #tpu.memory_space<vmem>>, vector<16x16xf32>
    tpu.vector_store %arg6[%c0_252, %c0_253], %698 {strides = array<i32>} : memref<16x16xf32, #tpu.memory_space<vmem>>, vector<16x16xf32>,
    return
  }
}

</mosaic_0001>

<bundles_post_ra>
// kernel: forward.1
= control target key start
LH: loop header
LB: loop body
LE: loop exit
PB: predicated region body
PF: predicated region fallthrough
CT: control target
= control target key end

     0   :  { %11 = vsyncpa [#allocation3], 0  ;;  %s7917_s21 = smov [#allocation2]   ;;  %s8714_s0 = inlined_call_operand.vmem [shape: f32[16,80], index: 0, kind: input, shape index: {}]   ;;  %s8715_s1 = inlined_call_operand.vmem [shape: f32[16,32], index: 1, kind: input, shape index: {}]   ;;  %s8716_s2 = inlined_call_operand.vmem [shape: f32[80,64], index: 2, kind: input, shape index: {}]   ;;  %s8717_s3 = inlined_call_operand.vmem [shape: f32[40,64], index: 3, kind: input, shape index: {}]   ;;  %s8718_s4 = inlined_call_operand.hbm [shape: f32[640,128], index: 4, kind: input, shape index: {}]   ;;  %s8719_s5 = inlined_call_operand.vmem [shape: f32[32,128], index: 5, kind: input, shape index: {}]   ;;  %s8720_s6 = inlined_call_operand.vmem [shape: f32[16,16], index: 6, kind: output, shape index: {}]  }
   0x1   :  { %s25_s22 = sshll.u32 %s7917_s21, 4  ;;  %s7893_s25 = scalar_lea.hbm %s8718_s4, 10240  ;;  %s26_s22 = int_to_ptr.vmem [resolvable:$true] %s25_s22 }
   0x2   :  { %p7894_p0 = scmp.ne.s32.totalorder %s8718_s4, %s7893_s25  ;;  %p7897_p1 = scmp.lt.u32.totalorder %s7893_s25, %s8718_s4 }
   0x4   :  { %p7899_p2 = pnand %p7897_p1, %p7894_p0 }
   0x6   :  { %7902 = shalt.err (!%p7899_p2)
}
   0x7   :  { %s7903_s30 = scalar_lea.vmem %s26_s22, 10240  ;;  %p7908_p4 = scmp.lt.s32.totalorder %s26_s22, %s26_s22 }
   0x8   :  { %p7904_p3 = scmp.ne.s32.totalorder %s26_s22, %s7903_s30  ;;  %p7909_p5 = scmp.lt.s32.totalorder %s7903_s30, %s7903_s30 }
   0xa   :  { %p7910_p6 = por %p7909_p5, %p7908_p4 }
   0xc   :  { %p7911_p7 = pnand %p7910_p6, %p7904_p3 }
   0xe   :  { %7914 = shalt.err (!%p7911_p7)
}
   0xf   :  { %s7918_s7 = smov 128   ;;  %s7919_s8 = smov 8  }
  0x10   :  { %31 = dma.hbm_to_vmem [thread:$0]  %s8718_s4, 10240, %s26_s22, [#allocation3], %s7918_s7, %s7918_s7, %s7919_s8  }
  0x11   :  { %7915 = dma.done.wait [#allocation3], 10240  }
  0x12   :  { %7916 = vsyncadd [#allocation3], 4294957056  ;;  %v68_v0 = vld [vmem:[%s8716_s2] sm:$0xff]  ;;  %v69_v1 = vld [vmem:[%s8716_s2 + $0x8] sm:$0xff]  ;;  %vm83_vm0 = vcmask 654336   ;;  %vm172_vm1 = vcmask 523264  }
  0x13   :  { %v70_v2 = vld [vmem:[%s8716_s2 + $0x10] sm:$0xff]  ;;  %v7197_v3 = vpack.c.bf16 %v69_v1, %v68_v0  ;;  %v71_v4 = vld [vmem:[%s8716_s2 + $0x18] sm:$0xff]  ;;  %v72_v6 = vld [vmem:[%s8716_s2 + $0x20] sm:$0xff]  ;;  %s7920_s16 = smov 127   ;;  %s7921_s17 = smov 32   ;;  %v7922_v37 = vmov 0  }
  0x14   :  { %v7201_v5 = vpack.c.bf16 %v71_v4, %v70_v2  ;;  %v73_v7 = vld [vmem:[%s8716_s2 + $0x28] sm:$0xff]  ;;  %v66_v8 = vld [vmem:[%s8714_s0] sm:$0xff]  ;;  %v74_v10 = vld [vmem:[%s8716_s2 + $0x30] sm:$0xff]  ;;  %7555 = vset.pattern.permute.xlu1 %v7922_v37  ;;  %7716 = vset.pattern.permute.xlu0 %v7922_v37  ;;  %s7923_s18 = smov 96   ;;  %vm312_vm2 = vcmask 261120   ;;  %vm400_vm3 = vcmask 64512  }
  0x15   :  { %7198 = vmatprep.subr.bf16.mxu0 %v7197_v3  ;;  %6721 = vmatprep.mubr.msk.f32.mxu0 %vm83_vm0, %v66_v8  ;;  %v7205_v9 = vpack.c.bf16 %v73_v7, %v72_v6  ;;  %v75_v11 = vld [vmem:[%s8716_s2 + $0x38] sm:$0xff]  ;;  %v76_v13 = vld [vmem:[%s8716_s2 + $0x40] sm:$0xff]  ;;  %v77_v14 = vld [vmem:[%s8716_s2 + $0x48] sm:$0xff]  ;;  %s7925_s24 = smov 120   ;;  %s7926_s25 = smov 112   ;;  %vm488_vm8 = vcmask 130048  }
  0x16   :  { %7200 = vmatpush3.bf16.msra.mxu0 %v7197_v3  ;;  %v7209_v12 = vpack.c.bf16 %v75_v11, %v74_v10  ;;  %v7213_v15 = vpack.c.bf16 %v77_v14, %v76_v13  ;;  %v67_v16 = vld [vmem:[%s8714_s0 + $0x8] sm:$0xff]  ;;  %v6244_v17 = vld [vmem:[%s8717_s3] ss:$0 sm:$0xff]  ;;  %v6247_v19 = vld [vmem:[%s8717_s3 + $0x1] ss:$0 sm:$0xff]  ;;  %s7927_s26 = smov 80  }
  0x17   :  { %7202 = vmatprep.subr.bf16.mxu0 %v7201_v5  ;;  %v6249_v22 = vld [vmem:[%s8717_s3 + $0x2] ss:$0 sm:$0xff]  ;;  %v6248_v32 = vld [vmem:[%s8717_s3 + $0x3] ss:$0 sm:$0xff]  ;;  %v256_v55 = vld [vmem:[#allocation2 + $0x8] sm:$0xff]  ;;  %s7928_s27 = smov 64  }
  0x18   :  { %v255_v54 = vld [vmem:[#allocation2] sm:$0xff]  ;;  %v257_v58 = vld [vmem:[#allocation2 + $0x10] sm:$0xff]  ;;  %v258_v59 = vld [vmem:[#allocation2 + $0x18] sm:$0xff]  ;;  %s7929_s28 = smov 72   ;;  %s7930_s29 = smov 56  }
  0x19   :  { %v7217_v56 = vpack.c.bf16 %v256_v55, %v255_v54  ;;  %v7221_v60 = vpack.c.bf16 %v258_v59, %v257_v58  ;;  %v251_v4 = vld [vmem:[%s8715_s1] sm:$0xff]  ;;  %v252_v8 = vld [vmem:[%s8715_s1 + $0x8] sm:$0xff]  ;;  %s7924_s1 = smov 88   ;;  %vm8091_vm4 = vmpackc.low %vm400_vm3, %vm400_vm3  ;;  %s7931_s30 = smov 104  }
  0x1a   :  { %7204 = vmatpush3.bf16.msra.mxu0 %v7201_v5  ;;  %s7932_s7 = smov 48   ;;  %s7933_s8 = smov 40  }
  0x1b   :  { %7206 = vmatprep.subr.bf16.mxu0 %v7205_v9 }
  0x1e   :  { %7208 = vmatpush3.bf16.msra.mxu0 %v7205_v9 }
  0x1f   :  { %7210 = vmatprep.subr.bf16.mxu0 %v7209_v12 }
  0x22   :  { %7212 = vmatpush3.bf16.msra.mxu0 %v7209_v12  ;;  %v6250_v12 = vld [vmem:[%s8719_s5] ss:$0 sm:$0xff] }
  0x23   :  { %7214 = vmatprep.subr.bf16.mxu0 %v7213_v15 }
  0x26   :  { %7216 = vmatpush3.bf16.msra.mxu0 %v7213_v15 }
  0x27   :  { %7218 = vmatprep.subr.bf16.mxu0 %v7217_v56 }
  0x29   :  { %6722 = vmatmul.mubr.msk.f32.vlgmr.msra.gmra.mrb[0].mxu0 %vm83_vm0, %v67_v16 }
  0x2a   :  { %7220 = vmatpush3.bf16.msra.mxu0 %v7217_v56 }
  0x2b   :  { %7222 = vmatprep.subr.bf16.mxu0 %v7221_v60 }
  0x2e   :  { %7224 = vmatpush3.bf16.msra.mxu0 %v7221_v60 }
  0xfc   :  { %v6723_v18 = vpop.f32.mrb[0].mxu0 }
  0xfd   :  { %v8026_v20 = vadd.f32 %v6723_v18, %v6244_v17  ;;  %v156_v21 = vpop.f32.mrb[1].mxu0 }
  0xfe   :  { %v8031_v23 = vadd.f32 %v6244_v17, %v156_v21 }
  0xff   :  { %v171_v24 = vmul.f32 %v6247_v19, %v8026_v20  ;;  %v192_v29 = vmul.f32 %v6249_v22, %v8026_v20 }
 0x100   :  { %v191_v25 = vmul.f32 %v6249_v22, %v8031_v23  ;;  %v170_v27 = vmul.f32 %v6247_v19, %v8031_v23 }
 0x101   :  { %v176_v26 = vsel %vm172_vm1, %v171_v24, 0.0  ;;  %v196_v31 = vsel %vm172_vm1, %v192_v29, 0.0 }
 0x102   :  { %177 = vadd.xlane.f32.xlu1 %v176_v26  ;;  %v193_v28 = vsel %vm172_vm1, %v191_v25, 0.0  ;;  %v173_v30 = vsel %vm172_vm1, %v170_v27, 0.0 }
 0x103   :  { %194 = vadd.xlane.f32.xlu0 %v193_v28 }
 0x106   :  { %174 = vadd.xlane.f32.xlu1 %v173_v30 }
 0x107   :  { %197 = vadd.xlane.f32.xlu0 %v196_v31 }
 0x18f   :  { %v178_v38 = vpop.xlane.xlu1 %177 }
 0x190   :  { %v195_v33 = vpop.xlane.xlu0 %194  ;;  %v185_v43 = vadd.f32 %v6248_v32, %v178_v38 }
 0x191   :  { %v199_v34 = vadd.f32 %v6248_v32, %v195_v33 }
 0x193   :  { %203 = vrot.lane.b32.xlu0 %v199_v34, %s7920_s16  ;;  %v175_v39 = vpop.xlane.xlu1 %174 }
 0x194   :  { %v198_v35 = vpop.xlane.xlu0 %197  ;;  %v184_v40 = vadd.f32 %v6248_v32, %v175_v39 }
 0x195   :  { %v200_v36 = vadd.f32 %v6248_v32, %v198_v35  ;;  %v40_v35 = vlaneseq }
 0x197   :  { %221 = vrot.lane.b32.xlu0 %v8031_v23, %s7921_s17  ;;  %205 = vrot.lane.b32.xlu1 %v200_v36, %s7920_s16  ;;  %v8113_v36 = vand.u32 127, %v40_v35 }
 0x199   :  { %vm59_vm5 = vcmp.ge.s32.totalorder %v8113_v36, 8  ;;  %vm60_vm6 = vcmp.lt.s32.totalorder %v8113_v36, 16  ;;  %vm49_vm9 = vcmp.lt.s32.totalorder %v8113_v36, 8  ;;  %v3221_v36 = vld [vmem:[#allocation2 + $0x1d0] sm:$0xff] }
 0x19a   :  { %vm8117_vm7 = vmand %vm59_vm5, %vm60_vm6 }
 0x205   :  { %v204_v41 = vpop.permute.xlu0 %203 }
 0x206   :  { %v209_v42 = vsub.f32 %v184_v40, %v204_v41 }
 0x208   :  { %v211_v44 = vmul.f32 1.442695, %v209_v42 }
 0x209   :  { %v206_v45 = vpop.permute.xlu1 %205  ;;  %v222_v57 = vpop.permute.xlu0 %221 }
 0x20a   :  { %7717 = vpow2.f32 %v211_v44  ;;  %v210_v46 = vsub.f32 %v185_v43, %v206_v45  ;;  %v227_v61 = vsub.f32 %v8031_v23, %v222_v57 }
 0x20c   :  { %v213_v47 = vmul.f32 1.442695, %v210_v46 }
 0x20e   :  { %7719 = vpow2.f32 %v213_v47 }
 0x214   :  { %v7718_v48 = vpop.eup %7717 }
 0x215   :  { %v215_v49 = vadd.f32 1.0, %v7718_v48 }
 0x217   :  { %7721 = vrcp.f32 %v215_v49 }
 0x218   :  { %v7720_v50 = vpop.eup %7719 }
 0x219   :  { %v216_v51 = vadd.f32 1.0, %v7720_v50 }
 0x21b   :  { %7723 = vrcp.f32 %v216_v51 }
 0x221   :  { %v7722_v52 = vpop.eup %7721 }
 0x222   :  { %231 = vperm.xlu1 %7555, %v7722_v52  }
 0x225   :  { %v7724_v53 = vpop.eup %7723 }
 0x226   :  { %236 = vperm.xlu1 %7555, %v7724_v53  }
 0x22a   :  { %223 = vrot.lane.b32.xlu1 %v8026_v20, %s7921_s17 }
 0x2a1   :  { %v232_v62 = vpop.permute.xlu1 %231 }
 0x2a2   :  { %v239_v63 = vmul.f32 %v232_v62, %v227_v61 }
 0x2a4   :  { %243 = vrot.lane.b32.xlu0 %v239_v63, %s7923_s18 }
 0x2a5   :  { %v237_v0 = vpop.permute.xlu1 %236 }
 0x2a9   :  { %v224_v1 = vpop.permute.xlu1 %223 }
 0x2aa   :  { %v228_v2 = vsub.f32 %v8026_v20, %v224_v1 }
 0x2ac   :  { %v240_v3 = vmul.f32 %v237_v0, %v228_v2 }
 0x2ae   :  { %245 = vrot.lane.b32.xlu1 %v240_v3, %s7923_s18 }
 0x316   :  { %v244_v5 = vpop.permute.xlu0 %243 }
 0x317   :  { %v249_v6 = vadd.f32 %v244_v5, %v8031_v23 }
 0x319   :  { %v8050_v7 = vadd.f32 %v251_v4, %v249_v6 }
 0x31b   :  { %6732 = vmatprep.mubr.msk.f32.mxu0 %vm312_vm2, %v8050_v7 }
 0x320   :  { %v246_v9 = vpop.permute.xlu1 %245 }
 0x321   :  { %v250_v10 = vadd.f32 %v246_v9, %v8026_v20 }
 0x323   :  { %v8058_v11 = vadd.f32 %v252_v8, %v250_v10 }
 0x325   :  { %6733 = vmatmul.mubr.msk.f32.vlgmr.msra.gmra.mrb[2].mxu0 %vm312_vm2, %v8058_v11 }
 0x3f8   :  { %v6734_v13 = vpop.f32.mrb[2].mxu0 }
 0x3f9   :  { %v8065_v14 = vadd.f32 %v6734_v13, %v6250_v12  ;;  %v385_v15 = vpop.f32.mrb[3].mxu0 }
 0x3fa   :  { %v8067_v16 = vadd.f32 %v6250_v12, %v385_v15 }
 0x3fc   :  { %6739 = vmatprep.mubr.msk.f32.mxu1 %vm400_vm3, %v8067_v16  ;;  %v8073_v17 = vpack.i.bf16 %v8065_v14, %v8067_v16 }
 0x3fe   :  { %7562 = vrot.lane.b32.xlu1 %v8073_v17, %s7924_s1  ;;  %7557 = vrot.lane.b32.xlu0 %v8073_v17, %s7923_s18 }
 0x402   :  { %600 = vrot.lane.b32.xlu1 %v8065_v14, %s7925_s24  ;;  %598 = vrot.lane.b32.xlu0 %v8067_v16, %s7925_s24 }
 0x406   :  { %964 = vrot.lane.b32.xlu1 %v8067_v16, %s7926_s25  ;;  %7567 = vrot.lane.b32.xlu0 %v8073_v17, %s7927_s26 }
 0x40a   :  { %966 = vrot.lane.b32.xlu0 %v8065_v14, %s7926_s25 }
 0x470   :  { %v7563_v18 = vpop.permute.xlu1 %7562  ;;  %v7558_v19 = vpop.permute.xlu0 %7557 }
 0x471   :  { %v7565_v20 = vunpack.i.h.bf16 %v7563_v18  ;;  %v7564_v21 = vunpack.i.l.bf16 %v7563_v18  ;;  %v7560_v22 = vunpack.i.h.bf16 %v7558_v19  ;;  %v7559_v23 = vunpack.i.l.bf16 %v7558_v19 }
 0x473   :  { %v7235_v25 = vpack.c.bf16 %v7565_v20, %v7564_v21  ;;  %v7225_v26 = vpack.c.bf16 %v7560_v22, %v7559_v23 }
 0x474   :  { %v599_v27 = vpop.permute.xlu0 %598  ;;  %v601_v28 = vpop.permute.xlu1 %600 }
 0x475   :  { %7227 = vmatprep.subr.msk.bf16.mxu1 %vm8091_vm4, %v7225_v26  ;;  %7237 = vmatprep.subr.msk.bf16.mxu0 %vm8091_vm4, %v7235_v25 }
 0x476   :  { %6753 = vmatprep.mubr.msk.f32.mxu0 %vm400_vm3, %v599_v27  ;;  %7230 = vmatpush3.bf16.xpose.msk.msra.mxu1 %vm8091_vm4, %v7225_v26 }
 0x477   :  { %7240 = vmatpush3.bf16.xpose.msk.msra.mxu0 %vm8091_vm4, %v7235_v25 }
 0x478   :  { %v7568_v29 = vpop.permute.xlu0 %7567  ;;  %v965_v33 = vpop.permute.xlu1 %964 }
 0x479   :  { %v7570_v30 = vunpack.i.h.bf16 %v7568_v29  ;;  %v7569_v31 = vunpack.i.l.bf16 %v7568_v29 }
 0x47b   :  { %v7245_v32 = vpack.c.bf16 %v7570_v30, %v7569_v31 }
 0x47c   :  { %v967_v34 = vpop.permute.xlu0 %966 }
 0x47d   :  { %6740 = vmatmul.mubr.msk.f32.vlgmr.msra.gmra.mrb[0].mxu1 %vm400_vm3, %v8065_v14  ;;  %7247 = vmatprep.subr.msk.bf16.mxu0 %vm8091_vm4, %v7245_v32 }
 0x47e   :  { %6754 = vmatmul.mubr.msk.f32.vlgmr.msra.gmra.mrb[4].mxu0 %vm400_vm3, %v601_v28 }
 0x47f   :  { %7250 = vmatpush3.bf16.xpose.msk.msra.mxu0 %vm8091_vm4, %v7245_v32  ;;  %6777 = vmatprep.mubr.msk.f32.mxu0 %vm400_vm3, %v965_v33 }
 0x486   :  { %6778 = vmatmul.mubr.msk.f32.vlgmr.msra.gmra.mrb[6].mxu0 %vm400_vm3, %v967_v34 }
 0x550   :  { %v6741_v37 = vpop.f32.mrb[0].mxu1 }
 0x551   :  { %v485_v39 = vmul.f32 0.35355338, %v6741_v37  ;;  %v6755_v40 = vpop.f32.mrb[4].mxu0  ;;  %v475_v41 = vpop.f32.mrb[1].mxu1 }
 0x552   :  { %v484_v42 = vmul.f32 0.35355338, %v475_v41  ;;  %v680_v43 = vpop.f32.mrb[5].mxu0  ;;  %v690_v48 = vmul.f32 0.35355338, %v6755_v40 }
 0x553   :  { %v689_v44 = vmul.f32 0.35355338, %v680_v43  ;;  %v487_v45 = vsel %vm8117_vm7, %v485_v39, -1e+30 }
 0x554   :  { %v492_v46 = vsel %vm488_vm8, %v487_v45, -inf  ;;  %v486_v47 = vsel %vm49_vm9, %v484_v42, -1e+30  ;;  %v692_v53 = vsel %vm8117_vm7, %v690_v48, -1e+30 }
 0x555   :  { %493 = vmax.xlane.f32.xlu0 %v492_v46  ;;  %v489_v49 = vsel %vm488_vm8, %v486_v47, -inf  ;;  %v691_v50 = vsel %vm49_vm9, %v689_v44, -1e+30  ;;  %v696_v55 = vsel %vm488_vm8, %v692_v53, -inf }
 0x556   :  { %490 = vmax.xlane.f32.xlu1 %v489_v49  ;;  %v693_v51 = vsel %vm488_vm8, %v691_v50, -inf }
 0x559   :  { %v6779_v52 = vpop.f32.mrb[6].mxu0  ;;  %694 = vmax.xlane.f32.xlu0 %v693_v51 }
 0x55a   :  { %v1046_v54 = vpop.f32.mrb[7].mxu0  ;;  %v1056_v20 = vmul.f32 0.35355338, %v6779_v52 }
 0x55b   :  { %v1055_v15 = vmul.f32 0.35355338, %v1046_v54 }
 0x55c   :  { %v1058_v21 = vsel %vm8117_vm7, %v1056_v20, -1e+30 }
 0x55d   :  { %697 = vmax.xlane.f32.xlu0 %v696_v55  ;;  %v1057_v18 = vsel %vm49_vm9, %v1055_v15, -1e+30  ;;  %v1062_v22 = vsel %vm488_vm8, %v1058_v21, -inf }
 0x55e   :  { %v1059_v19 = vsel %vm488_vm8, %v1057_v18, -inf }
 0x5e2   :  { %v494_v56 = vpop.xlane.xlu0 %493 }
 0x5e3   :  { %v496_v57 = vsub.f32 %v487_v45, %v494_v56  ;;  %v491_v58 = vpop.xlane.xlu1 %490 }
 0x5e4   :  { %v495_v59 = vsub.f32 %v486_v47, %v491_v58 }
 0x5e5   :  { %v499_v60 = vmul.f32 1.442695, %v496_v57 }
 0x5e6   :  { %v497_v61 = vmul.f32 1.442695, %v495_v59  ;;  %v695_v62 = vpop.xlane.xlu0 %694 }
 0x5e7   :  { %7725 = vpow2.f32 %v499_v60  ;;  %v699_v63 = vsub.f32 %v691_v50, %v695_v62  ;;  %v260_v60 = vld [vmem:[#allocation2 + $0x28] sm:$0xff] }
 0x5e8   :  { %7727 = vpow2.f32 %v497_v61  ;;  %v259_v61 = vld [vmem:[#allocation2 + $0x20] sm:$0xff] }
 0x5e9   :  { %v701_v0 = vmul.f32 1.442695, %v699_v63 }
 0x5ea   :  { %v698_v1 = vpop.xlane.xlu0 %697 }
 0x5eb   :  { %7729 = vpow2.f32 %v701_v0  ;;  %v700_v2 = vsub.f32 %v692_v53, %v698_v1 }
 0x5ed   :  { %v703_v3 = vmul.f32 1.442695, %v700_v2 }
 0x5ef   :  { %7731 = vpow2.f32 %v703_v3 }
 0x5f1   :  { %v7726_v4 = vpop.eup %7725 }
 0x5f2   :  { %v7728_v5 = vpop.eup %7727  ;;  %v504_v6 = vsel %vm488_vm8, %v7726_v4, 0.0 }
 0x5f3   :  { %505 = vadd.xlane.f32.xlu0 %v504_v6  ;;  %v501_v8 = vsel %vm488_vm8, %v7728_v5, 0.0 }
 0x5f4   :  { %502 = vadd.xlane.f32.xlu1 %v501_v8 }
 0x5f5   :  { %v7730_v9 = vpop.eup %7729 }
 0x5f6   :  { %v705_v10 = vsel %vm488_vm8, %v7730_v9, 0.0 }
 0x5f8   :  { %706 = vadd.xlane.f32.xlu1 %v705_v10 }
 0x5f9   :  { %v7732_v12 = vpop.eup %7731 }
 0x5fa   :  { %v708_v13 = vsel %vm488_vm8, %v7732_v12, 0.0 }
 0x5fb   :  { %709 = vadd.xlane.f32.xlu0 %v708_v13 }
 0x609   :  { %7572 = vrot.lane.b32.xlu1 %v8073_v17, %s7928_s27 }
 0x60d   :  { %7582 = vrot.lane.b32.xlu1 %v8073_v17, %s7929_s28 }
 0x611   :  { %7577 = vrot.lane.b32.xlu0 %v8073_v17, %s7930_s29  ;;  %1251 = vrot.lane.b32.xlu1 %v8067_v16, %s7931_s30 }
 0x615   :  { %1253 = vrot.lane.b32.xlu1 %v8065_v14, %s7931_s30 }
 0x630   :  { %1060 = vmax.xlane.f32.xlu0 %v1059_v19 }
 0x639   :  { %1063 = vmax.xlane.f32.xlu1 %v1062_v22 }
 0x680   :  { %v506_v23 = vpop.xlane.xlu0 %505 }
 0x681   :  { %v503_v25 = vpop.xlane.xlu1 %502 }
 0x682   :  { %7733 = vrcp.f32 %v503_v25 }
 0x683   :  { %7735 = vrcp.f32 %v506_v23 }
 0x685   :  { %v707_v16 = vpop.xlane.xlu1 %706 }
 0x686   :  { %7737 = vrcp.f32 %v707_v16  ;;  %v261_v16 = vld [vmem:[#allocation2 + $0x30] sm:$0xff] }
 0x688   :  { %v710_v14 = vpop.xlane.xlu0 %709 }
 0x689   :  { %7739 = vrcp.f32 %v710_v14  ;;  %v7573_v26 = vpop.permute.xlu1 %7572 }
 0x68a   :  { %v7575_v27 = vunpack.i.h.bf16 %v7573_v26  ;;  %v7574_v28 = vunpack.i.l.bf16 %v7573_v26 }
 0x68c   :  { %v7734_v29 = vpop.eup %7733  ;;  %v7578_v30 = vpop.permute.xlu0 %7577  ;;  %v7231_v31 = vpack.c.bf16 %v7575_v27, %v7574_v28 }
 0x68d   :  { %v7736_v32 = vpop.eup %7735  ;;  %v7580_v33 = vunpack.i.h.bf16 %v7578_v30  ;;  %v7579_v34 = vunpack.i.l.bf16 %v7578_v30  ;;  %v7583_v35 = vpop.permute.xlu1 %7582  ;;  %v509_v37 = vmul.f32 %v7734_v29, %v7728_v5 }
 0x68e   :  { %v7585_v39 = vunpack.i.h.bf16 %v7583_v35  ;;  %v7584_v40 = vunpack.i.l.bf16 %v7583_v35  ;;  %7232 = vmatprep.subr.bf16.mxu1 %v7231_v31  ;;  %v510_v44 = vmul.f32 %v7736_v32, %v7726_v4 }
 0x68f   :  { %7234 = vmatpush3.bf16.msra.mxu1 %v7231_v31  ;;  %6746 = vmatprep.mubr.msk.f32.mxu1 %vm488_vm8, %v509_v37  ;;  %v7241_v41 = vpack.c.bf16 %v7580_v33, %v7579_v34 }
 0x690   :  { %v7738_v42 = vpop.eup %7737  ;;  %v7255_v43 = vpack.c.bf16 %v7585_v39, %v7584_v40 }
 0x691   :  { %v1252_v45 = vpop.permute.xlu1 %1251  ;;  %7242 = vmatprep.subr.bf16.mxu1 %v7241_v41  ;;  %v713_v46 = vmul.f32 %v7738_v42, %v7730_v9 }
 0x692   :  { %6747 = vmatmul.mubr.msk.f32.vlgmr.msra.gmra.mrb[2].mxu1 %vm488_vm8, %v510_v44  ;;  %7257 = vmatprep.subr.msk.bf16.mxu0 %vm8091_vm4, %v7255_v43 }
 0x693   :  { %v7740_v47 = vpop.eup %7739  ;;  %6796 = vmatprep.mubr.msk.f32.mxu0 %vm400_vm3, %v1252_v45  ;;  %7244 = vmatpush3.bf16.msra.mxu1 %v7241_v41  ;;  %v262_v45 = vld [vmem:[#allocation2 + $0x38] sm:$0xff] }
 0x694   :  { %6760 = vmatprep.mubr.msk.f32.mxu1 %vm488_vm8, %v713_v46  ;;  %7260 = vmatpush3.bf16.xpose.msk.msra.mxu0 %vm8091_vm4, %v7255_v43  ;;  %v714_v48 = vmul.f32 %v7740_v47, %v7732_v12 }
 0x695   :  { %v1254_v49 = vpop.permute.xlu1 %1253  ;;  %6763 = vmatprep.subr.mxu1 %v260_v60 }
 0x696   :  { %6761 = vmatmul.mubr.msk.f32.vlgmr.msra.gmra.mrb[4].mxu1 %vm488_vm8, %v714_v48 }
 0x697   :  { %6764 = vmatpush3.msra.mxu1 %v260_v60  ;;  %v6285_v60 = vld [vmem:[%s8719_s5 + $0x1] ss:$0 sm:$0xff] }
 0x698   :  { %6768 = vmatprep.subr.mxu1 %v259_v61 }
 0x69b   :  { %6797 = vmatmul.mubr.msk.f32.vlgmr.msra.gmra.mrb[8].mxu0 %vm400_vm3, %v1254_v49  ;;  %v263_v49 = vld [vmem:[#allocation2 + $0x40] sm:$0xff] }
 0x6bd   :  { %v1061_v50 = vpop.xlane.xlu0 %1060 }
 0x6be   :  { %v1065_v51 = vsub.f32 %v1057_v18, %v1061_v50  ;;  %v264_v50 = vld [vmem:[#allocation2 + $0x48] sm:$0xff] }
 0x6c0   :  { %v1067_v54 = vmul.f32 1.442695, %v1065_v51  ;;  %v7265_v51 = vpack.c.bf16 %v264_v50, %v263_v49 }
 0x6c2   :  { %7266 = vmatprep.subr.bf16.mxu0 %v7265_v51 }
 0x6c3   :  { %7268 = vmatpush3.bf16.msra.mxu0 %v7265_v51 }
 0x6c6   :  { %v1064_v52 = vpop.xlane.xlu1 %1063 }
 0x6c7   :  { %v1066_v53 = vsub.f32 %v1058_v21, %v1064_v52 }
 0x6c9   :  { %v1069_v55 = vmul.f32 1.442695, %v1066_v53 }
 0x6cb   :  { %7741 = vpow2.f32 %v1069_v55  ;;  %v266_v55 = vld [vmem:[#allocation2 + $0x58] sm:$0xff] }
 0x6cc   :  { %7743 = vpow2.f32 %v1067_v54  ;;  %v265_v54 = vld [vmem:[#allocation2 + $0x50] sm:$0xff] }
 0x6d5   :  { %v7742_v56 = vpop.eup %7741 }
 0x6d6   :  { %v1074_v57 = vsel %vm488_vm8, %v7742_v56, 0.0  ;;  %v7744_v58 = vpop.eup %7743 }
 0x6d7   :  { %1075 = vadd.xlane.f32.xlu0 %v1074_v57  ;;  %v1071_v59 = vsel %vm488_vm8, %v7744_v58, 0.0  ;;  %v267_v57 = vld [vmem:[#allocation2 + $0x60] sm:$0xff] }
 0x6db   :  { %1072 = vadd.xlane.f32.xlu0 %v1071_v59 }
 0x6f1   :  { %7587 = vrot.lane.b32.xlu0 %v8073_v17, %s7932_s7 }
 0x764   :  { %v1076_v62 = vpop.xlane.xlu0 %1075 }
 0x765   :  { %v6748_v63 = vpop.f32.mrb[2].mxu1  ;;  %7745 = vrcp.f32 %v1076_v62 }
 0x766   :  { %v589_v0 = vpop.f32.mrb[3].mxu1 }
 0x768   :  { %v1073_v1 = vpop.xlane.xlu0 %1072 }
 0x769   :  { %7747 = vrcp.f32 %v1073_v1  ;;  %v6762_v2 = vpop.f32.mrb[4].mxu1 }
 0x76a   :  { %v793_v3 = vpop.f32.mrb[5].mxu1 }
 0x76b   :  { %6765 = vmatprep.mubr.msk.f32.mxu1 %vm400_vm3, %v793_v3  ;;  %v269_v3 = vld [vmem:[#allocation2 + $0x70] sm:$0xff] }
 0x76c   :  { %v7588_v4 = vpop.permute.xlu0 %7587  ;;  %6766 = vmatmul.mubr.msk.f32.vlgmr.msra.gmra.mrb[6].mxu1 %vm400_vm3, %v6762_v2 }
 0x76d   :  { %v7590_v5 = vunpack.i.h.bf16 %v7588_v4  ;;  %v7589_v6 = vunpack.i.l.bf16 %v7588_v4  ;;  %6770 = vmatprep.mubr.msk.f32.mxu1 %vm400_vm3, %v589_v0  ;;  %6769 = vmatpush3.msra.mxu1 %v259_v61  ;;  %v270_v4 = vld [vmem:[#allocation2 + $0x78] sm:$0xff] }
 0x76e   :  { %v6798_v8 = vpop.f32.mrb[8].mxu0 }
 0x76f   :  { %v1333_v9 = vpop.f32.mrb[9].mxu0  ;;  %v7251_v10 = vpack.c.bf16 %v7590_v5, %v7589_v6  ;;  %v1343_v12 = vmul.f32 0.35355338, %v6798_v8  ;;  %v7746_v15 = vpop.eup %7745  ;;  %v7277_v5 = vpack.c.bf16 %v270_v4, %v269_v3  ;;  %v6286_v6 = vld [vmem:[%s8719_s5 + $0x2] ss:$0 sm:$0xff] }
 0x770   :  { %v1342_v13 = vmul.f32 0.35355338, %v1333_v9  ;;  %v1080_v23 = vmul.f32 %v7746_v15, %v7742_v56  ;;  %v7269_v56 = vpack.c.bf16 %v266_v55, %v265_v54 }
 0x771   :  { %7252 = vmatprep.subr.bf16.mxu1 %v7251_v10  ;;  %v1345_v22 = vsel %vm8117_vm7, %v1343_v12, -1e+30 }
 0x772   :  { %v1344_v18 = vsel %vm49_vm9, %v1342_v13, -1e+30  ;;  %v1349_v25 = vsel %vm488_vm8, %v1345_v22, -inf  ;;  %7270 = vmatprep.subr.bf16.mxu0 %v7269_v56  ;;  %v6289_v13 = vld [vmem:[%s8719_s5 + $0x3] ss:$0 sm:$0xff] }
 0x773   :  { %v7748_v19 = vpop.eup %7747  ;;  %v1346_v20 = vsel %vm488_vm8, %v1344_v18, -inf  ;;  %7272 = vmatpush3.bf16.msra.mxu0 %v7269_v56 }
 0x774   :  { %1347 = vmax.xlane.f32.xlu1 %v1346_v20  ;;  %6771 = vmatmul.mubr.msk.f32.vlgmr.msra.gmra.mrb[6].mxu1 %vm400_vm3, %v6748_v63  ;;  %v1079_v21 = vmul.f32 %v7748_v19, %v7744_v58  ;;  %v268_v58 = vld [vmem:[#allocation2 + $0x68] sm:$0xff] }
 0x775   :  { %7254 = vmatpush3.bf16.msra.mxu1 %v7251_v10  ;;  %v7273_v59 = vpack.c.bf16 %v268_v58, %v267_v57 }
 0x776   :  { %6784 = vmatprep.mubr.msk.f32.mxu1 %vm488_vm8, %v1079_v21  ;;  %6787 = vmatprep.subr.mxu1 %v261_v16 }
 0x778   :  { %1350 = vmax.xlane.f32.xlu1 %v1349_v25  ;;  %6785 = vmatmul.mubr.msk.f32.vlgmr.msra.gmra.mrb[8].mxu1 %vm488_vm8, %v1080_v23 }
 0x779   :  { %6788 = vmatpush3.msra.mxu1 %v261_v16 }
 0x801   :  { %v1348_v14 = vpop.xlane.xlu1 %1347 }
 0x802   :  { %v1352_v26 = vsub.f32 %v1344_v18, %v1348_v14 }
 0x804   :  { %v1354_v29 = vmul.f32 1.442695, %v1352_v26 }
 0x805   :  { %v1351_v27 = vpop.xlane.xlu1 %1350 }
 0x806   :  { %v1353_v28 = vsub.f32 %v1345_v22, %v1351_v27 }
 0x808   :  { %v1356_v30 = vmul.f32 1.442695, %v1353_v28 }
 0x80a   :  { %7749 = vpow2.f32 %v1356_v30 }
 0x80b   :  { %7751 = vpow2.f32 %v1354_v29 }
 0x814   :  { %v7750_v31 = vpop.eup %7749 }
 0x815   :  { %v1361_v32 = vsel %vm488_vm8, %v7750_v31, 0.0  ;;  %v7752_v33 = vpop.eup %7751 }
 0x816   :  { %1362 = vadd.xlane.f32.xlu1 %v1361_v32  ;;  %v1358_v34 = vsel %vm488_vm8, %v7752_v33, 0.0 }
 0x81a   :  { %1359 = vadd.xlane.f32.xlu1 %v1358_v34 }
 0x82b   :  { %7592 = vrot.lane.b32.xlu1 %v8073_v17, %s7933_s8 }
 0x84b   :  { %v6786_v35 = vpop.f32.mrb[8].mxu1 }
 0x84c   :  { %v1159_v37 = vpop.f32.mrb[9].mxu1 }
 0x84d   :  { %6789 = vmatprep.mubr.msk.f32.mxu1 %vm400_vm3, %v1159_v37 }
 0x84e   :  { %6790 = vmatmul.mubr.msk.f32.vlgmr.msra.gmra.mrb[6].mxu1 %vm400_vm3, %v6786_v35 }
 0x8a3   :  { %v1363_v39 = vpop.xlane.xlu1 %1362 }
 0x8a4   :  { %7753 = vrcp.f32 %v1363_v39 }
 0x8a7   :  { %v1360_v40 = vpop.xlane.xlu1 %1359 }
 0x8a8   :  { %7755 = vrcp.f32 %v1360_v40 }
 0x8ab   :  { %v7593_v41 = vpop.permute.xlu1 %7592 }
 0x8ac   :  { %v7595_v42 = vunpack.i.h.bf16 %v7593_v41  ;;  %v7594_v43 = vunpack.i.l.bf16 %v7593_v41 }
 0x8ae   :  { %v7261_v44 = vpack.c.bf16 %v7595_v42, %v7594_v43  ;;  %v7754_v46 = vpop.eup %7753 }
 0x8af   :  { %v1367_v48 = vmul.f32 %v7754_v46, %v7750_v31 }
 0x8b0   :  { %7262 = vmatprep.subr.bf16.mxu1 %v7261_v44 }
 0x8b1   :  { %7264 = vmatpush3.bf16.msra.mxu1 %v7261_v44 }
 0x8b2   :  { %v7756_v47 = vpop.eup %7755  ;;  %6806 = vmatprep.subr.mxu1 %v262_v45 }
 0x8b3   :  { %v1366_v17 = vmul.f32 %v7756_v47, %v7752_v33 }
 0x8b5   :  { %6803 = vmatprep.mubr.msk.f32.mxu1 %vm488_vm8, %v1366_v17 }
 0x8b6   :  { %6804 = vmatmul.mubr.msk.f32.vlgmr.msra.gmra.mrb[10].mxu1 %vm488_vm8, %v1367_v48 }
 0x8b7   :  { %6807 = vmatpush3.msra.mxu1 %v262_v45 }
 0x8b8   :  { %7274 = vmatprep.subr.bf16.mxu1 %v7273_v59 }
 0x989   :  { %v6805_v52 = vpop.f32.mrb[10].mxu1 }
 0x98a   :  { %v1446_v53 = vpop.f32.mrb[11].mxu1 }
 0x98b   :  { %6808 = vmatprep.mubr.msk.f32.mxu1 %vm400_vm3, %v1446_v53 }
 0x98c   :  { %6809 = vmatmul.mubr.msk.f32.vlgmr.msra.gmra.mrb[6].mxu1 %vm400_vm3, %v6805_v52 }
 0x98d   :  { %7276 = vmatpush3.bf16.msra.mxu1 %v7273_v59 }
 0x98e   :  { %7278 = vmatprep.subr.bf16.mxu1 %v7277_v5 }
 0x991   :  { %7280 = vmatpush3.bf16.msra.mxu1 %v7277_v5 }
 0xa5f   :  { %v6810_v61 = vpop.f32.mrb[6].mxu1 }
 0xa60   :  { %v1543_v62 = vadd.f32 %v6810_v61, %v6285_v60  ;;  %v1527_v63 = vpop.f32.mrb[7].mxu1 }
 0xa61   :  { %v1542_v0 = vadd.f32 %v6285_v60, %v1527_v63 }
 0xa62   :  { %v8197_v2 = vadd.f32 %v1543_v62, %v8058_v11 }
 0xa63   :  { %v8194_v1 = vadd.f32 %v1542_v0, %v8050_v7 }
 0xa65   :  { %6819 = vmatprep.mubr.msk.f32.mxu0 %vm312_vm2, %v8194_v1 }
 0xa66   :  { %6820 = vmatmul.mubr.msk.f32.vlgmr.msra.gmra.mrb[10].mxu0 %vm312_vm2, %v8197_v2 }
 0xb39   :  { %v6821_v8 = vpop.f32.mrb[10].mxu0 }
 0xb3a   :  { %v1622_v9 = vpop.f32.mrb[11].mxu0  ;;  %v1628_v12 = vadd.f32 %v6821_v8, %v6286_v6 }
 0xb3b   :  { %v1623_v10 = vadd.f32 %v6286_v6, %v1622_v9 }
 0xb3d   :  { %6830 = vmatprep.mubr.msk.f32.mxu1 %vm312_vm2, %v1623_v10 }
 0xb3e   :  { %6831 = vmatmul.mubr.msk.f32.vlgmr.msra.gmra.mrb[12].mxu1 %vm312_vm2, %v1628_v12 }
 0xc11   :  { %v6832_v15 = vpop.f32.mrb[12].mxu1 }
 0xc12   :  { %v8211_v18 = vadd.f32 %v6832_v15, %v6289_v13  ;;  %v1707_v19 = vpop.f32.mrb[13].mxu1 }
 0xc13   :  { %v8213_v20 = vadd.f32 %v6289_v13, %v1707_v19 }
 0xc14   :  { %1920 = vrot.lane.b32.xlu1 %v8211_v18, %s7925_s24 }
 0xc15   :  { %6837 = vmatprep.mubr.msk.f32.mxu0 %vm400_vm3, %v8213_v20  ;;  %v8221_v21 = vpack.i.bf16 %v8211_v18, %v8213_v20 }
 0xc17   :  { %7597 = vrot.lane.b32.xlu0 %v8221_v21, %s7923_s18 }
 0xc18   :  { %2284 = vrot.lane.b32.xlu1 %v8213_v20, %s7926_s25 }
 0xc1b   :  { %7602 = vrot.lane.b32.xlu0 %v8221_v21, %s7924_s1 }
 0xc1f   :  { %1918 = vrot.lane.b32.xlu0 %v8213_v20, %s7925_s24 }
 0xc23   :  { %7607 = vrot.lane.b32.xlu0 %v8221_v21, %s7927_s26 }
 0xc27   :  { %2286 = vrot.lane.b32.xlu0 %v8211_v18, %s7926_s25 }
 0xc86   :  { %v1921_v33 = vpop.permute.xlu1 %1920 }
 0xc89   :  { %v7598_v22 = vpop.permute.xlu0 %7597 }
 0xc8a   :  { %v7600_v23 = vunpack.i.h.bf16 %v7598_v22  ;;  %v7599_v25 = vunpack.i.l.bf16 %v7598_v22  ;;  %v2285_v35 = vpop.permute.xlu1 %2284 }
 0xc8c   :  { %v7281_v16 = vpack.c.bf16 %v7600_v23, %v7599_v25 }
 0xc8d   :  { %v7603_v14 = vpop.permute.xlu0 %7602 }
 0xc8e   :  { %v7605_v26 = vunpack.i.h.bf16 %v7603_v14  ;;  %v7604_v27 = vunpack.i.l.bf16 %v7603_v14  ;;  %7283 = vmatprep.subr.msk.bf16.mxu0 %vm8091_vm4, %v7281_v16 }
 0xc8f   :  { %7286 = vmatpush3.bf16.xpose.msk.msra.mxu0 %vm8091_vm4, %v7281_v16 }
 0xc90   :  { %v7291_v28 = vpack.c.bf16 %v7605_v26, %v7604_v27 }
 0xc91   :  { %v1919_v29 = vpop.permute.xlu0 %1918 }
 0xc92   :  { %7293 = vmatprep.subr.msk.bf16.mxu0 %vm8091_vm4, %v7291_v28 }
 0xc95   :  { %v7608_v30 = vpop.permute.xlu0 %7607 }
 0xc96   :  { %v7610_v31 = vunpack.i.h.bf16 %v7608_v30  ;;  %v7609_v32 = vunpack.i.l.bf16 %v7608_v30  ;;  %6838 = vmatmul.mubr.msk.f32.vlgmr.msra.gmra.mrb[12].mxu0 %vm400_vm3, %v8211_v18 }
 0xc97   :  { %7296 = vmatpush3.bf16.xpose.msk.msra.mxu0 %vm8091_vm4, %v7291_v28  ;;  %6851 = vmatprep.mubr.msk.f32.mxu0 %vm400_vm3, %v1919_v29 }
 0xc98   :  { %v7301_v34 = vpack.c.bf16 %v7610_v31, %v7609_v32 }
 0xc99   :  { %v2287_v37 = vpop.permute.xlu0 %2286 }
 0xc9a   :  { %7303 = vmatprep.subr.msk.bf16.mxu0 %vm8091_vm4, %v7301_v34 }
 0xc9e   :  { %6852 = vmatmul.mubr.msk.f32.vlgmr.msra.gmra.mrb[14].mxu0 %vm400_vm3, %v1921_v33 }
 0xc9f   :  { %7306 = vmatpush3.bf16.xpose.msk.msra.mxu0 %vm8091_vm4, %v7301_v34  ;;  %6875 = vmatprep.mubr.msk.f32.mxu0 %vm400_vm3, %v2285_v35 }
 0xca6   :  { %6876 = vmatmul.mubr.msk.f32.vlgmr.msra.gmra.mrb[16].mxu0 %vm400_vm3, %v2287_v37 }
 0xd69   :  { %v6839_v39 = vpop.f32.mrb[12].mxu0 }
 0xd6a   :  { %v1806_v40 = vmul.f32 0.35355338, %v6839_v39  ;;  %v1796_v41 = vpop.f32.mrb[13].mxu0 }
 0xd6b   :  { %v1805_v42 = vmul.f32 0.35355338, %v1796_v41 }
 0xd6c   :  { %v1808_v43 = vsel %vm8117_vm7, %v1806_v40, -1e+30 }
 0xd6d   :  { %v1812_v44 = vsel %vm488_vm8, %v1808_v43, -inf  ;;  %v1807_v45 = vsel %vm49_vm9, %v1805_v42, -1e+30 }
 0xd6e   :  { %1813 = vmax.xlane.f32.xlu0 %v1812_v44  ;;  %v1809_v46 = vsel %vm488_vm8, %v1807_v45, -inf }
 0xd6f   :  { %1810 = vmax.xlane.f32.xlu1 %v1809_v46 }
 0xd71   :  { %v6853_v47 = vpop.f32.mrb[14].mxu0 }
 0xd72   :  { %v2000_v17 = vpop.f32.mrb[15].mxu0  ;;  %v2010_v48 = vmul.f32 0.35355338, %v6853_v47 }
 0xd73   :  { %v2009_v49 = vmul.f32 0.35355338, %v2000_v17 }
 0xd74   :  { %v2012_v52 = vsel %vm8117_vm7, %v2010_v48, -1e+30 }
 0xd75   :  { %v2011_v50 = vsel %vm49_vm9, %v2009_v49, -1e+30  ;;  %v2016_v55 = vsel %vm488_vm8, %v2012_v52, -inf }
 0xd76   :  { %v2013_v51 = vsel %vm488_vm8, %v2011_v50, -inf }
 0xd77   :  { %2014 = vmax.xlane.f32.xlu0 %v2013_v51 }
 0xd79   :  { %v6877_v53 = vpop.f32.mrb[16].mxu0 }
 0xd7a   :  { %v2366_v54 = vpop.f32.mrb[17].mxu0  ;;  %v2376_v16 = vmul.f32 0.35355338, %v6877_v53 }
 0xd7b   :  { %2017 = vmax.xlane.f32.xlu0 %v2016_v55  ;;  %v2375_v22 = vmul.f32 0.35355338, %v2366_v54 }
 0xd7c   :  { %v2378_v14 = vsel %vm8117_vm7, %v2376_v16, -1e+30 }
 0xd7d   :  { %v2377_v23 = vsel %vm49_vm9, %v2375_v22, -1e+30  ;;  %v2382_v26 = vsel %vm488_vm8, %v2378_v14, -inf }
 0xd7e   :  { %v2379_v25 = vsel %vm488_vm8, %v2377_v23, -inf }
 0xdfb   :  { %v1814_v56 = vpop.xlane.xlu0 %1813 }
 0xdfc   :  { %v1816_v57 = vsub.f32 %v1808_v43, %v1814_v56  ;;  %v1811_v58 = vpop.xlane.xlu1 %1810 }
 0xdfd   :  { %v1815_v59 = vsub.f32 %v1807_v45, %v1811_v58 }
 0xdfe   :  { %v1819_v60 = vmul.f32 1.442695, %v1816_v57 }
 0xdff   :  { %v1817_v61 = vmul.f32 1.442695, %v1815_v59 }
 0xe00   :  { %7757 = vpow2.f32 %v1819_v60 }
 0xe01   :  { %7759 = vpow2.f32 %v1817_v61 }
 0xe04   :  { %v2015_v62 = vpop.xlane.xlu0 %2014 }
 0xe05   :  { %v2019_v63 = vsub.f32 %v2011_v50, %v2015_v62  ;;  %v272_v62 = vld [vmem:[#allocation2 + $0x88] sm:$0xff] }
 0xe07   :  { %v2021_v0 = vmul.f32 1.442695, %v2019_v63  ;;  %v271_v63 = vld [vmem:[#allocation2 + $0x80] sm:$0xff] }
 0xe08   :  { %v2018_v3 = vpop.xlane.xlu0 %2017 }
 0xe09   :  { %7761 = vpow2.f32 %v2021_v0  ;;  %v2020_v4 = vsub.f32 %v2012_v52, %v2018_v3 }
 0xe0a   :  { %v7758_v5 = vpop.eup %7757 }
 0xe0b   :  { %v7760_v6 = vpop.eup %7759  ;;  %v2023_v8 = vmul.f32 1.442695, %v2020_v4  ;;  %v1824_v9 = vsel %vm488_vm8, %v7758_v5, 0.0 }
 0xe0c   :  { %1825 = vadd.xlane.f32.xlu0 %v1824_v9  ;;  %v1821_v10 = vsel %vm488_vm8, %v7760_v6, 0.0 }
 0xe0d   :  { %7763 = vpow2.f32 %v2023_v8  ;;  %1822 = vadd.xlane.f32.xlu1 %v1821_v10 }
 0xe13   :  { %v7762_v12 = vpop.eup %7761 }
 0xe14   :  { %v2025_v13 = vsel %vm488_vm8, %v7762_v12, 0.0 }
 0xe15   :  { %2026 = vadd.xlane.f32.xlu1 %v2025_v13 }
 0xe17   :  { %v7764_v15 = vpop.eup %7763 }
 0xe18   :  { %v2028_v19 = vsel %vm488_vm8, %v7764_v15, 0.0 }
 0xe19   :  { %2029 = vadd.xlane.f32.xlu0 %v2028_v19 }
 0xe26   :  { %7612 = vrot.lane.b32.xlu1 %v8221_v21, %s7928_s27 }
 0xe2a   :  { %7622 = vrot.lane.b32.xlu1 %v8221_v21, %s7929_s28 }
 0xe2e   :  { %2571 = vrot.lane.b32.xlu1 %v8213_v20, %s7931_s30 }
 0xe2f   :  { %7617 = vrot.lane.b32.xlu0 %v8221_v21, %s7930_s29 }
 0xe32   :  { %2573 = vrot.lane.b32.xlu1 %v8211_v18, %s7931_s30 }
 0xe4e   :  { %2380 = vmax.xlane.f32.xlu0 %v2379_v25 }
 0xe56   :  { %2383 = vmax.xlane.f32.xlu1 %v2382_v26 }
 0xe99   :  { %v1826_v27 = vpop.xlane.xlu0 %1825 }
 0xe9a   :  { %v1823_v20 = vpop.xlane.xlu1 %1822 }
 0xe9b   :  { %7765 = vrcp.f32 %v1823_v20 }
 0xe9c   :  { %7767 = vrcp.f32 %v1826_v27 }
 0xea2   :  { %v2027_v28 = vpop.xlane.xlu1 %2026 }
 0xea3   :  { %7769 = vrcp.f32 %v2027_v28 }
 0xea5   :  { %v7766_v18 = vpop.eup %7765 }
 0xea6   :  { %v2030_v29 = vpop.xlane.xlu0 %2029  ;;  %v7613_v30 = vpop.permute.xlu1 %7612  ;;  %v1829_v31 = vmul.f32 %v7766_v18, %v7760_v6 }
 0xea7   :  { %7771 = vrcp.f32 %v2030_v29  ;;  %v7615_v32 = vunpack.i.h.bf16 %v7613_v30  ;;  %v7614_v33 = vunpack.i.l.bf16 %v7613_v30  ;;  %v7768_v35 = vpop.eup %7767  ;;  %v273_v29 = vld [vmem:[#allocation2 + $0x90] sm:$0xff] }
 0xea8   :  { %6844 = vmatprep.mubr.msk.f32.mxu1 %vm488_vm8, %v1829_v31  ;;  %v1830_v47 = vmul.f32 %v7768_v35, %v7758_v5 }
 0xea9   :  { %v7287_v34 = vpack.c.bf16 %v7615_v32, %v7614_v33 }
 0xeaa   :  { %v7618_v37 = vpop.permute.xlu0 %7617  ;;  %v7623_v39 = vpop.permute.xlu1 %7622 }
 0xeab   :  { %v7620_v40 = vunpack.i.h.bf16 %v7618_v37  ;;  %v7619_v41 = vunpack.i.l.bf16 %v7618_v37  ;;  %v7625_v42 = vunpack.i.h.bf16 %v7623_v39  ;;  %v7624_v43 = vunpack.i.l.bf16 %v7623_v39  ;;  %7288 = vmatprep.subr.bf16.mxu1 %v7287_v34 }
 0xeac   :  { %7290 = vmatpush3.bf16.msra.mxu1 %v7287_v34 }
 0xead   :  { %v7770_v44 = vpop.eup %7769  ;;  %v7297_v45 = vpack.c.bf16 %v7620_v40, %v7619_v41  ;;  %v7311_v46 = vpack.c.bf16 %v7625_v42, %v7624_v43 }
 0xeae   :  { %v2572_v17 = vpop.permute.xlu1 %2571  ;;  %v2033_v48 = vmul.f32 %v7770_v44, %v7762_v12 }
 0xeaf   :  { %6845 = vmatmul.mubr.msk.f32.vlgmr.msra.gmra.mrb[14].mxu1 %vm488_vm8, %v1830_v47  ;;  %7298 = vmatprep.subr.bf16.mxu1 %v7297_v45 }
 0xeb0   :  { %7313 = vmatprep.subr.msk.bf16.mxu0 %vm8091_vm4, %v7311_v46  ;;  %6894 = vmatprep.mubr.msk.f32.mxu0 %vm400_vm3, %v2572_v17 }
 0xeb1   :  { %v7772_v49 = vpop.eup %7771  ;;  %7300 = vmatpush3.bf16.msra.mxu1 %v7297_v45  ;;  %6858 = vmatprep.mubr.msk.f32.mxu1 %vm488_vm8, %v2033_v48 }
 0xeb2   :  { %7316 = vmatpush3.bf16.xpose.msk.msra.mxu0 %vm8091_vm4, %v7311_v46  ;;  %v2034_v50 = vmul.f32 %v7772_v49, %v7764_v15  ;;  %v2574_v51 = vpop.permute.xlu1 %2573  ;;  %6861 = vmatprep.subr.mxu1 %v272_v62  ;;  %v274_v49 = vld [vmem:[#allocation2 + $0x98] sm:$0xff] }
 0xeb4   :  { %6859 = vmatmul.mubr.msk.f32.vlgmr.msra.gmra.mrb[16].mxu1 %vm488_vm8, %v2034_v50 }
 0xeb5   :  { %6862 = vmatpush3.msra.mxu1 %v272_v62 }
 0xeb6   :  { %6866 = vmatprep.subr.mxu1 %v271_v63 }
 0xeb9   :  { %6895 = vmatmul.mubr.msk.f32.vlgmr.msra.gmra.mrb[18].mxu0 %vm400_vm3, %v2574_v51 }
 0xedb   :  { %v2381_v52 = vpop.xlane.xlu0 %2380 }
 0xedc   :  { %v2385_v53 = vsub.f32 %v2377_v23, %v2381_v52 }
 0xede   :  { %v2387_v56 = vmul.f32 1.442695, %v2385_v53 }
 0xee3   :  { %v2384_v54 = vpop.xlane.xlu1 %2383 }
 0xee4   :  { %v2386_v55 = vsub.f32 %v2378_v14, %v2384_v54 }
 0xee6   :  { %v2389_v57 = vmul.f32 1.442695, %v2386_v55  ;;  %v6324_v55 = vld [vmem:[%s8719_s5 + $0x4] ss:$0 sm:$0xff] }
 0xee8   :  { %7773 = vpow2.f32 %v2389_v57 }
 0xee9   :  { %7775 = vpow2.f32 %v2387_v56 }
 0xef2   :  { %v7774_v58 = vpop.eup %7773 }
 0xef3   :  { %v2394_v59 = vsel %vm488_vm8, %v7774_v58, 0.0  ;;  %v7776_v60 = vpop.eup %7775 }
 0xef4   :  { %2395 = vadd.xlane.f32.xlu0 %v2394_v59  ;;  %v2391_v61 = vsel %vm488_vm8, %v7776_v60, 0.0 }
 0xef8   :  { %2392 = vadd.xlane.f32.xlu0 %v2391_v61 }
 0xf0e   :  { %7627 = vrot.lane.b32.xlu0 %v8221_v21, %s7932_s7 }
 0xf81   :  { %v2396_v0 = vpop.xlane.xlu0 %2395 }
 0xf82   :  { %v6846_v3 = vpop.f32.mrb[14].mxu1 }
 0xf83   :  { %v1909_v4 = vpop.f32.mrb[15].mxu1 }
 0xf85   :  { %v2393_v5 = vpop.xlane.xlu0 %2392 }
 0xf86   :  { %7777 = vrcp.f32 %v2393_v5 }
 0xf87   :  { %7779 = vrcp.f32 %v2396_v0  ;;  %v6860_v6 = vpop.f32.mrb[16].mxu1 }
 0xf88   :  { %v2113_v8 = vpop.f32.mrb[17].mxu1 }
 0xf89   :  { %v7628_v9 = vpop.permute.xlu0 %7627  ;;  %6863 = vmatprep.mubr.msk.f32.mxu1 %vm400_vm3, %v2113_v8 }
 0xf8a   :  { %v7630_v10 = vunpack.i.h.bf16 %v7628_v9  ;;  %v7629_v12 = vunpack.i.l.bf16 %v7628_v9  ;;  %6864 = vmatmul.mubr.msk.f32.vlgmr.msra.gmra.mrb[18].mxu1 %vm400_vm3, %v6860_v6 }
 0xf8b   :  { %6868 = vmatprep.mubr.msk.f32.mxu1 %vm400_vm3, %v1909_v4  ;;  %6867 = vmatpush3.msra.mxu1 %v271_v63 }
 0xf8c   :  { %v7307_v13 = vpack.c.bf16 %v7630_v10, %v7629_v12  ;;  %v6896_v15 = vpop.f32.mrb[18].mxu0 }
 0xf8d   :  { %v2653_v19 = vpop.f32.mrb[19].mxu0  ;;  %v2663_v22 = vmul.f32 0.35355338, %v6896_v15 }
 0xf8e   :  { %v2662_v23 = vmul.f32 0.35355338, %v2653_v19  ;;  %7308 = vmatprep.subr.bf16.mxu1 %v7307_v13 }
 0xf8f   :  { %v2665_v27 = vsel %vm8117_vm7, %v2663_v22, -1e+30 }
 0xf90   :  { %v7778_v25 = vpop.eup %7777  ;;  %v2664_v16 = vsel %vm49_vm9, %v2662_v23, -1e+30  ;;  %v2669_v18 = vsel %vm488_vm8, %v2665_v27, -inf }
 0xf91   :  { %v7780_v14 = vpop.eup %7779  ;;  %v2666_v26 = vsel %vm488_vm8, %v2664_v16, -inf  ;;  %v2399_v20 = vmul.f32 %v7778_v25, %v7776_v60 }
 0xf92   :  { %2667 = vmax.xlane.f32.xlu1 %v2666_v26  ;;  %6869 = vmatmul.mubr.msk.f32.vlgmr.msra.gmra.mrb[18].mxu1 %vm400_vm3, %v6846_v3  ;;  %v2400_v28 = vmul.f32 %v7780_v14, %v7774_v58  ;;  %v6326_v26 = vld [vmem:[%s8719_s5 + $0x6] ss:$0 sm:$0xff] }
 0xf93   :  { %7310 = vmatpush3.bf16.msra.mxu1 %v7307_v13  ;;  %6882 = vmatprep.mubr.msk.f32.mxu1 %vm488_vm8, %v2399_v20 }
 0xf94   :  { %6885 = vmatprep.subr.mxu1 %v273_v29 }
 0xf96   :  { %2670 = vmax.xlane.f32.xlu1 %v2669_v18  ;;  %6883 = vmatmul.mubr.msk.f32.vlgmr.msra.gmra.mrb[20].mxu1 %vm488_vm8, %v2400_v28 }
 0xf97   :  { %6886 = vmatpush3.msra.mxu1 %v273_v29 }
0x101f   :  { %v2668_v30 = vpop.xlane.xlu1 %2667 }
0x1020   :  { %v2672_v31 = vsub.f32 %v2664_v16, %v2668_v30  ;;  %v6325_v16 = vld [vmem:[%s8719_s5 + $0x5] ss:$0 sm:$0xff] }
0x1022   :  { %v2674_v34 = vmul.f32 1.442695, %v2672_v31 }
0x1023   :  { %v2671_v32 = vpop.xlane.xlu1 %2670 }
0x1024   :  { %v2673_v33 = vsub.f32 %v2665_v27, %v2671_v32 }
0x1026   :  { %v2676_v35 = vmul.f32 1.442695, %v2673_v33 }
0x1028   :  { %7781 = vpow2.f32 %v2676_v35 }
0x1029   :  { %7783 = vpow2.f32 %v2674_v34 }
0x1032   :  { %v7782_v37 = vpop.eup %7781 }
0x1033   :  { %v2681_v39 = vsel %vm488_vm8, %v7782_v37, 0.0  ;;  %v7784_v40 = vpop.eup %7783 }
0x1034   :  { %2682 = vadd.xlane.f32.xlu1 %v2681_v39  ;;  %v2678_v41 = vsel %vm488_vm8, %v7784_v40, 0.0 }
0x1038   :  { %2679 = vadd.xlane.f32.xlu1 %v2678_v41 }
0x1049   :  { %7632 = vrot.lane.b32.xlu1 %v8221_v21, %s7933_s8 }
0x1069   :  { %v6884_v42 = vpop.f32.mrb[20].mxu1 }
0x106a   :  { %v2479_v43 = vpop.f32.mrb[21].mxu1 }
0x106b   :  { %6887 = vmatprep.mubr.msk.f32.mxu1 %vm400_vm3, %v2479_v43 }
0x106c   :  { %6888 = vmatmul.mubr.msk.f32.vlgmr.msra.gmra.mrb[18].mxu1 %vm400_vm3, %v6884_v42 }
0x10c1   :  { %v2683_v44 = vpop.xlane.xlu1 %2682 }
0x10c2   :  { %7785 = vrcp.f32 %v2683_v44 }
0x10c5   :  { %v2680_v45 = vpop.xlane.xlu1 %2679 }
0x10c6   :  { %7787 = vrcp.f32 %v2680_v45 }
0x10c9   :  { %v7633_v46 = vpop.permute.xlu1 %7632 }
0x10ca   :  { %v7635_v47 = vunpack.i.h.bf16 %v7633_v46  ;;  %v7634_v17 = vunpack.i.l.bf16 %v7633_v46  ;;  %v275_v46 = vld [vmem:[#allocation2 + $0xa0] sm:$0xff] }
0x10cc   :  { %v7317_v48 = vpack.c.bf16 %v7635_v47, %v7634_v17  ;;  %v7786_v50 = vpop.eup %7785  ;;  %v276_v47 = vld [vmem:[#allocation2 + $0xa8] sm:$0xff]  ;;  %v277_v17 = vld [vmem:[#allocation2 + $0xb0] sm:$0xff] }
0x10cd   :  { %v2687_v52 = vmul.f32 %v7786_v50, %v7782_v37 }
0x10ce   :  { %7318 = vmatprep.subr.bf16.mxu1 %v7317_v48 }
0x10cf   :  { %7320 = vmatpush3.bf16.msra.mxu1 %v7317_v48  ;;  %v278_v48 = vld [vmem:[#allocation2 + $0xb8] sm:$0xff] }
0x10d0   :  { %v7788_v51 = vpop.eup %7787  ;;  %6904 = vmatprep.subr.mxu1 %v274_v49 }
0x10d1   :  { %v2686_v21 = vmul.f32 %v7788_v51, %v7784_v40 }
0x10d3   :  { %6901 = vmatprep.mubr.msk.f32.mxu1 %vm488_vm8, %v2686_v21 }
0x10d4   :  { %6902 = vmatmul.mubr.msk.f32.vlgmr.msra.gmra.mrb[22].mxu1 %vm488_vm8, %v2687_v52 }
0x10d5   :  { %6905 = vmatpush3.msra.mxu1 %v274_v49  ;;  %v7325_v49 = vpack.c.bf16 %v278_v48, %v277_v17 }
0x11a7   :  { %v6903_v53 = vpop.f32.mrb[22].mxu1 }
0x11a8   :  { %v2766_v54 = vpop.f32.mrb[23].mxu1 }
0x11a9   :  { %6906 = vmatprep.mubr.msk.f32.mxu1 %vm400_vm3, %v2766_v54 }
0x11aa   :  { %6907 = vmatmul.mubr.msk.f32.vlgmr.msra.gmra.mrb[18].mxu1 %vm400_vm3, %v6903_v53 }
0x127d   :  { %v6908_v56 = vpop.f32.mrb[18].mxu1 }
0x127e   :  { %v2863_v57 = vadd.f32 %v6908_v56, %v6324_v55  ;;  %v2847_v58 = vpop.f32.mrb[19].mxu1  ;;  %v6327_v56 = vld [vmem:[%s8719_s5 + $0x7] ss:$0 sm:$0xff] }
0x127f   :  { %v2862_v59 = vadd.f32 %v6324_v55, %v2847_v58  ;;  %v6328_v58 = vld [vmem:[%s8719_s5 + $0x8] ss:$0 sm:$0xff] }
0x1280   :  { %v2865_v60 = vadd.f32 %v2863_v57, %v8197_v2 }
0x1281   :  { %v2864_v61 = vadd.f32 %v2862_v59, %v8194_v1 }
0x1282   :  { %v2869_v62 = vsel %vm312_vm2, %v2865_v60, 0.0 }
0x1283   :  { %2870 = vadd.xlane.f32.xlu1 %v2869_v62  ;;  %v2866_v63 = vsel %vm312_vm2, %v2864_v61, 0.0 }
0x1284   :  { %2867 = vadd.xlane.f32.xlu0 %v2866_v63 }
0x1310   :  { %v2871_v0 = vpop.xlane.xlu1 %2870 }
0x1311   :  { %v2874_v3 = vmul.f32 0.03125, %v2871_v0  ;;  %v2868_v4 = vpop.xlane.xlu0 %2867 }
0x1312   :  { %v2873_v5 = vmul.f32 0.03125, %v2868_v4  ;;  %v280_v4 = vld [vmem:[#allocation2 + $0xc8] sm:$0xff] }
0x1313   :  { %v2876_v6 = vsub.f32 %v2865_v60, %v2874_v3  ;;  %v279_v3 = vld [vmem:[#allocation2 + $0xc0] sm:$0xff] }
0x1314   :  { %v2875_v8 = vsub.f32 %v2864_v61, %v2873_v5  ;;  %v7329_v5 = vpack.c.bf16 %v280_v4, %v279_v3 }
0x1315   :  { %v2878_v12 = vmul.f32 %v2876_v6, %v2876_v6 }
0x1316   :  { %v2877_v9 = vmul.f32 %v2875_v8, %v2875_v8  ;;  %7330 = vmatprep.subr.bf16.mxu1 %v7329_v5 }
0x1317   :  { %v2882_v2 = vsel %vm312_vm2, %v2878_v12, 0.0  ;;  %7332 = vmatpush3.bf16.msra.mxu1 %v7329_v5  ;;  %v284_v12 = vld [vmem:[#allocation2 + $0xe8] sm:$0xff] }
0x1318   :  { %v2879_v10 = vsel %vm312_vm2, %v2877_v9, 0.0 }
0x1319   :  { %2880 = vadd.xlane.f32.xlu0 %v2879_v10  ;;  %v283_v10 = vld [vmem:[#allocation2 + $0xe0] sm:$0xff] }
0x131d   :  { %2883 = vadd.xlane.f32.xlu0 %v2882_v2  ;;  %v7337_v2 = vpack.c.bf16 %v284_v12, %v283_v10 }
0x13a6   :  { %v2881_v1 = vpop.xlane.xlu0 %2880 }
0x13a7   :  { %v2885_v13 = vmul.f32 0.03125, %v2881_v1  ;;  %v285_v1 = vld [vmem:[#allocation2 + $0xf0] sm:$0xff] }
0x13a9   :  { %v2887_v15 = vadd.f32 1e-05, %v2885_v13  ;;  %v286_v13 = vld [vmem:[#allocation2 + $0xf8] sm:$0xff] }
0x13aa   :  { %v2884_v19 = vpop.xlane.xlu0 %2883 }
0x13ab   :  { %7789 = vrsqrt.f32 %v2887_v15  ;;  %v2886_v22 = vmul.f32 0.03125, %v2884_v19  ;;  %v7341_v15 = vpack.c.bf16 %v286_v13, %v285_v1  ;;  %v287_v19 = vld [vmem:[#allocation2 + $0x100] sm:$0xff]  ;;  %v7934_v1 = vmov -1.0  }
0x13ad   :  { %v2888_v23 = vadd.f32 1e-05, %v2886_v22  ;;  %v288_v22 = vld [vmem:[#allocation2 + $0x108] sm:$0xff] }
0x13af   :  { %7791 = vrsqrt.f32 %v2888_v23  ;;  %v7345_v23 = vpack.c.bf16 %v288_v22, %v287_v19 }
0x13b5   :  { %v7790_v25 = vpop.eup %7789 }
0x13b6   :  { %v2891_v14 = vmul.f32 %v7790_v25, %v2875_v8  ;;  %v282_v8 = vld [vmem:[#allocation2 + $0xd8] sm:$0xff]  ;;  %v289_v25 = vld [vmem:[#allocation2 + $0x110] sm:$0xff] }
0x13b8   :  { %v2897_v20 = vmul.f32 %v6325_v16, %v2891_v14 }
0x13b9   :  { %v7792_v27 = vpop.eup %7791 }
0x13ba   :  { %v2903_v28 = vadd.f32 %v6326_v26, %v2897_v20  ;;  %v2892_v18 = vmul.f32 %v7792_v27, %v2876_v6  ;;  %v281_v6 = vld [vmem:[#allocation2 + $0xd0] sm:$0xff]  ;;  %v292_v20 = vld [vmem:[#allocation2 + $0x128] sm:$0xff] }
0x13bb   :  { %v7333_v9 = vpack.c.bf16 %v282_v8, %v281_v6 }
0x13bc   :  { %v2905_v29 = vadd.f32 %v2903_v28, %v8050_v7  ;;  %v2898_v30 = vmul.f32 %v6325_v16, %v2892_v18  ;;  %v290_v16 = vld [vmem:[#allocation2 + $0x118] sm:$0xff]  ;;  %v293_v28 = vld [vmem:[#allocation2 + $0x130] sm:$0xff] }
0x13bd   :  { %7334 = vmatprep.subr.bf16.mxu1 %v7333_v9  ;;  %v7349_v14 = vpack.c.bf16 %v290_v16, %v289_v25  ;;  %v294_v18 = vld [vmem:[#allocation2 + $0x138] sm:$0xff] }
0x13be   :  { %v2907_v31 = vsel %vm312_vm2, %v2905_v29, 0.0  ;;  %v2904_v32 = vadd.f32 %v6326_v26, %v2898_v30  ;;  %7336 = vmatpush3.bf16.msra.mxu1 %v7333_v9  ;;  %v291_v26 = vld [vmem:[#allocation2 + $0x120] sm:$0xff]  ;;  %v6329_v30 = vld [vmem:[%s8719_s5 + $0x9] ss:$0 sm:$0xff] }
0x13bf   :  { %2908 = vadd.xlane.f32.xlu0 %v2907_v31  ;;  %7338 = vmatprep.subr.bf16.mxu1 %v7337_v2  ;;  %v7353_v27 = vpack.c.bf16 %v292_v20, %v291_v26 }
0x13c0   :  { %v2906_v33 = vadd.f32 %v2904_v32, %v8058_v11  ;;  %v7321_v11 = vpack.c.bf16 %v276_v47, %v275_v46 }
0x13c2   :  { %v2910_v34 = vsel %vm312_vm2, %v2906_v33, 0.0  ;;  %7322 = vmatprep.subr.bf16.mxu0 %v7321_v11  ;;  %7340 = vmatpush3.bf16.msra.mxu1 %v7337_v2 }
0x13c3   :  { %2911 = vadd.xlane.f32.xlu0 %v2910_v34  ;;  %7324 = vmatpush3.bf16.msra.mxu0 %v7321_v11 }
0x13c4   :  { %7326 = vmatprep.subr.bf16.mxu0 %v7325_v49  ;;  %7342 = vmatprep.subr.bf16.mxu1 %v7341_v15 }
0x13c6   :  { %7344 = vmatpush3.bf16.msra.mxu1 %v7341_v15 }
0x13c7   :  { %7328 = vmatpush3.bf16.msra.mxu0 %v7325_v49  ;;  %7346 = vmatprep.subr.bf16.mxu1 %v7345_v23 }
0x13ca   :  { %7348 = vmatpush3.bf16.msra.mxu1 %v7345_v23 }
0x13cb   :  { %7350 = vmatprep.subr.bf16.mxu1 %v7349_v14 }
0x13ce   :  { %7352 = vmatpush3.bf16.msra.mxu1 %v7349_v14 }
0x13cf   :  { %7354 = vmatprep.subr.bf16.mxu1 %v7353_v27 }
0x13d2   :  { %7356 = vmatpush3.bf16.msra.mxu1 %v7353_v27 }
0x144c   :  { %v2909_v35 = vpop.xlane.xlu0 %2908 }
0x144d   :  { %v2913_v37 = vmul.f32 0.03125, %v2909_v35 }
0x144f   :  { %v2915_v39 = vsub.f32 %v2905_v29, %v2913_v37  ;;  %v7357_v29 = vpack.c.bf16 %v294_v18, %v293_v28  ;;  %v6332_v18 = vld [vmem:[%s8719_s5 + $0xa] ss:$0 sm:$0xff] }
0x1450   :  { %v2912_v40 = vpop.xlane.xlu0 %2911 }
0x1451   :  { %v2914_v41 = vmul.f32 0.03125, %v2912_v40  ;;  %v2917_v42 = vmul.f32 %v2915_v39, %v2915_v39  ;;  %7358 = vmatprep.subr.bf16.mxu1 %v7357_v29 }
0x1452   :  { %7360 = vmatpush3.bf16.msra.mxu1 %v7357_v29 }
0x1453   :  { %v2916_v43 = vsub.f32 %v2906_v33, %v2914_v41  ;;  %v2919_v44 = vsel %vm312_vm2, %v2917_v42, 0.0 }
0x1454   :  { %2920 = vadd.xlane.f32.xlu0 %v2919_v44 }
0x1455   :  { %v2918_v7 = vmul.f32 %v2916_v43, %v2916_v43 }
0x1457   :  { %v2922_v45 = vsel %vm312_vm2, %v2918_v7, 0.0 }
0x1458   :  { %2923 = vadd.xlane.f32.xlu1 %v2922_v45 }
0x14e1   :  { %v2921_v50 = vpop.xlane.xlu0 %2920 }
0x14e2   :  { %v2925_v51 = vmul.f32 0.03125, %v2921_v50 }
0x14e4   :  { %v2927_v21 = vadd.f32 1e-05, %v2925_v51 }
0x14e5   :  { %v2924_v52 = vpop.xlane.xlu1 %2923 }
0x14e6   :  { %7793 = vrsqrt.f32 %v2927_v21  ;;  %v2926_v53 = vmul.f32 0.03125, %v2924_v52 }
0x14e8   :  { %v2928_v54 = vadd.f32 1e-05, %v2926_v53 }
0x14ea   :  { %7795 = vrsqrt.f32 %v2928_v54 }
0x14f0   :  { %v7794_v55 = vpop.eup %7793 }
0x14f1   :  { %v2931_v57 = vmul.f32 %v7794_v55, %v2915_v39 }
0x14f3   :  { %v2937_v59 = vmul.f32 %v6327_v56, %v2931_v57 }
0x14f4   :  { %v7796_v60 = vpop.eup %7795 }
0x14f5   :  { %v2932_v61 = vmul.f32 %v7796_v60, %v2916_v43  ;;  %v8348_v62 = vadd.f32 %v6328_v58, %v2937_v59 }
0x14f7   :  { %v2938_v63 = vmul.f32 %v6327_v56, %v2932_v61  ;;  %6917 = vmatprep.mubr.msk.f32.mxu0 %vm312_vm2, %v8348_v62 }
0x14f9   :  { %v8352_v0 = vadd.f32 %v6328_v58, %v2938_v63 }
0x14fb   :  { %6918 = vmatmul.mubr.msk.f32.vlgmr.msra.gmra.mrb[20].mxu0 %vm312_vm2, %v8352_v0 }
0x15ce   :  { %v6919_v31 = vpop.f32.mrb[20].mxu0 }
0x15cf   :  { %v3027_v32 = vadd.f32 %v6919_v31, %v6329_v30  ;;  %v3021_v33 = vpop.f32.mrb[21].mxu0 }
0x15d0   :  { %v3022_v34 = vadd.f32 %v6329_v30, %v3021_v33 }
0x15d1   :  { %v3033_v35 = vmul.f32 0.70710677, %v3027_v32  ;;  %v3031_v26 = vmul.f32 0.5, %v3027_v32 }
0x15d2   :  { %v3032_v37 = vmul.f32 0.70710677, %v3022_v34  ;;  %v3030_v16 = vmul.f32 0.5, %v3022_v34 }
0x15d3   :  { %v3039_v39 = vand.u32 2147483647, %v3033_v35  ;;  %vm3035_vm10 = vcmp.ge.f32.partialorder %v3033_v35, 0.0 }
0x15d4   :  { %v3038_v40 = vand.u32 2147483647, %v3032_v37  ;;  %vm3034_vm11 = vcmp.ge.f32.partialorder %v3032_v37, 0.0  ;;  %v3037_v13 = vsel %vm3035_vm10, 1.0, %v7934_v1 }
0x15d5   :  { %v3041_v41 = vmul.f32 0.3275911, %v3039_v39  ;;  %v3065_v7 = vsub.f32 0.0, %v3039_v39  ;;  %v3036_v22 = vsel %vm3034_vm11, 1.0, %v7934_v1 }
0x15d6   :  { %v3040_v42 = vmul.f32 0.3275911, %v3038_v40  ;;  %v3064_v45 = vsub.f32 0.0, %v3038_v40 }
0x15d7   :  { %v3043_v43 = vadd.f32 1.0, %v3041_v41  ;;  %v3067_v47 = vmul.f32 %v3065_v7, %v3039_v39 }
0x15d8   :  { %v3042_v44 = vadd.f32 1.0, %v3040_v42  ;;  %v3066_v48 = vmul.f32 %v3064_v45, %v3038_v40  ;;  %v3203_v45 = vld [vmem:[#allocation2 + $0x140] sm:$0xff] }
0x15d9   :  { %7797 = vrcp.f32 %v3043_v43  ;;  %v3070_v51 = vmul.f32 1.442695, %v3067_v47 }
0x15da   :  { %7799 = vrcp.f32 %v3042_v44  ;;  %v3068_v53 = vmul.f32 1.442695, %v3066_v48 }
0x15db   :  { %7801 = vpow2.f32 %v3070_v51 }
0x15dc   :  { %7803 = vpow2.f32 %v3068_v53 }
0x15e3   :  { %v7798_v46 = vpop.eup %7797 }
0x15e4   :  { %v7800_v11 = vpop.eup %7799  ;;  %v3047_v17 = vmul.f32 1.0614054, %v7798_v46 }
0x15e5   :  { %v3046_v49 = vmul.f32 1.0614054, %v7800_v11  ;;  %v7802_v6 = vpop.eup %7801 }
0x15e6   :  { %v3049_v50 = vadd.f32 -1.4531521, %v3047_v17  ;;  %v7804_v9 = vpop.eup %7803  ;;  %v3206_v17 = vld [vmem:[#allocation2 + $0x158] sm:$0xff] }
0x15e7   :  { %v3048_v21 = vadd.f32 -1.4531521, %v3046_v49 }
0x15e8   :  { %v3051_v52 = vmul.f32 %v7798_v46, %v3049_v50 }
0x15e9   :  { %v3050_v54 = vmul.f32 %v7800_v11, %v3048_v21 }
0x15ea   :  { %v3053_v55 = vadd.f32 1.4214138, %v3051_v52 }
0x15eb   :  { %v3052_v56 = vadd.f32 1.4214138, %v3050_v54 }
0x15ec   :  { %v3055_v57 = vmul.f32 %v7798_v46, %v3053_v55  ;;  %v6333_v55 = vld [vmem:[%s8719_s5 + $0xb] ss:$0 sm:$0xff] }
0x15ed   :  { %v3054_v58 = vmul.f32 %v7800_v11, %v3052_v56 }
0x15ee   :  { %v3057_v59 = vadd.f32 -0.28449672, %v3055_v57 }
0x15ef   :  { %v3056_v60 = vadd.f32 -0.28449672, %v3054_v58 }
0x15f0   :  { %v3059_v61 = vmul.f32 %v7798_v46, %v3057_v59  ;;  %v6334_v59 = vld [vmem:[%s8719_s5 + $0xc] ss:$0 sm:$0xff] }
0x15f1   :  { %v3058_v63 = vmul.f32 %v7800_v11, %v3056_v60 }
0x15f2   :  { %v3061_v3 = vadd.f32 0.2548296, %v3059_v61 }
0x15f3   :  { %v3060_v4 = vadd.f32 0.2548296, %v3058_v63 }
0x15f4   :  { %v3063_v5 = vmul.f32 %v7798_v46, %v3061_v3  ;;  %v3204_v46 = vld [vmem:[#allocation2 + $0x148] sm:$0xff] }
0x15f5   :  { %v3062_v8 = vmul.f32 %v7800_v11, %v3060_v4  ;;  %v7361_v47 = vpack.c.bf16 %v3204_v46, %v3203_v45  ;;  %v3205_v11 = vld [vmem:[#allocation2 + $0x150] sm:$0xff] }
0x15f6   :  { %v3073_v10 = vmul.f32 %v7802_v6, %v3063_v5  ;;  %v7365_v48 = vpack.c.bf16 %v3206_v17, %v3205_v11  ;;  %v6335_v4 = vld [vmem:[%s8719_s5 + $0x10] ss:$0 sm:$0xff] }
0x15f7   :  { %v3072_v12 = vmul.f32 %v7804_v9, %v3062_v8  ;;  %7362 = vmatprep.subr.bf16.mxu0 %v7361_v47 }
0x15f8   :  { %v3075_v2 = vsub.f32 1.0, %v3073_v10  ;;  %7364 = vmatpush3.bf16.msra.mxu0 %v7361_v47 }
0x15f9   :  { %v3074_v15 = vsub.f32 1.0, %v3072_v12  ;;  %7366 = vmatprep.subr.bf16.mxu0 %v7365_v48 }
0x15fa   :  { %v3077_v19 = vmul.f32 %v3075_v2, %v3037_v13 }
0x15fb   :  { %v3076_v23 = vmul.f32 %v3074_v15, %v3036_v22 }
0x15fc   :  { %v3079_v25 = vadd.f32 1.0, %v3077_v19  ;;  %7368 = vmatpush3.bf16.msra.mxu0 %v7365_v48 }
0x15fd   :  { %v3078_v14 = vadd.f32 1.0, %v3076_v23 }
0x15fe   :  { %v3081_v27 = vmul.f32 %v3079_v25, %v3031_v26 }
0x15ff   :  { %v3080_v20 = vmul.f32 %v3078_v14, %v3030_v16 }
0x1601   :  { %6952 = vmatprep.mubr.f32.mxu1 %v3080_v20 }
0x1602   :  { %6953 = vmatmul.mubr.f32.vlgmr.msra.gmra.mrb[24].mxu1 %v3081_v27 }
0x16d5   :  { %v6954_v28 = vpop.f32.mrb[24].mxu1 }
0x16d6   :  { %v3158_v29 = vadd.f32 %v6954_v28, %v8352_v0  ;;  %v3148_v30 = vpop.f32.mrb[25].mxu1 }
0x16d7   :  { %v3157_v31 = vadd.f32 %v3148_v30, %v8348_v62 }
0x16d8   :  { %v3164_v33 = vadd.f32 %v6332_v18, %v3158_v29 }
0x16d9   :  { %v3163_v35 = vadd.f32 %v6332_v18, %v3157_v31 }
0x16da   :  { %v3168_v34 = vsel %vm312_vm2, %v3164_v33, 0.0 }
0x16db   :  { %3169 = vadd.xlane.f32.xlu1 %v3168_v34  ;;  %v3165_v32 = vsel %vm312_vm2, %v3163_v35, 0.0 }
0x16dc   :  { %3166 = vadd.xlane.f32.xlu0 %v3165_v32 }
0x1768   :  { %v3170_v37 = vpop.xlane.xlu1 %3169 }
0x1769   :  { %v3172_v39 = vmul.f32 0.03125, %v3170_v37  ;;  %v3167_v40 = vpop.xlane.xlu0 %3166 }
0x176a   :  { %v3171_v41 = vmul.f32 0.03125, %v3167_v40 }
0x176b   :  { %v3174_v42 = vsub.f32 %v3164_v33, %v3172_v39 }
0x176c   :  { %v3173_v43 = vsub.f32 %v3163_v35, %v3171_v41 }
0x176d   :  { %v3176_v44 = vmul.f32 %v3174_v42, %v3174_v42 }
0x176e   :  { %v3175_v7 = vmul.f32 %v3173_v43, %v3173_v43 }
0x176f   :  { %v3180_v0 = vsel %vm312_vm2, %v3176_v44, 0.0 }
0x1770   :  { %3181 = vadd.xlane.f32.xlu1 %v3180_v0  ;;  %v3177_v62 = vsel %vm312_vm2, %v3175_v7, 0.0 }
0x1771   :  { %3178 = vadd.xlane.f32.xlu0 %v3177_v62 }
0x17fd   :  { %v3182_v49 = vpop.xlane.xlu1 %3181 }
0x17fe   :  { %v3184_v50 = vmul.f32 0.03125, %v3182_v49  ;;  %v3179_v51 = vpop.xlane.xlu0 %3178 }
0x17ff   :  { %v3183_v21 = vmul.f32 0.03125, %v3179_v51 }
0x1800   :  { %v3186_v52 = vadd.f32 1e-05, %v3184_v50 }
0x1801   :  { %v3185_v53 = vadd.f32 1e-05, %v3183_v21 }
0x1802   :  { %7805 = vrsqrt.f32 %v3186_v52 }
0x1803   :  { %7807 = vrsqrt.f32 %v3185_v53 }
0x180c   :  { %v7806_v54 = vpop.eup %7805 }
0x180d   :  { %v7808_v56 = vpop.eup %7807  ;;  %v3190_v57 = vmul.f32 %v7806_v54, %v3174_v42 }
0x180e   :  { %v3189_v58 = vmul.f32 %v7808_v56, %v3173_v43 }
0x180f   :  { %v3196_v60 = vmul.f32 %v6333_v55, %v3190_v57 }
0x1810   :  { %v3195_v61 = vmul.f32 %v6333_v55, %v3189_v58 }
0x1811   :  { %v8378_v3 = vadd.f32 %v6334_v59, %v3196_v60 }
0x1812   :  { %v8376_v63 = vadd.f32 %v6334_v59, %v3195_v61 }
0x1814   :  { %6963 = vmatprep.mubr.msk.f32.mxu0 %vm312_vm2, %v8376_v63 }
0x1815   :  { %6964 = vmatmul.mubr.msk.f32.vlgmr.msra.gmra.mrb[22].mxu0 %vm312_vm2, %v8378_v3 }
0x18e8   :  { %v6965_v5 = vpop.f32.mrb[22].mxu0 }
0x18e9   :  { %v8387_v6 = vadd.f32 %v6965_v5, %v6335_v4  ;;  %v3332_v8 = vpop.f32.mrb[23].mxu0 }
0x18ea   :  { %v8389_v9 = vadd.f32 %v6335_v4, %v3332_v8 }
0x18ec   :  { %6970 = vmatprep.mubr.msk.f32.mxu0 %vm400_vm3, %v8389_v9  ;;  %v8395_v10 = vpack.i.bf16 %v8387_v6, %v8389_v9 }
0x18ee   :  { %7637 = vrot.lane.b32.xlu0 %v8395_v10, %s7923_s18 }
0x18f2   :  { %7647 = vrot.lane.b32.xlu0 %v8395_v10, %s7924_s1 }
0x18f6   :  { %3543 = vrot.lane.b32.xlu0 %v8389_v9, %s7925_s24 }
0x18fa   :  { %3545 = vrot.lane.b32.xlu0 %v8387_v6, %s7925_s24 }
0x1960   :  { %v7638_v12 = vpop.permute.xlu0 %7637 }
0x1961   :  { %v7640_v2 = vunpack.i.h.bf16 %v7638_v12  ;;  %v7639_v13 = vunpack.i.l.bf16 %v7638_v12 }
0x1963   :  { %v7369_v15 = vpack.c.bf16 %v7640_v2, %v7639_v13 }
0x1964   :  { %v7648_v40 = vpop.permute.xlu0 %7647 }
0x1965   :  { %7371 = vmatprep.subr.msk.bf16.mxu0 %vm8091_vm4, %v7369_v15  ;;  %v7650_v42 = vunpack.i.h.bf16 %v7648_v40  ;;  %v7649_v43 = vunpack.i.l.bf16 %v7648_v40  ;;  %v3207_v40 = vld [vmem:[#allocation2 + $0x160] sm:$0xff] }
0x1966   :  { %7374 = vmatpush3.bf16.xpose.msk.msra.mxu0 %vm8091_vm4, %v7369_v15 }
0x1967   :  { %v7379_v62 = vpack.c.bf16 %v7650_v42, %v7649_v43 }
0x1968   :  { %v3544_v17 = vpop.permute.xlu0 %3543 }
0x196c   :  { %v3546_v48 = vpop.permute.xlu0 %3545 }
0x196d   :  { %6971 = vmatmul.mubr.msk.f32.vlgmr.msra.gmra.mrb[24].mxu0 %vm400_vm3, %v8387_v6 }
0x1a40   :  { %v6972_v19 = vpop.f32.mrb[24].mxu0 }
0x1a41   :  { %v3421_v22 = vpop.f32.mrb[25].mxu0  ;;  %v3431_v23 = vmul.f32 0.35355338, %v6972_v19 }
0x1a42   :  { %v3430_v25 = vmul.f32 0.35355338, %v3421_v22 }
0x1a43   :  { %v3433_v26 = vsel %vm8117_vm7, %v3431_v23, -1e+30 }
0x1a44   :  { %v3432_v16 = vsel %vm49_vm9, %v3430_v25, -1e+30  ;;  %v3437_v20 = vsel %vm488_vm8, %v3433_v26, -inf }
0x1a45   :  { %v3434_v14 = vsel %vm488_vm8, %v3432_v16, -inf }
0x1a46   :  { %3435 = vmax.xlane.f32.xlu1 %v3434_v14 }
0x1a4a   :  { %3438 = vmax.xlane.f32.xlu1 %v3437_v20 }
0x1ad3   :  { %v3436_v27 = vpop.xlane.xlu1 %3435 }
0x1ad4   :  { %v3440_v28 = vsub.f32 %v3432_v16, %v3436_v27 }
0x1ad6   :  { %v3442_v30 = vmul.f32 1.442695, %v3440_v28 }
0x1ad7   :  { %v3439_v18 = vpop.xlane.xlu1 %3438 }
0x1ad8   :  { %v3441_v29 = vsub.f32 %v3433_v26, %v3439_v18 }
0x1ada   :  { %v3444_v31 = vmul.f32 1.442695, %v3441_v29 }
0x1adc   :  { %7809 = vpow2.f32 %v3444_v31 }
0x1add   :  { %7811 = vpow2.f32 %v3442_v30 }
0x1ae6   :  { %v7810_v33 = vpop.eup %7809 }
0x1ae7   :  { %v3449_v35 = vsel %vm488_vm8, %v7810_v33, 0.0  ;;  %v7812_v34 = vpop.eup %7811 }
0x1ae8   :  { %3450 = vadd.xlane.f32.xlu1 %v3449_v35  ;;  %v3446_v32 = vsel %vm488_vm8, %v7812_v34, 0.0 }
0x1aec   :  { %3447 = vadd.xlane.f32.xlu1 %v3446_v32 }
0x1afd   :  { %7642 = vrot.lane.b32.xlu1 %v8395_v10, %s7928_s27 }
0x1b75   :  { %v3451_v37 = vpop.xlane.xlu1 %3450 }
0x1b76   :  { %7813 = vrcp.f32 %v3451_v37 }
0x1b79   :  { %v3448_v39 = vpop.xlane.xlu1 %3447 }
0x1b7a   :  { %7815 = vrcp.f32 %v3448_v39  ;;  %v3208_v39 = vld [vmem:[#allocation2 + $0x168] sm:$0xff] }
0x1b7b   :  { %6994 = vmatprep.subr.mxu1 %v3208_v39 }
0x1b7c   :  { %6995 = vmatpush3.msra.mxu1 %v3208_v39 }
0x1b7d   :  { %v7643_v41 = vpop.permute.xlu1 %7642  ;;  %6999 = vmatprep.subr.mxu1 %v3207_v40 }
0x1b7e   :  { %v7645_v44 = vunpack.i.h.bf16 %v7643_v41  ;;  %v7644_v7 = vunpack.i.l.bf16 %v7643_v41 }
0x1b80   :  { %v7375_v0 = vpack.c.bf16 %v7645_v44, %v7644_v7  ;;  %v7814_v45 = vpop.eup %7813 }
0x1b81   :  { %v3455_v11 = vmul.f32 %v7814_v45, %v7810_v33 }
0x1b82   :  { %7376 = vmatprep.subr.bf16.mxu0 %v7375_v0 }
0x1b83   :  { %7378 = vmatpush3.bf16.msra.mxu0 %v7375_v0 }
0x1b84   :  { %v7816_v46 = vpop.eup %7815  ;;  %7381 = vmatprep.subr.msk.bf16.mxu0 %vm8091_vm4, %v7379_v62 }
0x1b85   :  { %v3454_v47 = vmul.f32 %v7816_v46, %v7812_v34 }
0x1b87   :  { %6977 = vmatprep.mubr.msk.f32.mxu0 %vm488_vm8, %v3454_v47 }
0x1b88   :  { %6978 = vmatmul.mubr.msk.f32.vlgmr.msra.gmra.mrb[26].mxu0 %vm488_vm8, %v3455_v11 }
0x1b89   :  { %6984 = vmatprep.mubr.msk.f32.mxu0 %vm400_vm3, %v3544_v17 }
0x1b8c   :  { %7384 = vmatpush3.bf16.xpose.msk.msra.mxu0 %vm8091_vm4, %v7379_v62 }
0x1b93   :  { %6985 = vmatmul.mubr.msk.f32.vlgmr.msra.gmra.mrb[28].mxu0 %vm400_vm3, %v3546_v48 }
0x1c5b   :  { %v8429_v49 = vpop.f32.mrb[26].mxu0 }
0x1c5c   :  { %v8431_v50 = vpop.f32.mrb[27].mxu0 }
0x1c66   :  { %v6986_v51 = vpop.f32.mrb[28].mxu0 }
0x1c67   :  { %v3635_v21 = vmul.f32 0.35355338, %v6986_v51  ;;  %v3625_v52 = vpop.f32.mrb[29].mxu0 }
0x1c68   :  { %v3634_v53 = vmul.f32 0.35355338, %v3625_v52 }
0x1c69   :  { %v3637_v54 = vsel %vm8117_vm7, %v3635_v21, -1e+30 }
0x1c6a   :  { %v3641_v55 = vsel %vm488_vm8, %v3637_v54, -inf  ;;  %v3636_v56 = vsel %vm49_vm9, %v3634_v53, -1e+30 }
0x1c6b   :  { %3642 = vmax.xlane.f32.xlu0 %v3641_v55  ;;  %v3638_v57 = vsel %vm488_vm8, %v3636_v56, -inf }
0x1c6c   :  { %3639 = vmax.xlane.f32.xlu1 %v3638_v57 }
0x1c7d   :  { %7652 = vrot.lane.b32.xlu1 %v8395_v10, %s7930_s29 }
0x1c81   :  { %3909 = vrot.lane.b32.xlu1 %v8389_v9, %s7926_s25 }
0x1c85   :  { %3911 = vrot.lane.b32.xlu1 %v8387_v6, %s7926_s25 }
0x1c89   :  { %7662 = vrot.lane.b32.xlu1 %v8395_v10, %s7929_s28 }
0x1c8d   :  { %4198 = vrot.lane.b32.xlu1 %v8387_v6, %s7931_s30 }
0x1cf8   :  { %v3643_v58 = vpop.xlane.xlu0 %3642 }
0x1cf9   :  { %v3645_v59 = vsub.f32 %v3637_v54, %v3643_v58  ;;  %v3640_v60 = vpop.xlane.xlu1 %3639 }
0x1cfa   :  { %v3644_v61 = vsub.f32 %v3636_v56, %v3640_v60 }
0x1cfb   :  { %v3648_v4 = vmul.f32 1.442695, %v3645_v59 }
0x1cfc   :  { %v3646_v5 = vmul.f32 1.442695, %v3644_v61 }
0x1cfd   :  { %7817 = vpow2.f32 %v3648_v4  ;;  %v7653_v8 = vpop.permute.xlu1 %7652 }
0x1cfe   :  { %v7655_v12 = vunpack.i.h.bf16 %v7653_v8  ;;  %v7654_v2 = vunpack.i.l.bf16 %v7653_v8  ;;  %7819 = vpow2.f32 %v3646_v5 }
0x1d00   :  { %v7385_v13 = vpack.c.bf16 %v7655_v12, %v7654_v2 }
0x1d01   :  { %v3910_v23 = vpop.permute.xlu1 %3909 }
0x1d02   :  { %7386 = vmatprep.subr.bf16.mxu0 %v7385_v13 }
0x1d03   :  { %7388 = vmatpush3.bf16.msra.mxu0 %v7385_v13 }
0x1d05   :  { %v3912_v14 = vpop.permute.xlu1 %3911 }
0x1d07   :  { %v7818_v15 = vpop.eup %7817 }
0x1d08   :  { %v3653_v19 = vsel %vm488_vm8, %v7818_v15, 0.0  ;;  %v7820_v22 = vpop.eup %7819 }
0x1d09   :  { %3654 = vadd.xlane.f32.xlu0 %v3653_v19  ;;  %v3650_v6 = vsel %vm488_vm8, %v7820_v22, 0.0  ;;  %v7663_v18 = vpop.permute.xlu1 %7662 }
0x1d0a   :  { %v7665_v31 = vunpack.i.h.bf16 %v7663_v18  ;;  %v7664_v33 = vunpack.i.l.bf16 %v7663_v18 }
0x1d0c   :  { %v7399_v34 = vpack.c.bf16 %v7665_v31, %v7664_v33 }
0x1d0d   :  { %3651 = vadd.xlane.f32.xlu0 %v3650_v6  ;;  %v4199_v37 = vpop.permute.xlu1 %4198 }
0x1d23   :  { %7657 = vrot.lane.b32.xlu0 %v8395_v10, %s7927_s26 }
0x1d27   :  { %4196 = vrot.lane.b32.xlu0 %v8389_v9, %s7931_s30 }
0x1d96   :  { %v3655_v25 = vpop.xlane.xlu0 %3654 }
0x1d97   :  { %7821 = vrcp.f32 %v3655_v25 }
0x1d9a   :  { %v3652_v16 = vpop.xlane.xlu0 %3651 }
0x1d9b   :  { %7823 = vrcp.f32 %v3652_v16 }
0x1d9e   :  { %v7658_v26 = vpop.permute.xlu0 %7657 }
0x1d9f   :  { %v7660_v20 = vunpack.i.h.bf16 %v7658_v26  ;;  %v7659_v27 = vunpack.i.l.bf16 %v7658_v26 }
0x1da1   :  { %v7389_v28 = vpack.c.bf16 %v7660_v20, %v7659_v27  ;;  %v7822_v29 = vpop.eup %7821 }
0x1da2   :  { %v3659_v9 = vmul.f32 %v7822_v29, %v7818_v15  ;;  %v4197_v32 = vpop.permute.xlu0 %4196 }
0x1da3   :  { %7391 = vmatprep.subr.msk.bf16.mxu0 %vm8091_vm4, %v7389_v28 }
0x1da5   :  { %v7824_v30 = vpop.eup %7823 }
0x1da6   :  { %v3658_v35 = vmul.f32 %v7824_v30, %v7820_v22 }
0x1da8   :  { %6991 = vmatprep.mubr.msk.f32.mxu0 %vm488_vm8, %v3658_v35 }
0x1da9   :  { %6992 = vmatmul.mubr.msk.f32.vlgmr.msra.gmra.mrb[30].mxu0 %vm488_vm8, %v3659_v9 }
0x1daa   :  { %7394 = vmatpush3.bf16.xpose.msk.msra.mxu0 %vm8091_vm4, %v7389_v28  ;;  %7008 = vmatprep.mubr.msk.f32.mxu0 %vm400_vm3, %v3910_v23  ;;  %v3209_v28 = vld [vmem:[#allocation2 + $0x170] sm:$0xff] }
0x1dab   :  { %7401 = vmatprep.subr.msk.bf16.mxu0 %vm8091_vm4, %v7399_v34 }
0x1db1   :  { %7009 = vmatmul.mubr.msk.f32.vlgmr.msra.gmra.mrb[32].mxu0 %vm400_vm3, %v3912_v14 }
0x1db2   :  { %7404 = vmatpush3.bf16.xpose.msk.msra.mxu0 %vm8091_vm4, %v7399_v34  ;;  %7027 = vmatprep.mubr.msk.f32.mxu0 %vm400_vm3, %v4197_v32 }
0x1db9   :  { %7028 = vmatmul.mubr.msk.f32.vlgmr.msra.gmra.mrb[34].mxu0 %vm400_vm3, %v4199_v37 }
0x1e7c   :  { %v6993_v41 = vpop.f32.mrb[30].mxu0 }
0x1e7d   :  { %v3738_v42 = vpop.f32.mrb[31].mxu0 }
0x1e7e   :  { %6996 = vmatprep.mubr.msk.f32.mxu1 %vm400_vm3, %v3738_v42 }
0x1e7f   :  { %6997 = vmatmul.mubr.msk.f32.vlgmr.msra.gmra.mrb[26].mxu1 %vm400_vm3, %v6993_v41 }
0x1e80   :  { %7001 = vmatprep.mubr.msk.f32.mxu1 %vm400_vm3, %v8431_v50  ;;  %7000 = vmatpush3.msra.mxu1 %v3207_v40 }
0x1e84   :  { %v7010_v43 = vpop.f32.mrb[32].mxu0 }
0x1e85   :  { %v4001_v44 = vmul.f32 0.35355338, %v7010_v43  ;;  %v3991_v7 = vpop.f32.mrb[33].mxu0  ;;  %v3210_v43 = vld [vmem:[#allocation2 + $0x178] sm:$0xff] }
0x1e86   :  { %v4000_v0 = vmul.f32 0.35355338, %v3991_v7  ;;  %v3211_v7 = vld [vmem:[#allocation2 + $0x180] sm:$0xff] }
0x1e87   :  { %v4003_v62 = vsel %vm8117_vm7, %v4001_v44, -1e+30  ;;  %7002 = vmatmul.mubr.msk.f32.vlgmr.msra.gmra.mrb[26].mxu1 %vm400_vm3, %v8429_v49 }
0x1e88   :  { %v4002_v45 = vsel %vm49_vm9, %v4000_v0, -1e+30  ;;  %v4007_v46 = vsel %vm488_vm8, %v4003_v62, -inf  ;;  %v3212_v0 = vld [vmem:[#allocation2 + $0x188] sm:$0xff] }
0x1e89   :  { %4008 = vmax.xlane.f32.xlu1 %v4007_v46  ;;  %v4004_v47 = vsel %vm488_vm8, %v4002_v45, -inf }
0x1e8a   :  { %4005 = vmax.xlane.f32.xlu0 %v4004_v47  ;;  %v3213_v47 = vld [vmem:[#allocation2 + $0x190] sm:$0xff] }
0x1e8c   :  { %v7029_v11 = vpop.f32.mrb[34].mxu0 }
0x1e8d   :  { %v4278_v17 = vpop.f32.mrb[35].mxu0  ;;  %v4288_v48 = vmul.f32 0.35355338, %v7029_v11  ;;  %v3214_v11 = vld [vmem:[#allocation2 + $0x198] sm:$0xff] }
0x1e8e   :  { %v4287_v50 = vmul.f32 0.35355338, %v4278_v17  ;;  %v7413_v17 = vpack.c.bf16 %v3214_v11, %v3213_v47 }
0x1e8f   :  { %v4290_v49 = vsel %vm8117_vm7, %v4288_v48, -1e+30  ;;  %v3215_v48 = vld [vmem:[#allocation2 + $0x1a0] sm:$0xff] }
0x1e90   :  { %v4289_v51 = vsel %vm49_vm9, %v4287_v50, -1e+30  ;;  %v4294_v52 = vsel %vm488_vm8, %v4290_v49, -inf  ;;  %v3216_v50 = vld [vmem:[#allocation2 + $0x1a8] sm:$0xff] }
0x1e91   :  { %v4291_v21 = vsel %vm488_vm8, %v4289_v51, -inf }
0x1e92   :  { %4292 = vmax.xlane.f32.xlu1 %v4291_v21  ;;  %v6370_v21 = vld [vmem:[%s8719_s5 + $0x11] ss:$0 sm:$0xff] }
0x1e96   :  { %4295 = vmax.xlane.f32.xlu1 %v4294_v52 }
0x1f16   :  { %v4009_v53 = vpop.xlane.xlu1 %4008 }
0x1f17   :  { %v4011_v54 = vsub.f32 %v4003_v62, %v4009_v53  ;;  %v4006_v55 = vpop.xlane.xlu0 %4005  ;;  %v7409_v62 = vpack.c.bf16 %v3212_v0, %v3211_v7 }
0x1f18   :  { %v4010_v56 = vsub.f32 %v4002_v45, %v4006_v55 }
0x1f19   :  { %v4014_v57 = vmul.f32 1.442695, %v4011_v54  ;;  %7410 = vmatprep.subr.bf16.mxu0 %v7409_v62 }
0x1f1a   :  { %v4012_v58 = vmul.f32 1.442695, %v4010_v56  ;;  %7412 = vmatpush3.bf16.msra.mxu0 %v7409_v62 }
0x1f1b   :  { %7825 = vpow2.f32 %v4014_v57  ;;  %7414 = vmatprep.subr.bf16.mxu0 %v7413_v17  ;;  %v3217_v57 = vld [vmem:[#allocation2 + $0x1b0] sm:$0xff] }
0x1f1c   :  { %7827 = vpow2.f32 %v4012_v58  ;;  %v3218_v58 = vld [vmem:[#allocation2 + $0x1b8] sm:$0xff] }
0x1f1e   :  { %7416 = vmatpush3.bf16.msra.mxu0 %v7413_v17 }
0x1f1f   :  { %v4293_v59 = vpop.xlane.xlu1 %4292 }
0x1f20   :  { %v4297_v60 = vsub.f32 %v4289_v51, %v4293_v59  ;;  %v7417_v51 = vpack.c.bf16 %v3216_v50, %v3215_v48  ;;  %v7421_v59 = vpack.c.bf16 %v3218_v58, %v3217_v57 }
0x1f22   :  { %v4299_v8 = vmul.f32 1.442695, %v4297_v60  ;;  %v6371_v60 = vld [vmem:[%s8719_s5 + $0x12] ss:$0 sm:$0xff] }
0x1f23   :  { %v4296_v61 = vpop.xlane.xlu1 %4295 }
0x1f24   :  { %v4298_v4 = vsub.f32 %v4290_v49, %v4296_v61 }
0x1f25   :  { %v7826_v5 = vpop.eup %7825 }
0x1f26   :  { %v4301_v12 = vmul.f32 1.442695, %v4298_v4  ;;  %v4019_v2 = vsel %vm488_vm8, %v7826_v5, 0.0  ;;  %v7828_v13 = vpop.eup %7827 }
0x1f27   :  { %4020 = vadd.xlane.f32.xlu0 %v4019_v2  ;;  %v4016_v15 = vsel %vm488_vm8, %v7828_v13, 0.0 }
0x1f28   :  { %7829 = vpow2.f32 %v4301_v12  ;;  %v6374_v12 = vld [vmem:[%s8719_s5 + $0x13] ss:$0 sm:$0xff] }
0x1f29   :  { %7831 = vpow2.f32 %v4299_v8 }
0x1f2b   :  { %4017 = vadd.xlane.f32.xlu0 %v4016_v15 }
0x1f32   :  { %v7830_v19 = vpop.eup %7829 }
0x1f33   :  { %v4306_v22 = vsel %vm488_vm8, %v7830_v19, 0.0  ;;  %v7832_v6 = vpop.eup %7831 }
0x1f34   :  { %4307 = vadd.xlane.f32.xlu1 %v4306_v22  ;;  %v4303_v23 = vsel %vm488_vm8, %v7832_v6, 0.0 }
0x1f38   :  { %4304 = vadd.xlane.f32.xlu1 %v4303_v23 }
0x1f41   :  { %7667 = vrot.lane.b32.xlu0 %v8395_v10, %s7932_s7 }
0x1f49   :  { %7672 = vrot.lane.b32.xlu1 %v8395_v10, %s7933_s8 }
0x1fb4   :  { %v4021_v25 = vpop.xlane.xlu0 %4020 }
0x1fb5   :  { %7833 = vrcp.f32 %v4021_v25 }
0x1fb8   :  { %v4018_v16 = vpop.xlane.xlu0 %4017 }
0x1fb9   :  { %7835 = vrcp.f32 %v4018_v16 }
0x1fbc   :  { %v7668_v14 = vpop.permute.xlu0 %7667 }
0x1fbd   :  { %v7670_v26 = vunpack.i.h.bf16 %v7668_v14  ;;  %v7669_v20 = vunpack.i.l.bf16 %v7668_v14 }
0x1fbf   :  { %v7395_v27 = vpack.c.bf16 %v7670_v26, %v7669_v20  ;;  %v7834_v29 = vpop.eup %7833 }
0x1fc0   :  { %v4025_v33 = vmul.f32 %v7834_v29, %v7826_v5 }
0x1fc1   :  { %v4308_v18 = vpop.xlane.xlu1 %4307  ;;  %7396 = vmatprep.subr.bf16.mxu1 %v7395_v27 }
0x1fc2   :  { %7398 = vmatpush3.bf16.msra.mxu1 %v7395_v27 }
0x1fc3   :  { %v7836_v30 = vpop.eup %7835  ;;  %7018 = vmatprep.subr.mxu1 %v3209_v28 }
0x1fc4   :  { %v4024_v31 = vmul.f32 %v7836_v30, %v7828_v13 }
0x1fc5   :  { %v4305_v35 = vpop.xlane.xlu1 %4304 }
0x1fc6   :  { %7015 = vmatprep.mubr.msk.f32.mxu1 %vm488_vm8, %v4024_v31  ;;  %7837 = vrcp.f32 %v4305_v35 }
0x1fc7   :  { %7016 = vmatmul.mubr.msk.f32.vlgmr.msra.gmra.mrb[28].mxu1 %vm488_vm8, %v4025_v33  ;;  %7839 = vrcp.f32 %v4308_v18 }
0x1fc8   :  { %7019 = vmatpush3.msra.mxu1 %v3209_v28 }
0x1fc9   :  { %v7673_v10 = vpop.permute.xlu1 %7672 }
0x1fca   :  { %v7675_v9 = vunpack.i.h.bf16 %v7673_v10  ;;  %v7674_v34 = vunpack.i.l.bf16 %v7673_v10 }
0x1fcc   :  { %v7405_v32 = vpack.c.bf16 %v7675_v9, %v7674_v34 }
0x1fce   :  { %7406 = vmatprep.subr.bf16.mxu1 %v7405_v32 }
0x1fd0   :  { %v7838_v37 = vpop.eup %7837 }
0x1fd1   :  { %v7840_v41 = vpop.eup %7839  ;;  %v4311_v42 = vmul.f32 %v7838_v37, %v7832_v6 }
0x1fd2   :  { %v4312_v44 = vmul.f32 %v7840_v41, %v7830_v19 }
0x209a   :  { %v7017_v39 = vpop.f32.mrb[28].mxu1 }
0x209b   :  { %v4104_v40 = vpop.f32.mrb[29].mxu1 }
0x209c   :  { %7020 = vmatprep.mubr.msk.f32.mxu1 %vm400_vm3, %v4104_v40 }
0x209d   :  { %7021 = vmatmul.mubr.msk.f32.vlgmr.msra.gmra.mrb[26].mxu1 %vm400_vm3, %v7017_v39 }
0x209e   :  { %7408 = vmatpush3.bf16.msra.mxu1 %v7405_v32  ;;  %7034 = vmatprep.mubr.msk.f32.mxu1 %vm488_vm8, %v4311_v42 }
0x209f   :  { %7037 = vmatprep.subr.mxu1 %v3210_v43 }
0x20a1   :  { %7035 = vmatmul.mubr.msk.f32.vlgmr.msra.gmra.mrb[30].mxu1 %vm488_vm8, %v4312_v44 }
0x20a2   :  { %7038 = vmatpush3.msra.mxu1 %v3210_v43 }
0x20a3   :  { %7418 = vmatprep.subr.bf16.mxu1 %v7417_v51 }
0x2174   :  { %v7036_v45 = vpop.f32.mrb[30].mxu1 }
0x2175   :  { %v4391_v46 = vpop.f32.mrb[31].mxu1 }
0x2176   :  { %7039 = vmatprep.mubr.msk.f32.mxu1 %vm400_vm3, %v4391_v46 }
0x2177   :  { %7040 = vmatmul.mubr.msk.f32.vlgmr.msra.gmra.mrb[26].mxu1 %vm400_vm3, %v7036_v45 }
0x2178   :  { %7420 = vmatpush3.bf16.msra.mxu1 %v7417_v51 }
0x2179   :  { %7422 = vmatprep.subr.bf16.mxu1 %v7421_v59 }
0x217c   :  { %7424 = vmatpush3.bf16.msra.mxu1 %v7421_v59 }
0x224a   :  { %v7041_v49 = vpop.f32.mrb[26].mxu1 }
0x224b   :  { %v4488_v52 = vadd.f32 %v7041_v49, %v6370_v21  ;;  %v4472_v53 = vpop.f32.mrb[27].mxu1 }
0x224c   :  { %v4487_v54 = vadd.f32 %v6370_v21, %v4472_v53 }
0x224d   :  { %v8510_v56 = vadd.f32 %v4488_v52, %v8378_v3 }
0x224e   :  { %v8507_v55 = vadd.f32 %v4487_v54, %v8376_v63 }
0x2250   :  { %7050 = vmatprep.mubr.msk.f32.mxu0 %vm312_vm2, %v8507_v55 }
0x2251   :  { %7051 = vmatmul.mubr.msk.f32.vlgmr.msra.gmra.mrb[36].mxu0 %vm312_vm2, %v8510_v56 }
0x2324   :  { %v7052_v61 = vpop.f32.mrb[36].mxu0 }
0x2325   :  { %v4567_v4 = vpop.f32.mrb[37].mxu0  ;;  %v4573_v8 = vadd.f32 %v7052_v61, %v6371_v60 }
0x2326   :  { %v4568_v5 = vadd.f32 %v6371_v60, %v4567_v4 }
0x2328   :  { %7061 = vmatprep.mubr.msk.f32.mxu1 %vm312_vm2, %v4568_v5 }
0x2329   :  { %7062 = vmatmul.mubr.msk.f32.vlgmr.msra.gmra.mrb[32].mxu1 %vm312_vm2, %v4573_v8 }
0x23fc   :  { %v7063_v2 = vpop.f32.mrb[32].mxu1 }
0x23fd   :  { %v8524_v13 = vadd.f32 %v7063_v2, %v6374_v12  ;;  %v4652_v15 = vpop.f32.mrb[33].mxu1 }
0x23fe   :  { %v8526_v19 = vadd.f32 %v6374_v12, %v4652_v15 }
0x23ff   :  { %4865 = vrot.lane.b32.xlu1 %v8524_v13, %s7925_s24 }
0x2400   :  { %7068 = vmatprep.mubr.msk.f32.mxu0 %vm400_vm3, %v8526_v19  ;;  %v8534_v22 = vpack.i.bf16 %v8524_v13, %v8526_v19 }
0x2402   :  { %7677 = vrot.lane.b32.xlu0 %v8534_v22, %s7923_s18 }
0x2403   :  { %5229 = vrot.lane.b32.xlu1 %v8526_v19, %s7926_s25 }
0x2406   :  { %7682 = vrot.lane.b32.xlu0 %v8534_v22, %s7924_s1 }
0x240a   :  { %4863 = vrot.lane.b32.xlu0 %v8526_v19, %s7925_s24 }
0x240e   :  { %7687 = vrot.lane.b32.xlu0 %v8534_v22, %s7927_s26 }
0x2412   :  { %5231 = vrot.lane.b32.xlu0 %v8524_v13, %s7926_s25 }
0x2471   :  { %v4866_v31 = vpop.permute.xlu1 %4865 }
0x2474   :  { %v7678_v6 = vpop.permute.xlu0 %7677 }
0x2475   :  { %v7680_v23 = vunpack.i.h.bf16 %v7678_v6  ;;  %v7679_v25 = vunpack.i.l.bf16 %v7678_v6  ;;  %v5230_v35 = vpop.permute.xlu1 %5229 }
0x2477   :  { %v7425_v16 = vpack.c.bf16 %v7680_v23, %v7679_v25 }
0x2478   :  { %v7683_v14 = vpop.permute.xlu0 %7682 }
0x2479   :  { %v7685_v26 = vunpack.i.h.bf16 %v7683_v14  ;;  %v7684_v20 = vunpack.i.l.bf16 %v7683_v14  ;;  %7427 = vmatprep.subr.msk.bf16.mxu0 %vm8091_vm4, %v7425_v16 }
0x247a   :  { %7430 = vmatpush3.bf16.xpose.msk.msra.mxu0 %vm8091_vm4, %v7425_v16 }
0x247b   :  { %v7435_v27 = vpack.c.bf16 %v7685_v26, %v7684_v20 }
0x247c   :  { %v4864_v28 = vpop.permute.xlu0 %4863 }
0x247d   :  { %7437 = vmatprep.subr.msk.bf16.mxu0 %vm8091_vm4, %v7435_v27 }
0x2480   :  { %v7688_v18 = vpop.permute.xlu0 %7687 }
0x2481   :  { %v7690_v29 = vunpack.i.h.bf16 %v7688_v18  ;;  %v7689_v30 = vunpack.i.l.bf16 %v7688_v18  ;;  %7069 = vmatmul.mubr.msk.f32.vlgmr.msra.gmra.mrb[38].mxu0 %vm400_vm3, %v8524_v13 }
0x2482   :  { %7440 = vmatpush3.bf16.xpose.msk.msra.mxu0 %vm8091_vm4, %v7435_v27  ;;  %7082 = vmatprep.mubr.msk.f32.mxu0 %vm400_vm3, %v4864_v28 }
0x2483   :  { %v7445_v33 = vpack.c.bf16 %v7690_v29, %v7689_v30 }
0x2484   :  { %v5232_v10 = vpop.permute.xlu0 %5231 }
0x2485   :  { %7447 = vmatprep.subr.msk.bf16.mxu0 %vm8091_vm4, %v7445_v33 }
0x2489   :  { %7083 = vmatmul.mubr.msk.f32.vlgmr.msra.gmra.mrb[40].mxu0 %vm400_vm3, %v4866_v31 }
0x248a   :  { %7450 = vmatpush3.bf16.xpose.msk.msra.mxu0 %vm8091_vm4, %v7445_v33  ;;  %7106 = vmatprep.mubr.msk.f32.mxu0 %vm400_vm3, %v5230_v35 }
0x2491   :  { %7107 = vmatmul.mubr.msk.f32.vlgmr.msra.gmra.mrb[42].mxu0 %vm400_vm3, %v5232_v10 }
0x2554   :  { %v7070_v9 = vpop.f32.mrb[38].mxu0 }
0x2555   :  { %v4751_v34 = vmul.f32 0.35355338, %v7070_v9  ;;  %v4741_v32 = vpop.f32.mrb[39].mxu0 }
0x2556   :  { %v4750_v37 = vmul.f32 0.35355338, %v4741_v32 }
0x2557   :  { %v4753_v39 = vsel %vm8117_vm7, %v4751_v34, -1e+30 }
0x2558   :  { %v4752_v40 = vsel %vm49_vm9, %v4750_v37, -1e+30  ;;  %v4757_v41 = vsel %vm488_vm8, %v4753_v39, -inf }
0x2559   :  { %4758 = vmax.xlane.f32.xlu0 %v4757_v41  ;;  %v4754_v42 = vsel %vm488_vm8, %v4752_v40, -inf }
0x255a   :  { %4755 = vmax.xlane.f32.xlu1 %v4754_v42 }
0x255c   :  { %v7084_v43 = vpop.f32.mrb[40].mxu0 }
0x255d   :  { %v4945_v44 = vpop.f32.mrb[41].mxu0  ;;  %v4955_v7 = vmul.f32 0.35355338, %v7084_v43 }
0x255e   :  { %v4954_v0 = vmul.f32 0.35355338, %v4945_v44 }
0x255f   :  { %v4957_v46 = vsel %vm8117_vm7, %v4955_v7, -1e+30 }
0x2560   :  { %v4956_v62 = vsel %vm49_vm9, %v4954_v0, -1e+30  ;;  %v4961_v17 = vsel %vm488_vm8, %v4957_v46, -inf }
0x2561   :  { %v4958_v45 = vsel %vm488_vm8, %v4956_v62, -inf }
0x2562   :  { %4959 = vmax.xlane.f32.xlu0 %v4958_v45 }
0x2564   :  { %v7108_v47 = vpop.f32.mrb[42].mxu0 }
0x2565   :  { %v5311_v11 = vpop.f32.mrb[43].mxu0  ;;  %v5321_v14 = vmul.f32 0.35355338, %v7108_v47 }
0x2566   :  { %4962 = vmax.xlane.f32.xlu0 %v4961_v17  ;;  %v5320_v23 = vmul.f32 0.35355338, %v5311_v11 }
0x2567   :  { %v5323_v26 = vsel %vm8117_vm7, %v5321_v14, -1e+30 }
0x2568   :  { %v5322_v25 = vsel %vm49_vm9, %v5320_v23, -1e+30  ;;  %v5327_v20 = vsel %vm488_vm8, %v5323_v26, -inf }
0x2569   :  { %v5324_v16 = vsel %vm488_vm8, %v5322_v25, -inf }
0x25e6   :  { %v4759_v48 = vpop.xlane.xlu0 %4758 }
0x25e7   :  { %v4761_v50 = vsub.f32 %v4753_v39, %v4759_v48  ;;  %v4756_v51 = vpop.xlane.xlu1 %4755 }
0x25e8   :  { %v4760_v21 = vsub.f32 %v4752_v40, %v4756_v51 }
0x25e9   :  { %v4764_v49 = vmul.f32 1.442695, %v4761_v50 }
0x25ea   :  { %v4762_v52 = vmul.f32 1.442695, %v4760_v21 }
0x25eb   :  { %7841 = vpow2.f32 %v4764_v49 }
0x25ec   :  { %7843 = vpow2.f32 %v4762_v52 }
0x25ef   :  { %v4960_v53 = vpop.xlane.xlu0 %4959 }
0x25f0   :  { %v4964_v54 = vsub.f32 %v4956_v62, %v4960_v53  ;;  %v3220_v53 = vld [vmem:[#allocation2 + $0x1c8] sm:$0xff] }
0x25f2   :  { %v4966_v57 = vmul.f32 1.442695, %v4964_v54  ;;  %v3219_v54 = vld [vmem:[#allocation2 + $0x1c0] sm:$0xff] }
0x25f3   :  { %v4963_v58 = vpop.xlane.xlu0 %4962 }
0x25f4   :  { %7845 = vpow2.f32 %v4966_v57  ;;  %v4965_v59 = vsub.f32 %v4957_v46, %v4963_v58 }
0x25f5   :  { %v7842_v60 = vpop.eup %7841 }
0x25f6   :  { %v7844_v61 = vpop.eup %7843  ;;  %v4968_v4 = vmul.f32 1.442695, %v4965_v59  ;;  %v4769_v5 = vsel %vm488_vm8, %v7842_v60, 0.0 }
0x25f7   :  { %4770 = vadd.xlane.f32.xlu0 %v4769_v5  ;;  %v4766_v8 = vsel %vm488_vm8, %v7844_v61, 0.0 }
0x25f8   :  { %7847 = vpow2.f32 %v4968_v4  ;;  %4767 = vadd.xlane.f32.xlu1 %v4766_v8 }
0x25fe   :  { %v7846_v12 = vpop.eup %7845 }
0x25ff   :  { %v4970_v2 = vsel %vm488_vm8, %v7846_v12, 0.0 }
0x2600   :  { %4971 = vadd.xlane.f32.xlu1 %v4970_v2 }
0x2602   :  { %v7848_v15 = vpop.eup %7847 }
0x2603   :  { %v4973_v6 = vsel %vm488_vm8, %v7848_v15, 0.0 }
0x2604   :  { %4974 = vadd.xlane.f32.xlu0 %v4973_v6 }
0x2611   :  { %7692 = vrot.lane.b32.xlu1 %v8534_v22, %s7928_s27 }
0x2615   :  { %7702 = vrot.lane.b32.xlu1 %v8534_v22, %s7929_s28 }
0x2619   :  { %5516 = vrot.lane.b32.xlu1 %v8526_v19, %s7931_s30 }
0x261a   :  { %7697 = vrot.lane.b32.xlu0 %v8534_v22, %s7930_s29 }
0x261d   :  { %5518 = vrot.lane.b32.xlu1 %v8524_v13, %s7931_s30 }
0x2639   :  { %5325 = vmax.xlane.f32.xlu0 %v5324_v16 }
0x2641   :  { %5328 = vmax.xlane.f32.xlu1 %v5327_v20 }
0x2684   :  { %v4771_v27 = vpop.xlane.xlu0 %4770 }
0x2685   :  { %v4768_v19 = vpop.xlane.xlu1 %4767 }
0x2686   :  { %7849 = vrcp.f32 %v4768_v19 }
0x2687   :  { %7851 = vrcp.f32 %v4771_v27 }
0x268d   :  { %v4972_v28 = vpop.xlane.xlu1 %4971 }
0x268e   :  { %7853 = vrcp.f32 %v4972_v28 }
0x2690   :  { %v7850_v13 = vpop.eup %7849 }
0x2691   :  { %v4975_v18 = vpop.xlane.xlu0 %4974  ;;  %v7693_v29 = vpop.permute.xlu1 %7692  ;;  %v4774_v30 = vmul.f32 %v7850_v13, %v7844_v61 }
0x2692   :  { %7855 = vrcp.f32 %v4975_v18  ;;  %v7695_v31 = vunpack.i.h.bf16 %v7693_v29  ;;  %v7694_v33 = vunpack.i.l.bf16 %v7693_v29  ;;  %v7852_v10 = vpop.eup %7851 }
0x2693   :  { %7075 = vmatprep.mubr.msk.f32.mxu1 %vm488_vm8, %v4774_v30  ;;  %v4775_v42 = vmul.f32 %v7852_v10, %v7842_v60 }
0x2694   :  { %v7431_v35 = vpack.c.bf16 %v7695_v31, %v7694_v33 }
0x2695   :  { %v7698_v9 = vpop.permute.xlu0 %7697  ;;  %v7703_v34 = vpop.permute.xlu1 %7702 }
0x2696   :  { %v7700_v32 = vunpack.i.h.bf16 %v7698_v9  ;;  %v7699_v37 = vunpack.i.l.bf16 %v7698_v9  ;;  %v7705_v39 = vunpack.i.h.bf16 %v7703_v34  ;;  %v7704_v40 = vunpack.i.l.bf16 %v7703_v34  ;;  %7432 = vmatprep.subr.bf16.mxu1 %v7431_v35 }
0x2697   :  { %7434 = vmatpush3.bf16.msra.mxu1 %v7431_v35 }
0x2698   :  { %v7854_v41 = vpop.eup %7853  ;;  %v7441_v43 = vpack.c.bf16 %v7700_v32, %v7699_v37  ;;  %v7455_v44 = vpack.c.bf16 %v7705_v39, %v7704_v40 }
0x2699   :  { %v5517_v7 = vpop.permute.xlu1 %5516  ;;  %v4978_v0 = vmul.f32 %v7854_v41, %v7846_v12 }
0x269a   :  { %7076 = vmatmul.mubr.msk.f32.vlgmr.msra.gmra.mrb[34].mxu1 %vm488_vm8, %v4775_v42  ;;  %7442 = vmatprep.subr.bf16.mxu1 %v7441_v43 }
0x269b   :  { %7457 = vmatprep.subr.msk.bf16.mxu0 %vm8091_vm4, %v7455_v44  ;;  %7125 = vmatprep.mubr.msk.f32.mxu0 %vm400_vm3, %v5517_v7  ;;  %v3222_v7 = vld [vmem:[#allocation2 + $0x1d8] sm:$0xff] }
0x269c   :  { %v7856_v62 = vpop.eup %7855  ;;  %7444 = vmatpush3.bf16.msra.mxu1 %v7441_v43  ;;  %7089 = vmatprep.mubr.msk.f32.mxu1 %vm488_vm8, %v4978_v0 }
0x269d   :  { %v4979_v45 = vmul.f32 %v7856_v62, %v7848_v15  ;;  %7460 = vmatpush3.bf16.xpose.msk.msra.mxu0 %vm8091_vm4, %v7455_v44  ;;  %v5519_v46 = vpop.permute.xlu1 %5518  ;;  %7092 = vmatprep.subr.mxu1 %v3220_v53 }
0x269f   :  { %7090 = vmatmul.mubr.msk.f32.vlgmr.msra.gmra.mrb[36].mxu1 %vm488_vm8, %v4979_v45 }
0x26a0   :  { %7093 = vmatpush3.msra.mxu1 %v3220_v53 }
0x26a1   :  { %7097 = vmatprep.subr.mxu1 %v3219_v54 }
0x26a4   :  { %7126 = vmatmul.mubr.msk.f32.vlgmr.msra.gmra.mrb[44].mxu0 %vm400_vm3, %v5519_v46 }
0x26c6   :  { %v5326_v47 = vpop.xlane.xlu0 %5325 }
0x26c7   :  { %v5330_v11 = vsub.f32 %v5322_v25, %v5326_v47 }
0x26c9   :  { %v5332_v50 = vmul.f32 1.442695, %v5330_v11  ;;  %v6409_v11 = vld [vmem:[%s8719_s5 + $0x14] ss:$0 sm:$0xff] }
0x26ce   :  { %v5329_v17 = vpop.xlane.xlu1 %5328 }
0x26cf   :  { %v5331_v48 = vsub.f32 %v5323_v26, %v5329_v17 }
0x26d1   :  { %v5334_v51 = vmul.f32 1.442695, %v5331_v48 }
0x26d3   :  { %7857 = vpow2.f32 %v5334_v51 }
0x26d4   :  { %7859 = vpow2.f32 %v5332_v50 }
0x26dd   :  { %v7858_v21 = vpop.eup %7857 }
0x26de   :  { %v5339_v49 = vsel %vm488_vm8, %v7858_v21, 0.0  ;;  %v7860_v52 = vpop.eup %7859 }
0x26df   :  { %5340 = vadd.xlane.f32.xlu0 %v5339_v49  ;;  %v5336_v24 = vsel %vm488_vm8, %v7860_v52, 0.0 }
0x26e3   :  { %5337 = vadd.xlane.f32.xlu0 %v5336_v24 }
0x26f9   :  { %7707 = vrot.lane.b32.xlu0 %v8534_v22, %s7932_s7 }
0x276c   :  { %v5341_v57 = vpop.xlane.xlu0 %5340 }
0x276d   :  { %v7077_v58 = vpop.f32.mrb[34].mxu1 }
0x276e   :  { %v4854_v59 = vpop.f32.mrb[35].mxu1 }
0x2770   :  { %v5338_v60 = vpop.xlane.xlu0 %5337 }
0x2771   :  { %7861 = vrcp.f32 %v5338_v60 }
0x2772   :  { %7863 = vrcp.f32 %v5341_v57  ;;  %v7091_v61 = vpop.f32.mrb[36].mxu1 }
0x2773   :  { %v5058_v4 = vpop.f32.mrb[37].mxu1 }
0x2774   :  { %v7708_v5 = vpop.permute.xlu0 %7707  ;;  %7094 = vmatprep.mubr.msk.f32.mxu1 %vm400_vm3, %v5058_v4 }
0x2775   :  { %v7710_v8 = vunpack.i.h.bf16 %v7708_v5  ;;  %v7709_v12 = vunpack.i.l.bf16 %v7708_v5  ;;  %7095 = vmatmul.mubr.msk.f32.vlgmr.msra.gmra.mrb[38].mxu1 %vm400_vm3, %v7091_v61 }
0x2776   :  { %7099 = vmatprep.mubr.msk.f32.mxu1 %vm400_vm3, %v4854_v59  ;;  %7098 = vmatpush3.msra.mxu1 %v3219_v54 }
0x2777   :  { %v7451_v2 = vpack.c.bf16 %v7710_v8, %v7709_v12  ;;  %v7127_v15 = vpop.f32.mrb[44].mxu0 }
0x2778   :  { %v5598_v6 = vpop.f32.mrb[45].mxu0  ;;  %v5608_v23 = vmul.f32 0.35355338, %v7127_v15 }
0x2779   :  { %v5607_v25 = vmul.f32 0.35355338, %v5598_v6  ;;  %7452 = vmatprep.subr.bf16.mxu1 %v7451_v2 }
0x277a   :  { %v5610_v27 = vsel %vm8117_vm7, %v5608_v23, -1e+30 }
0x277b   :  { %v7862_v16 = vpop.eup %7861  ;;  %v5609_v14 = vsel %vm49_vm9, %v5607_v25, -1e+30  ;;  %v5614_v13 = vsel %vm488_vm8, %v5610_v27, -inf  ;;  %v6410_v25 = vld [vmem:[%s8719_s5 + $0x15] ss:$0 sm:$0xff] }
0x277c   :  { %v7864_v26 = vpop.eup %7863  ;;  %v5611_v20 = vsel %vm488_vm8, %v5609_v14, -inf  ;;  %v5344_v19 = vmul.f32 %v7862_v16, %v7860_v52 }
0x277d   :  { %5612 = vmax.xlane.f32.xlu1 %v5611_v20  ;;  %7100 = vmatmul.mubr.msk.f32.vlgmr.msra.gmra.mrb[38].mxu1 %vm400_vm3, %v7077_v58  ;;  %v5345_v28 = vmul.f32 %v7864_v26, %v7858_v21 }
0x277e   :  { %7454 = vmatpush3.bf16.msra.mxu1 %v7451_v2  ;;  %7113 = vmatprep.mubr.msk.f32.mxu1 %vm488_vm8, %v5344_v19 }
0x277f   :  { %7116 = vmatprep.subr.mxu1 %v3221_v36 }
0x2781   :  { %5615 = vmax.xlane.f32.xlu1 %v5614_v13  ;;  %7114 = vmatmul.mubr.msk.f32.vlgmr.msra.gmra.mrb[40].mxu1 %vm488_vm8, %v5345_v28 }
0x2782   :  { %7117 = vmatpush3.msra.mxu1 %v3221_v36 }
0x280a   :  { %v5613_v18 = vpop.xlane.xlu1 %5612 }
0x280b   :  { %v5617_v29 = vsub.f32 %v5609_v14, %v5613_v18  ;;  %v6411_v14 = vld [vmem:[%s8719_s5 + $0x16] ss:$0 sm:$0xff] }
0x280d   :  { %v5619_v31 = vmul.f32 1.442695, %v5617_v29 }
0x280e   :  { %v5616_v30 = vpop.xlane.xlu1 %5615 }
0x280f   :  { %v5618_v38 = vsub.f32 %v5610_v27, %v5616_v30 }
0x2811   :  { %v5621_v33 = vmul.f32 1.442695, %v5618_v38 }
0x2813   :  { %7865 = vpow2.f32 %v5621_v33 }
0x2814   :  { %7867 = vpow2.f32 %v5619_v31 }
0x281d   :  { %v7866_v35 = vpop.eup %7865 }
0x281e   :  { %v5626_v10 = vsel %vm488_vm8, %v7866_v35, 0.0  ;;  %v7868_v9 = vpop.eup %7867 }
0x281f   :  { %5627 = vadd.xlane.f32.xlu1 %v5626_v10  ;;  %v5623_v34 = vsel %vm488_vm8, %v7868_v9, 0.0 }
0x2823   :  { %5624 = vadd.xlane.f32.xlu1 %v5623_v34 }
0x2834   :  { %7712 = vrot.lane.b32.xlu1 %v8534_v22, %s7933_s8 }
0x2854   :  { %v7115_v32 = vpop.f32.mrb[40].mxu1 }
0x2855   :  { %v5424_v37 = vpop.f32.mrb[41].mxu1 }
0x2856   :  { %7118 = vmatprep.mubr.msk.f32.mxu1 %vm400_vm3, %v5424_v37 }
0x2857   :  { %7119 = vmatmul.mubr.msk.f32.vlgmr.msra.gmra.mrb[38].mxu1 %vm400_vm3, %v7115_v32 }
0x28ac   :  { %v5628_v39 = vpop.xlane.xlu1 %5627 }
0x28ad   :  { %7869 = vrcp.f32 %v5628_v39  ;;  %v3223_v39 = vld [vmem:[#allocation2 + $0x1e0] sm:$0xff] }
0x28b0   :  { %v5625_v40 = vpop.xlane.xlu1 %5624 }
0x28b1   :  { %7871 = vrcp.f32 %v5625_v40  ;;  %v3224_v40 = vld [vmem:[#allocation2 + $0x1e8] sm:$0xff] }
0x28b4   :  { %v7713_v41 = vpop.permute.xlu1 %7712 }
0x28b5   :  { %v7715_v42 = vunpack.i.h.bf16 %v7713_v41  ;;  %v7714_v43 = vunpack.i.l.bf16 %v7713_v41  ;;  %v3225_v41 = vld [vmem:[#allocation2 + $0x1f0] sm:$0xff] }
0x28b7   :  { %v7461_v44 = vpack.c.bf16 %v7715_v42, %v7714_v43  ;;  %v7870_v0 = vpop.eup %7869  ;;  %v3226_v42 = vld [vmem:[#allocation2 + $0x1f8] sm:$0xff] }
0x28b8   :  { %v5632_v45 = vmul.f32 %v7870_v0, %v7866_v35  ;;  %v7469_v43 = vpack.c.bf16 %v3226_v42, %v3225_v41 }
0x28b9   :  { %7462 = vmatprep.subr.bf16.mxu1 %v7461_v44 }
0x28ba   :  { %7464 = vmatpush3.bf16.msra.mxu1 %v7461_v44 }
0x28bb   :  { %v7872_v62 = vpop.eup %7871  ;;  %7135 = vmatprep.subr.mxu1 %v3222_v7 }
0x28bc   :  { %v5631_v22 = vmul.f32 %v7872_v62, %v7868_v9 }
0x28be   :  { %7132 = vmatprep.mubr.msk.f32.mxu1 %vm488_vm8, %v5631_v22 }
0x28bf   :  { %7133 = vmatmul.mubr.msk.f32.vlgmr.msra.gmra.mrb[42].mxu1 %vm488_vm8, %v5632_v45 }
0x28c0   :  { %7136 = vmatpush3.msra.mxu1 %v3222_v7 }
0x2992   :  { %v7134_v46 = vpop.f32.mrb[42].mxu1 }
0x2993   :  { %v5711_v47 = vpop.f32.mrb[43].mxu1 }
0x2994   :  { %7137 = vmatprep.mubr.msk.f32.mxu1 %vm400_vm3, %v5711_v47  ;;  %v6412_v47 = vld [vmem:[%s8719_s5 + $0x17] ss:$0 sm:$0xff] }
0x2995   :  { %7138 = vmatmul.mubr.msk.f32.vlgmr.msra.gmra.mrb[38].mxu1 %vm400_vm3, %v7134_v46 }
0x2a68   :  { %v7139_v17 = vpop.f32.mrb[38].mxu1 }
0x2a69   :  { %v5808_v48 = vadd.f32 %v7139_v17, %v6409_v11  ;;  %v5792_v50 = vpop.f32.mrb[39].mxu1  ;;  %v6413_v17 = vld [vmem:[%s8719_s5 + $0x18] ss:$0 sm:$0xff] }
0x2a6a   :  { %v5807_v51 = vadd.f32 %v6409_v11, %v5792_v50 }
0x2a6b   :  { %v5810_v21 = vadd.f32 %v5808_v48, %v8510_v56 }
0x2a6c   :  { %v5809_v49 = vadd.f32 %v5807_v51, %v8507_v55 }
0x2a6d   :  { %v5814_v52 = vsel %vm312_vm2, %v5810_v21, 0.0 }
0x2a6e   :  { %5815 = vadd.xlane.f32.xlu1 %v5814_v52  ;;  %v5811_v24 = vsel %vm312_vm2, %v5809_v49, 0.0 }
0x2a6f   :  { %5812 = vadd.xlane.f32.xlu0 %v5811_v24  ;;  %v3227_v24 = vld [vmem:[#allocation2 + $0x200] sm:$0xff] }
0x2afb   :  { %v5816_v53 = vpop.xlane.xlu1 %5815 }
0x2afc   :  { %v5818_v54 = vmul.f32 0.03125, %v5816_v53  ;;  %v5813_v57 = vpop.xlane.xlu0 %5812  ;;  %v3228_v53 = vld [vmem:[#allocation2 + $0x208] sm:$0xff] }
0x2afd   :  { %v5817_v58 = vmul.f32 0.03125, %v5813_v57  ;;  %v3229_v57 = vld [vmem:[#allocation2 + $0x210] sm:$0xff] }
0x2afe   :  { %v5820_v59 = vsub.f32 %v5810_v21, %v5818_v54  ;;  %v7473_v54 = vpack.c.bf16 %v3228_v53, %v3227_v24 }
0x2aff   :  { %v5819_v60 = vsub.f32 %v5809_v49, %v5817_v58  ;;  %v3230_v58 = vld [vmem:[#allocation2 + $0x218] sm:$0xff] }
0x2b00   :  { %v5822_v5 = vmul.f32 %v5820_v59, %v5820_v59  ;;  %7474 = vmatprep.subr.bf16.mxu1 %v7473_v54 }
0x2b01   :  { %v5821_v61 = vmul.f32 %v5819_v60, %v5819_v60  ;;  %7476 = vmatpush3.bf16.msra.mxu1 %v7473_v54 }
0x2b02   :  { %v5826_v56 = vsel %vm312_vm2, %v5822_v5, 0.0  ;;  %v3233_v5 = vld [vmem:[#allocation2 + $0x230] sm:$0xff] }
0x2b03   :  { %v5823_v4 = vsel %vm312_vm2, %v5821_v61, 0.0  ;;  %v3232_v61 = vld [vmem:[#allocation2 + $0x228] sm:$0xff] }
0x2b04   :  { %5824 = vadd.xlane.f32.xlu0 %v5823_v4 }
0x2b08   :  { %5827 = vadd.xlane.f32.xlu0 %v5826_v56  ;;  %v3234_v56 = vld [vmem:[#allocation2 + $0x238] sm:$0xff] }
0x2b91   :  { %v5825_v55 = vpop.xlane.xlu0 %5824 }
0x2b92   :  { %v5829_v8 = vmul.f32 0.03125, %v5825_v55  ;;  %v7485_v55 = vpack.c.bf16 %v3234_v56, %v3233_v5 }
0x2b94   :  { %v5831_v12 = vadd.f32 1e-05, %v5829_v8  ;;  %v3235_v8 = vld [vmem:[#allocation2 + $0x240] sm:$0xff] }
0x2b95   :  { %v5828_v2 = vpop.xlane.xlu0 %5827 }
0x2b96   :  { %7873 = vrsqrt.f32 %v5831_v12  ;;  %v5830_v15 = vmul.f32 0.03125, %v5828_v2  ;;  %v3236_v12 = vld [vmem:[#allocation2 + $0x248] sm:$0xff] }
0x2b97   :  { %v7489_v2 = vpack.c.bf16 %v3236_v12, %v3235_v8 }
0x2b98   :  { %v5832_v6 = vadd.f32 1e-05, %v5830_v15  ;;  %v3237_v15 = vld [vmem:[#allocation2 + $0x250] sm:$0xff] }
0x2b9a   :  { %7875 = vrsqrt.f32 %v5832_v6  ;;  %v3238_v6 = vld [vmem:[#allocation2 + $0x258] sm:$0xff] }
0x2ba0   :  { %v7874_v23 = vpop.eup %7873 }
0x2ba1   :  { %v5835_v16 = vmul.f32 %v7874_v23, %v5819_v60  ;;  %v3231_v60 = vld [vmem:[#allocation2 + $0x220] sm:$0xff]  ;;  %v7493_v23 = vpack.c.bf16 %v3238_v6, %v3237_v15 }
0x2ba2   :  { %v7481_v4 = vpack.c.bf16 %v3232_v61, %v3231_v60 }
0x2ba3   :  { %v5841_v26 = vmul.f32 %v6410_v25, %v5835_v16  ;;  %v3240_v16 = vld [vmem:[#allocation2 + $0x268] sm:$0xff] }
0x2ba4   :  { %v7876_v20 = vpop.eup %7875 }
0x2ba5   :  { %v5847_v19 = vadd.f32 %v6411_v14, %v5841_v26  ;;  %v5836_v27 = vmul.f32 %v7876_v20, %v5820_v59  ;;  %v7477_v59 = vpack.c.bf16 %v3230_v58, %v3229_v57  ;;  %v3241_v26 = vld [vmem:[#allocation2 + $0x270] sm:$0xff]  ;;  %v3242_v20 = vld [vmem:[#allocation2 + $0x278] sm:$0xff] }
0x2ba7   :  { %v5849_v28 = vadd.f32 %v5847_v19, %v8376_v63  ;;  %v5842_v13 = vmul.f32 %v6410_v25, %v5836_v27  ;;  %7478 = vmatprep.subr.bf16.mxu1 %v7477_v59  ;;  %v3239_v25 = vld [vmem:[#allocation2 + $0x260] sm:$0xff]  ;;  %v7501_v19 = vpack.c.bf16 %v3242_v20, %v3241_v26  ;;  %v6414_v27 = vld [vmem:[%s8719_s5 + $0x19] ss:$0 sm:$0xff] }
0x2ba8   :  { %7480 = vmatpush3.bf16.msra.mxu1 %v7477_v59 }
0x2ba9   :  { %v5851_v36 = vsel %vm312_vm2, %v5849_v28, 0.0  ;;  %v5848_v18 = vadd.f32 %v6411_v14, %v5842_v13  ;;  %7482 = vmatprep.subr.bf16.mxu1 %v7481_v4  ;;  %v7497_v14 = vpack.c.bf16 %v3240_v16, %v3239_v25  ;;  %v6417_v25 = vld [vmem:[%s8719_s5 + $0x1a] ss:$0 sm:$0xff] }
0x2baa   :  { %5852 = vadd.xlane.f32.xlu0 %v5851_v36 }
0x2bab   :  { %v5850_v29 = vadd.f32 %v5848_v18, %v8378_v3  ;;  %v7465_v3 = vpack.c.bf16 %v3224_v40, %v3223_v39 }
0x2bac   :  { %7484 = vmatpush3.bf16.msra.mxu1 %v7481_v4 }
0x2bad   :  { %v5854_v30 = vsel %vm312_vm2, %v5850_v29, 0.0  ;;  %7466 = vmatprep.subr.bf16.mxu0 %v7465_v3  ;;  %7486 = vmatprep.subr.bf16.mxu1 %v7485_v55 }
0x2bae   :  { %5855 = vadd.xlane.f32.xlu0 %v5854_v30  ;;  %7468 = vmatpush3.bf16.msra.mxu0 %v7465_v3 }
0x2baf   :  { %7470 = vmatprep.subr.bf16.mxu0 %v7469_v43 }
0x2bb0   :  { %7488 = vmatpush3.bf16.msra.mxu1 %v7485_v55 }
0x2bb1   :  { %7490 = vmatprep.subr.bf16.mxu1 %v7489_v2 }
0x2bb2   :  { %7472 = vmatpush3.bf16.msra.mxu0 %v7469_v43 }
0x2bb4   :  { %7492 = vmatpush3.bf16.msra.mxu1 %v7489_v2 }
0x2bb5   :  { %7494 = vmatprep.subr.bf16.mxu1 %v7493_v23 }
0x2bb8   :  { %7496 = vmatpush3.bf16.msra.mxu1 %v7493_v23 }
0x2bb9   :  { %7498 = vmatprep.subr.bf16.mxu1 %v7497_v14 }
0x2bbc   :  { %7500 = vmatpush3.bf16.msra.mxu1 %v7497_v14 }
0x2bbd   :  { %7502 = vmatprep.subr.bf16.mxu1 %v7501_v19 }
0x2bc0   :  { %7504 = vmatpush3.bf16.msra.mxu1 %v7501_v19 }
0x2c37   :  { %v5853_v38 = vpop.xlane.xlu0 %5852 }
0x2c38   :  { %v5857_v31 = vmul.f32 0.03125, %v5853_v38 }
0x2c3a   :  { %v5859_v33 = vsub.f32 %v5849_v28, %v5857_v31 }
0x2c3b   :  { %v5856_v35 = vpop.xlane.xlu0 %5855 }
0x2c3c   :  { %v5858_v10 = vmul.f32 0.03125, %v5856_v35  ;;  %v5861_v9 = vmul.f32 %v5859_v33, %v5859_v33 }
0x2c3e   :  { %v5860_v34 = vsub.f32 %v5850_v29, %v5858_v10  ;;  %v5863_v32 = vsel %vm312_vm2, %v5861_v9, 0.0 }
0x2c3f   :  { %5864 = vadd.xlane.f32.xlu0 %v5863_v32 }
0x2c40   :  { %v5862_v63 = vmul.f32 %v5860_v34, %v5860_v34 }
0x2c42   :  { %v5866_v37 = vsel %vm312_vm2, %v5862_v63, 0.0 }
0x2c43   :  { %5867 = vadd.xlane.f32.xlu1 %v5866_v37 }
0x2ccc   :  { %v5865_v44 = vpop.xlane.xlu0 %5864 }
0x2ccd   :  { %v5869_v7 = vmul.f32 0.03125, %v5865_v44 }
0x2ccf   :  { %v5871_v0 = vadd.f32 1e-05, %v5869_v7 }
0x2cd0   :  { %v5868_v62 = vpop.xlane.xlu1 %5867 }
0x2cd1   :  { %7877 = vrsqrt.f32 %v5871_v0  ;;  %v5870_v22 = vmul.f32 0.03125, %v5868_v62 }
0x2cd3   :  { %v5872_v45 = vadd.f32 1e-05, %v5870_v22 }
0x2cd5   :  { %7879 = vrsqrt.f32 %v5872_v45 }
0x2cdb   :  { %v7878_v46 = vpop.eup %7877 }
0x2cdc   :  { %v5875_v11 = vmul.f32 %v7878_v46, %v5859_v33 }
0x2cde   :  { %v5881_v48 = vmul.f32 %v6412_v47, %v5875_v11 }
0x2cdf   :  { %v7880_v50 = vpop.eup %7879 }
0x2ce0   :  { %v5876_v51 = vmul.f32 %v7880_v50, %v5860_v34  ;;  %v8661_v21 = vadd.f32 %v6413_v17, %v5881_v48 }
0x2ce2   :  { %v5882_v49 = vmul.f32 %v6412_v47, %v5876_v51  ;;  %7148 = vmatprep.mubr.msk.f32.mxu0 %vm312_vm2, %v8661_v21 }
0x2ce4   :  { %v8665_v52 = vadd.f32 %v6413_v17, %v5882_v49 }
0x2ce6   :  { %7149 = vmatmul.mubr.msk.f32.vlgmr.msra.gmra.mrb[46].mxu0 %vm312_vm2, %v8665_v52 }
0x2db9   :  { %v7150_v28 = vpop.f32.mrb[46].mxu0 }
0x2dba   :  { %v5971_v13 = vadd.f32 %v7150_v28, %v6414_v27  ;;  %v5965_v36 = vpop.f32.mrb[47].mxu0 }
0x2dbb   :  { %v5966_v18 = vadd.f32 %v6414_v27, %v5965_v36 }
0x2dbc   :  { %v5977_v29 = vmul.f32 0.70710677, %v5971_v13  ;;  %v5975_v15 = vmul.f32 0.5, %v5971_v13 }
0x2dbd   :  { %v5976_v30 = vmul.f32 0.70710677, %v5966_v18  ;;  %v5974_v12 = vmul.f32 0.5, %v5966_v18 }
0x2dbe   :  { %v5983_v38 = vand.u32 2147483647, %v5977_v29  ;;  %vm5979_vm12 = vcmp.ge.f32.partialorder %v5977_v29, 0.0 }
0x2dbf   :  { %v5982_v31 = vand.u32 2147483647, %v5976_v30  ;;  %vm5978_vm13 = vcmp.ge.f32.partialorder %v5976_v30, 0.0  ;;  %v5981_v61 = vsel %vm5979_vm12, 1.0, %v7934_v1 }
0x2dc0   :  { %v5985_v33 = vmul.f32 0.3275911, %v5983_v38  ;;  %v6009_v34 = vsub.f32 0.0, %v5983_v38  ;;  %v5980_v56 = vsel %vm5978_vm13, 1.0, %v7934_v1 }
0x2dc1   :  { %v5984_v35 = vmul.f32 0.3275911, %v5982_v31  ;;  %v6008_v32 = vsub.f32 0.0, %v5982_v31 }
0x2dc2   :  { %v5987_v10 = vadd.f32 1.0, %v5985_v33  ;;  %v6011_v37 = vmul.f32 %v6009_v34, %v5983_v38  ;;  %v6149_v34 = vld [vmem:[%s8717_s3 + $0x18] sm:$0xff] }
0x2dc3   :  { %v5986_v9 = vadd.f32 1.0, %v5984_v35  ;;  %v6010_v3 = vmul.f32 %v6008_v32, %v5982_v31  ;;  %v6147_v35 = vld [vmem:[%s8717_s3 + $0x8] sm:$0xff]  ;;  %v6150_v32 = vld [vmem:[%s8717_s3 + $0x20] sm:$0xff] }
0x2dc4   :  { %7881 = vrcp.f32 %v5987_v10  ;;  %v6014_v43 = vmul.f32 1.442695, %v6011_v37  ;;  %v6148_v10 = vld [vmem:[%s8717_s3 + $0x10] sm:$0xff] }
0x2dc5   :  { %7883 = vrcp.f32 %v5986_v9  ;;  %v6012_v0 = vmul.f32 1.442695, %v6010_v3  ;;  %v7505_v9 = vpack.c.bf16 %v6148_v10, %v6147_v35 }
0x2dc6   :  { %7885 = vpow2.f32 %v6014_v43 }
0x2dc7   :  { %7887 = vpow2.f32 %v6012_v0  ;;  %7506 = vmatprep.subr.bf16.mxu0 %v7505_v9 }
0x2dc8   :  { %7508 = vmatpush3.bf16.msra.mxu0 %v7505_v9 }
0x2dce   :  { %v7882_v63 = vpop.eup %7881 }
0x2dcf   :  { %v7884_v39 = vpop.eup %7883  ;;  %v5991_v40 = vmul.f32 1.0614054, %v7882_v63 }
0x2dd0   :  { %v5990_v41 = vmul.f32 1.0614054, %v7884_v39  ;;  %v7886_v53 = vpop.eup %7885 }
0x2dd1   :  { %v5993_v42 = vadd.f32 -1.4531521, %v5991_v40  ;;  %v7888_v57 = vpop.eup %7887 }
0x2dd2   :  { %v5992_v44 = vadd.f32 -1.4531521, %v5990_v41 }
0x2dd3   :  { %v5995_v7 = vmul.f32 %v7882_v63, %v5993_v42 }
0x2dd4   :  { %v5994_v62 = vmul.f32 %v7884_v39, %v5992_v44  ;;  %v6418_v44 = vld [vmem:[%s8719_s5 + $0x1b] ss:$0 sm:$0xff] }
0x2dd5   :  { %v5997_v22 = vadd.f32 1.4214138, %v5995_v7 }
0x2dd6   :  { %v5996_v45 = vadd.f32 1.4214138, %v5994_v62 }
0x2dd7   :  { %v5999_v46 = vmul.f32 %v7882_v63, %v5997_v22  ;;  %v6419_v22 = vld [vmem:[%s8719_s5 + $0x1c] ss:$0 sm:$0xff] }
0x2dd8   :  { %v5998_v47 = vmul.f32 %v7884_v39, %v5996_v45 }
0x2dd9   :  { %v6001_v11 = vadd.f32 -0.28449672, %v5999_v46 }
0x2dda   :  { %v6000_v17 = vadd.f32 -0.28449672, %v5998_v47 }
0x2ddb   :  { %v6003_v48 = vmul.f32 %v7882_v63, %v6001_v11 }
0x2ddc   :  { %v6002_v50 = vmul.f32 %v7884_v39, %v6000_v17  ;;  %v6420_v17 = vld [vmem:[%s8717_s3 + $0x4] ss:$0 sm:$0xff] }
0x2ddd   :  { %v6005_v51 = vadd.f32 0.2548296, %v6003_v48 }
0x2dde   :  { %v6004_v49 = vadd.f32 0.2548296, %v6002_v50 }
0x2ddf   :  { %v6007_v24 = vmul.f32 %v7882_v63, %v6005_v51  ;;  %v7509_v63 = vpack.c.bf16 %v6150_v32, %v6149_v34 }
0x2de0   :  { %v6006_v54 = vmul.f32 %v7884_v39, %v6004_v49 }
0x2de1   :  { %v6017_v58 = vmul.f32 %v7886_v53, %v6007_v24  ;;  %7510 = vmatprep.subr.bf16.mxu0 %v7509_v63 }
0x2de2   :  { %v6016_v59 = vmul.f32 %v7888_v57, %v6006_v54  ;;  %7512 = vmatpush3.bf16.msra.mxu0 %v7509_v63 }
0x2de3   :  { %v6019_v60 = vsub.f32 1.0, %v6017_v58 }
0x2de4   :  { %v6018_v4 = vsub.f32 1.0, %v6016_v59 }
0x2de5   :  { %v6021_v5 = vmul.f32 %v6019_v60, %v5981_v61 }
0x2de6   :  { %v6020_v55 = vmul.f32 %v6018_v4, %v5980_v56 }
0x2de7   :  { %v6023_v8 = vadd.f32 1.0, %v6021_v5 }
0x2de8   :  { %v6022_v2 = vadd.f32 1.0, %v6020_v55 }
0x2de9   :  { %v6025_v23 = vmul.f32 %v6023_v8, %v5975_v15 }
0x2dea   :  { %v6024_v6 = vmul.f32 %v6022_v2, %v5974_v12 }
0x2dec   :  { %7183 = vmatprep.mubr.f32.mxu1 %v6024_v6 }
0x2ded   :  { %7184 = vmatmul.mubr.f32.vlgmr.msra.gmra.mrb[44].mxu1 %v6025_v23 }
0x2ec0   :  { %v7185_v16 = vpop.f32.mrb[44].mxu1 }
0x2ec1   :  { %v6102_v14 = vadd.f32 %v7185_v16, %v8665_v52  ;;  %v6092_v26 = vpop.f32.mrb[45].mxu1 }
0x2ec2   :  { %v6101_v20 = vadd.f32 %v6092_v26, %v8661_v21 }
0x2ec3   :  { %v6108_v1 = vadd.f32 %v6417_v25, %v6102_v14 }
0x2ec4   :  { %v6107_v19 = vadd.f32 %v6417_v25, %v6101_v20 }
0x2ec5   :  { %v6112_v27 = vsel %vm312_vm2, %v6108_v1, 0.0 }
0x2ec6   :  { %6113 = vadd.xlane.f32.xlu1 %v6112_v27  ;;  %v6109_v28 = vsel %vm312_vm2, %v6107_v19, 0.0 }
0x2ec7   :  { %6110 = vadd.xlane.f32.xlu0 %v6109_v28 }
0x2f53   :  { %v6114_v13 = vpop.xlane.xlu1 %6113 }
0x2f54   :  { %v6116_v36 = vmul.f32 0.03125, %v6114_v13  ;;  %v6111_v18 = vpop.xlane.xlu0 %6110 }
0x2f55   :  { %v6115_v29 = vmul.f32 0.03125, %v6111_v18 }
0x2f56   :  { %v6118_v30 = vsub.f32 %v6108_v1, %v6116_v36 }
0x2f57   :  { %v6117_v38 = vsub.f32 %v6107_v19, %v6115_v29 }
0x2f58   :  { %v6120_v31 = vmul.f32 %v6118_v30, %v6118_v30 }
0x2f59   :  { %v6119_v33 = vmul.f32 %v6117_v38, %v6117_v38 }
0x2f5a   :  { %v6124_v52 = vsel %vm312_vm2, %v6120_v31, 0.0 }
0x2f5b   :  { %6125 = vadd.xlane.f32.xlu1 %v6124_v52  ;;  %v6121_v21 = vsel %vm312_vm2, %v6119_v33, 0.0 }
0x2f5c   :  { %6122 = vadd.xlane.f32.xlu0 %v6121_v21 }
0x2fe8   :  { %v6126_v37 = vpop.xlane.xlu1 %6125 }
0x2fe9   :  { %v6128_v39 = vmul.f32 0.03125, %v6126_v37  ;;  %v6123_v40 = vpop.xlane.xlu0 %6122 }
0x2fea   :  { %v6127_v3 = vmul.f32 0.03125, %v6123_v40 }
0x2feb   :  { %v6130_v41 = vadd.f32 1e-05, %v6128_v39 }
0x2fec   :  { %v6129_v42 = vadd.f32 1e-05, %v6127_v3 }
0x2fed   :  { %7889 = vrsqrt.f32 %v6130_v41 }
0x2fee   :  { %7891 = vrsqrt.f32 %v6129_v42 }
0x2ff7   :  { %v7890_v43 = vpop.eup %7889 }
0x2ff8   :  { %v7892_v7 = vpop.eup %7891  ;;  %v6134_v0 = vmul.f32 %v7890_v43, %v6118_v30 }
0x2ff9   :  { %v6133_v62 = vmul.f32 %v7892_v7, %v6117_v38 }
0x2ffa   :  { %v6140_v45 = vmul.f32 %v6418_v44, %v6134_v0 }
0x2ffb   :  { %v6139_v46 = vmul.f32 %v6418_v44, %v6133_v62 }
0x2ffc   :  { %v6146_v11 = vadd.f32 %v6419_v22, %v6140_v45 }
0x2ffd   :  { %v6145_v47 = vadd.f32 %v6419_v22, %v6139_v46 }
0x2fff   :  { %7194 = vmatprep.mubr.msk.f32.mxu0 %vm312_vm2, %v6145_v47 }
0x3000   :  { %7195 = vmatmul.mubr.msk.f32.vlgmr.msra.gmra.mrb[48].mxu0 %vm312_vm2, %v6146_v11 }
0x30d3   :  { %v7196_v48 = vpop.f32.mrb[48].mxu0 }
0x30d4   :  { %v6234_v50 = vadd.f32 %v7196_v48, %v6420_v17  ;;  %v6228_v51 = vpop.f32.mrb[49].mxu0 }
0x30d5   :  { %v6229_v49 = vadd.f32 %v6420_v17, %v6228_v51 }
0x30d6   :  { %6238 = vst.msk [vmem:[%s8720_s6 + $0x8] sm:$0xff] %vm488_vm8, %v6234_v50 }
0x30d7   :  { %6237 = vst.msk [vmem:[%s8720_s6] sm:$0xff] %vm488_vm8, %v6229_v49 }
0x30d8   :  { %6243 = vsyncpa [#allocation3], 1 }

</bundles_post_ra>
